<compile_context>
chip_gen: v6e
topology: v6e:2x2x1
jax: 0.10.0
libtpu: 0.0.40
codegen_flags: <defaults>
</compile_context>

<pallas_src>
import jax
import jax.numpy as jnp
from jax import lax
from jax.experimental import pallas as pl
from jax.experimental.pallas import tpu as pltpu


def _stem_kernel(x_ref, w_ref, bias_ref, o_ref):
    """Processes Bt batch elements per grid step.

    x_ref    : (Bt, T+2, H+2, W*Cin)      bf16, T/H zero-padded, W/Cin packed in lanes
    w_ref    : (KT, KH, W*Cin, W*Cout)    bf16 Toeplitz conv weights, BN scale folded,
                                          output-w columns parity permuted (even|odd)
    bias_ref : (1, (W//2)*Cout)           f32 folded BN bias in pooled column layout
    o_ref    : (Bt, T, H//2, (W//2)*Cout) pooled, lane-dense (128-lane) output
    """
    Bt, Tp, Hp, L = x_ref.shape
    KT, KH, _, N2 = w_ref.shape
    T, H = Tp - 2, Hp - 2
    M = T * H
    Np = N2 // 2                           # (W//2) * Cout, pooled lane width
    Hop = H // 2

    bias = bias_ref[...].reshape(1, 1, Np)                      # f32, hoisted

    for b in range(Bt):                                         # static unroll
        # ---- Conv3d as KT*KH matmuls, K = W*Cin, N = W*Cout (bf16 MXU, f32 acc) ----
        acc = jnp.zeros((M, N2), jnp.float32)
        for kt in range(KT):
            slab = x_ref[b, kt:kt + T, :, :]                    # (T, Hp, L) one load / kt
            for kh in range(KH):
                patch = slab[:, kh:kh + H, :].reshape(M, L)     # (M, L) bf16
                acc = acc + jnp.dot(patch, w_ref[kt, kh],
                                    preferred_element_type=jnp.float32)

        # ---- MaxPool3d (1,2,2)/(1,2,2) on the scale-folded accumulator ----
        # W-pool: columns ordered (even-w block | odd-w block) -> max of lane halves.
        yw = jnp.maximum(acc[:, :Np], acc[:, Np:])              # (M, Np)
        # H-pool: max over adjacent (t, 2h') / (t, 2h'+1) row pairs.
        yh = jnp.max(yw.reshape(T, Hop, 2, Np), axis=2)         # (T, Hop, Np)

        # ---- folded BN bias + ReLU (commutes with the max: x -> relu(x+b) monotone) ----
        y = jnp.maximum(yh + bias, 0.0)                         # (T, Hop, Np) f32
        o_ref[b] = y.astype(o_ref.dtype)


def _fold_conv_weights(weight_oidhw, W, bn_scale, dtype=jnp.bfloat16):
    """Toeplitz-expand OIDHW conv weights (stride 1, padding 1 along W) into
    per-(kt, kh) matrices of shape (W*Cin, W*Cout).  BN scale (per output channel)
    is folded in, and output-w columns are permuted to (even w | odd w) so the
    W max-pool becomes a max of two lane-halves.  W zero-padding is implicit."""
    Cout, Cin, KT, KH, KW = weight_oidhw.shape
    wt = jnp.transpose(weight_oidhw, (2, 3, 4, 1, 0)).astype(jnp.float32)  # (KT,KH,KW,Cin,Cout)
    wt = wt * bn_scale.astype(jnp.float32)[None, None, None, None, :]      # fold BN scale
    wi = jnp.arange(W)                                   # input w (unpadded coords)
    wo = jnp.arange(W)                                   # output w (pre-pool)
    kw_idx = wi[:, None] - wo[None, :] + 1               # tap index: wi = wo + kw - 1
    valid = ((kw_idx >= 0) & (kw_idx < KW)).astype(jnp.float32)
    g = wt[:, :, jnp.clip(kw_idx, 0, KW - 1)]            # (KT,KH,wi,wo,Cin,Cout)
    g = g * valid[None, None, :, :, None, None]
    g = jnp.transpose(g, (0, 1, 2, 4, 3, 5))             # (KT,KH, wi, ci, wo, co)
    perm = jnp.concatenate([jnp.arange(0, W, 2), jnp.arange(1, W, 2)])
    g = g[:, :, :, :, perm, :]                           # parity-permute output w
    return g.reshape(KT, KH, W * Cin, W * Cout).astype(dtype)


def resnet_basic_3d_stem(x_ncdhw, weight_oidhw, gamma, beta,
                         running_mean, running_var, eps=1e-5, batch_tile=None):
    """Matches:  MaxPool3d((1,2,2),(1,2,2)) ( ReLU ( BN3d ( Conv3d_k3s1p1 (x) ) ) )

    x_ncdhw      : (B, Cin, T, H, W)      (PyTorch NCDHW convention)
    weight_oidhw : (Cout, Cin, 3, 3, 3)
    returns      : (B, Cout, T, H//2, W//2)
    """
    B, Cin, T, H, W = x_ncdhw.shape
    Cout, _, KT, KH, KW = weight_oidhw.shape
    assert H % 2 == 0 and W % 2 == 0, "MaxPool3d floor semantics: keep H, W even"
    Hop, Wop = H // 2, W // 2
    L, N2, Np = W * Cin, W * Cout, Wop * Cout

    if batch_tile is None:
        batch_tile = max(d for d in (1, 2, 4) if B % d == 0)
    assert B % batch_tile == 0

    # glue: lane-dense bf16 input packing; only the T/H halo is physically padded
    # (the W pad is folded into the Toeplitz weights).
    x = jnp.transpose(x_ncdhw, (0, 2, 3, 4, 1)).reshape(B, T, H, L)
    xp = jnp.pad(x, ((0, 0), (1, 1), (1, 1), (0, 0))).astype(jnp.bfloat16)
    # TODO(synk): for production-size stems, add T/H grid tiling with overlapping
    # halo'd input blocks and a W-tiled Toeplitz (keep W_tile*Cout ~ 256) so the
    # weight/accumulator footprint stays constant on v7x's 64 MiB VMEM.

    # glue: one-off weight Toeplitz expansion (BN scale folded) + folded BN bias.
    scale = (gamma.astype(jnp.float32) * lax.rsqrt(running_var.astype(jnp.float32) + eps))
    bias = beta.astype(jnp.float32) - running_mean.astype(jnp.float32) * scale
    big_w = _fold_conv_weights(weight_oidhw, W, scale)          # (KT,KH,L,N2) bf16
    # pooled column layout is (w', co) with co minor -> per-column value = bias[col % Cout]
    bias_np = jnp.tile(bias, Wop).reshape(1, Np)                # (1, Np) f32

    out_packed = pl.pallas_call(
        _stem_kernel,
        out_shape=jax.ShapeDtypeStruct((B, T, Hop, Np), x_ncdhw.dtype),
        grid_spec=pltpu.PrefetchScalarGridSpec(
            num_scalar_prefetch=0,
            grid=(B // batch_tile,),
            in_specs=[
                pl.BlockSpec((batch_tile, T + 2, H + 2, L), lambda b: (b, 0, 0, 0)),
                pl.BlockSpec((KT, KH, L, N2), lambda b: (0, 0, 0, 0)),
                pl.BlockSpec((1, Np), lambda b: (0, 0)),
            ],
            out_specs=pl.BlockSpec((batch_tile, T, Hop, Np), lambda b: (b, 0, 0, 0)),
        ),
        compiler_params=pltpu.CompilerParams(
            dimension_semantics=("parallel",),
            vmem_limit_bytes=32 * 1024 * 1024),
    )(xp, big_w, bias_np)

    # glue: back to PyTorch NCDHW convention
    out = out_packed.reshape(B, T, Hop, Wop, Cout)
    return jnp.transpose(out, (0, 4, 1, 2, 3))


def _reference(x_ncdhw, weight_oidhw, gamma, beta, mean, var, eps=1e-5,
               operand_dtype=jnp.float32):
    """Pure-JAX reference with identical semantics.  `operand_dtype` controls the
    conv operand precision (bf16 to mirror the kernel's MXU quantization)."""
    scale = gamma.astype(jnp.float32) * lax.rsqrt(var.astype(jnp.float32) + eps)
    bias = beta.astype(jnp.float32) - mean.astype(jnp.float32) * scale
    xt = jnp.transpose(x_ncdhw, (0, 2, 3, 4, 1)).astype(operand_dtype)
    w = (jnp.transpose(weight_oidhw, (2, 3, 4, 1, 0)).astype(jnp.float32)
         * scale[None, None, None, None, :]).astype(operand_dtype)
    dn = lax.conv_dimension_numbers(xt.shape, w.shape, ('NDHWC', 'DHWIO', 'NDHWC'))
    y = lax.conv_general_dilated(xt, w, (1, 1, 1), [(1, 1)] * 3,
                                 dimension_numbers=dn,
                                 preferred_element_type=jnp.float32)
    y = jnp.maximum(y + bias, 0.0)
    y = lax.reduce_window(y, -jnp.inf, lax.max,
                          (1, 1, 2, 2, 1), (1, 1, 2, 2, 1), 'VALID')
    return jnp.transpose(y, (0, 4, 1, 2, 3))


if __name__ == "__main__":
    key = jax.random.PRNGKey(0)
    kx, kw, kg, kb, km, kv = jax.random.split(key, 6)

    B, Cin, T, H, W = 2, 3, 4, 16, 16
    Cout, K = 16, 3

    x = jax.random.normal(kx, (B, Cin, T, H, W), jnp.float32)
    weight = 0.1 * jax.random.normal(kw, (Cout, Cin, K, K, K), jnp.float32)
    gamma = 1.0 + 0.1 * jax.random.normal(kg, (Cout,), jnp.float32)
    beta = 0.1 * jax.random.normal(kb, (Cout,), jnp.float32)
    running_mean = 0.1 * jax.random.normal(km, (Cout,), jnp.float32)
    running_var = jax.nn.softplus(jax.random.normal(kv, (Cout,), jnp.float32)) + 0.5

    out = resnet_basic_3d_stem(x, weight, gamma, beta, running_mean, running_var)
    out = jax.block_until_ready(out)
    assert out.shape == (B, Cout, T, H // 2, W // 2), out.shape

    # Tight check against a reference using the same bf16 operand quantization.
    ref16 = _reference(x, weight, gamma, beta, running_mean, running_var,
                       operand_dtype=jnp.bfloat16)
    err16 = float(jnp.max(jnp.abs(out - ref16)))
    assert err16 < 2e-3, f"bf16-operand reference mismatch: {err16}"

    # Loose check against the full-f32 module semantics (bf16 operand error only).
    ref32 = _reference(x, weight, gamma, beta, running_mean, running_var,
                       operand_dtype=jnp.float32)
    err32 = float(jnp.max(jnp.abs(out - ref32)))
    assert err32 < 5e-2, f"f32 reference mismatch: {err32}"

    print("KERNEL_OK")
</pallas_src>

<mosaic_0001>
module attributes {stable_mosaic.version = 11 : i64} {
  func.func @_stem_kernel(%arg0: i32, %arg1: memref<2x6x18x48xbf16, #tpu.memory_space<vmem>>, %arg2: memref<3x3x48x256xbf16, #tpu.memory_space<vmem>>, %arg3: memref<1x128xf32, #tpu.memory_space<vmem>>, %arg4: memref<2x4x8x128xf32, #tpu.memory_space<vmem>>) attributes {dimension_semantics = [#tpu.dimension_semantics<parallel>], iteration_bounds = array<i64: 1>, scalar_prefetch = 0 : i64, scratch_operands = 0 : i64, tpu.core_type = #tpu.core_type<tc>, window_params = [{transform_indices = @transform_0, window_bounds = array<i64: 2, 6, 18, 48>}, {pipeline_mode = #tpu.pipeline_mode<synchronous>, transform_indices = @transform_1, window_bounds = array<i64: 3, 3, 48, 256>}, {pipeline_mode = #tpu.pipeline_mode<synchronous>, transform_indices = @transform_2, window_bounds = array<i64: 1, 128>}, {transform_indices = @transform_3, window_bounds = array<i64: 2, 4, 8, 128>}]} {
    %c0 = arith.constant 0 : index
    %c0_0 = arith.constant 0 : index
    %0 = vector.load %arg3[%c0, %c0_0] : memref<1x128xf32, #tpu.memory_space<vmem>>, vector<1x128xf32>
    %1 = vector.shape_cast %0 : vector<1x128xf32> to vector<1x1x128xf32>
    %cst = arith.constant 0.000000e+00 : f32
    %2 = vector.broadcast %cst : f32 to vector<64x256xf32>
    %c0_1 = arith.constant 0 : index
    %c0_2 = arith.constant 0 : index
    %c0_3 = arith.constant 0 : index
    %c0_4 = arith.constant 0 : index
    %3 = vector.load %arg1[%c0_1, %c0_2, %c0_3, %c0_4] : memref<2x6x18x48xbf16, #tpu.memory_space<vmem>>, vector<1x4x18x48xbf16>
    %4 = vector.shape_cast %3 : vector<1x4x18x48xbf16> to vector<4x18x48xbf16>
    %5 = vector.extract_strided_slice %4 {offsets = [0, 0, 0], sizes = [4, 16, 48], strides = [1, 1, 1]} : vector<4x18x48xbf16> to vector<4x16x48xbf16>
    %6 = vector.shape_cast %5 : vector<4x16x48xbf16> to vector<64x48xbf16>
    %c0_5 = arith.constant 0 : index
    %c0_6 = arith.constant 0 : index
    %c0_7 = arith.constant 0 : index
    %c0_8 = arith.constant 0 : index
    %7 = vector.load %arg2[%c0_5, %c0_6, %c0_7, %c0_8] : memref<3x3x48x256xbf16, #tpu.memory_space<vmem>>, vector<1x1x48x256xbf16>
    %8 = vector.shape_cast %7 : vector<1x1x48x256xbf16> to vector<48x256xbf16>
    %cst_9 = arith.constant dense<0.000000e+00> : vector<64x256xf32>
    %9 = tpu.matmul %6, %8, %cst_9 {dimension_numbers = #tpu.dot_dimension_numbers<[1], [0], [0], [1], [0, 0, 1, 1], [], []>} : vector<64x48xbf16>, vector<48x256xbf16>, vector<64x256xf32> -> vector<64x256xf32>
    %10 = arith.addf %2, %9 : vector<64x256xf32>
    %11 = vector.extract_strided_slice %4 {offsets = [0, 1, 0], sizes = [4, 16, 48], strides = [1, 1, 1]} : vector<4x18x48xbf16> to vector<4x16x48xbf16>
    %12 = vector.shape_cast %11 : vector<4x16x48xbf16> to vector<64x48xbf16>
    %c0_10 = arith.constant 0 : index
    %c1 = arith.constant 1 : index
    %c0_11 = arith.constant 0 : index
    %c0_12 = arith.constant 0 : index
    %13 = vector.load %arg2[%c0_10, %c1, %c0_11, %c0_12] : memref<3x3x48x256xbf16, #tpu.memory_space<vmem>>, vector<1x1x48x256xbf16>
    %14 = vector.shape_cast %13 : vector<1x1x48x256xbf16> to vector<48x256xbf16>
    %cst_13 = arith.constant dense<0.000000e+00> : vector<64x256xf32>
    %15 = tpu.matmul %12, %14, %cst_13 {dimension_numbers = #tpu.dot_dimension_numbers<[1], [0], [0], [1], [0, 0, 1, 1], [], []>} : vector<64x48xbf16>, vector<48x256xbf16>, vector<64x256xf32> -> vector<64x256xf32>
    %16 = arith.addf %10, %15 : vector<64x256xf32>
    %17 = vector.extract_strided_slice %4 {offsets = [0, 2, 0], sizes = [4, 16, 48], strides = [1, 1, 1]} : vector<4x18x48xbf16> to vector<4x16x48xbf16>
    %18 = vector.shape_cast %17 : vector<4x16x48xbf16> to vector<64x48xbf16>
    %c0_14 = arith.constant 0 : index
    %c2 = arith.constant 2 : index
    %c0_15 = arith.constant 0 : index
    %c0_16 = arith.constant 0 : index
    %19 = vector.load %arg2[%c0_14, %c2, %c0_15, %c0_16] : memref<3x3x48x256xbf16, #tpu.memory_space<vmem>>, vector<1x1x48x256xbf16>
    %20 = vector.shape_cast %19 : vector<1x1x48x256xbf16> to vector<48x256xbf16>
    %cst_17 = arith.constant dense<0.000000e+00> : vector<64x256xf32>
    %21 = tpu.matmul %18, %20, %cst_17 {dimension_numbers = #tpu.dot_dimension_numbers<[1], [0], [0], [1], [0, 0, 1, 1], [], []>} : vector<64x48xbf16>, vector<48x256xbf16>, vector<64x256xf32> -> vector<64x256xf32>
    %22 = arith.addf %16, %21 : vector<64x256xf32>
    %c0_18 = arith.constant 0 : index
    %c1_19 = arith.constant 1 : index
    %c0_20 = arith.constant 0 : index
    %c0_21 = arith.constant 0 : index
    %23 = vector.load %arg1[%c0_18, %c1_19, %c0_20, %c0_21] : memref<2x6x18x48xbf16, #tpu.memory_space<vmem>>, vector<1x4x18x48xbf16>
    %24 = vector.shape_cast %23 : vector<1x4x18x48xbf16> to vector<4x18x48xbf16>
    %25 = vector.extract_strided_slice %24 {offsets = [0, 0, 0], sizes = [4, 16, 48], strides = [1, 1, 1]} : vector<4x18x48xbf16> to vector<4x16x48xbf16>
    %26 = vector.shape_cast %25 : vector<4x16x48xbf16> to vector<64x48xbf16>
    %c1_22 = arith.constant 1 : index
    %c0_23 = arith.constant 0 : index
    %c0_24 = arith.constant 0 : index
    %c0_25 = arith.constant 0 : index
    %27 = vector.load %arg2[%c1_22, %c0_23, %c0_24, %c0_25] : memref<3x3x48x256xbf16, #tpu.memory_space<vmem>>, vector<1x1x48x256xbf16>
    %28 = vector.shape_cast %27 : vector<1x1x48x256xbf16> to vector<48x256xbf16>
    %cst_26 = arith.constant dense<0.000000e+00> : vector<64x256xf32>
    %29 = tpu.matmul %26, %28, %cst_26 {dimension_numbers = #tpu.dot_dimension_numbers<[1], [0], [0], [1], [0, 0, 1, 1], [], []>} : vector<64x48xbf16>, vector<48x256xbf16>, vector<64x256xf32> -> vector<64x256xf32>
    %30 = arith.addf %22, %29 : vector<64x256xf32>
    %31 = vector.extract_strided_slice %24 {offsets = [0, 1, 0], sizes = [4, 16, 48], strides = [1, 1, 1]} : vector<4x18x48xbf16> to vector<4x16x48xbf16>
    %32 = vector.shape_cast %31 : vector<4x16x48xbf16> to vector<64x48xbf16>
    %c1_27 = arith.constant 1 : index
    %c1_28 = arith.constant 1 : index
    %c0_29 = arith.constant 0 : index
    %c0_30 = arith.constant 0 : index
    %33 = vector.load %arg2[%c1_27, %c1_28, %c0_29, %c0_30] : memref<3x3x48x256xbf16, #tpu.memory_space<vmem>>, vector<1x1x48x256xbf16>
    %34 = vector.shape_cast %33 : vector<1x1x48x256xbf16> to vector<48x256xbf16>
    %cst_31 = arith.constant dense<0.000000e+00> : vector<64x256xf32>
    %35 = tpu.matmul %32, %34, %cst_31 {dimension_numbers = #tpu.dot_dimension_numbers<[1], [0], [0], [1], [0, 0, 1, 1], [], []>} : vector<64x48xbf16>, vector<48x256xbf16>, vector<64x256xf32> -> vector<64x256xf32>
    %36 = arith.addf %30, %35 : vector<64x256xf32>
    %37 = vector.extract_strided_slice %24 {offsets = [0, 2, 0], sizes = [4, 16, 48], strides = [1, 1, 1]} : vector<4x18x48xbf16> to vector<4x16x48xbf16>
    %38 = vector.shape_cast %37 : vector<4x16x48xbf16> to vector<64x48xbf16>
    %c1_32 = arith.constant 1 : index
    %c2_33 = arith.constant 2 : index
    %c0_34 = arith.constant 0 : index
    %c0_35 = arith.constant 0 : index
    %39 = vector.load %arg2[%c1_32, %c2_33, %c0_34, %c0_35] : memref<3x3x48x256xbf16, #tpu.memory_space<vmem>>, vector<1x1x48x256xbf16>
    %40 = vector.shape_cast %39 : vector<1x1x48x256xbf16> to vector<48x256xbf16>
    %cst_36 = arith.constant dense<0.000000e+00> : vector<64x256xf32>
    %41 = tpu.matmul %38, %40, %cst_36 {dimension_numbers = #tpu.dot_dimension_numbers<[1], [0], [0], [1], [0, 0, 1, 1], [], []>} : vector<64x48xbf16>, vector<48x256xbf16>, vector<64x256xf32> -> vector<64x256xf32>
    %42 = arith.addf %36, %41 : vector<64x256xf32>
    %c0_37 = arith.constant 0 : index
    %c2_38 = arith.constant 2 : index
    %c0_39 = arith.constant 0 : index
    %c0_40 = arith.constant 0 : index
    %43 = vector.load %arg1[%c0_37, %c2_38, %c0_39, %c0_40] : memref<2x6x18x48xbf16, #tpu.memory_space<vmem>>, vector<1x4x18x48xbf16>
    %44 = vector.shape_cast %43 : vector<1x4x18x48xbf16> to vector<4x18x48xbf16>
    %45 = vector.extract_strided_slice %44 {offsets = [0, 0, 0], sizes = [4, 16, 48], strides = [1, 1, 1]} : vector<4x18x48xbf16> to vector<4x16x48xbf16>
    %46 = vector.shape_cast %45 : vector<4x16x48xbf16> to vector<64x48xbf16>
    %c2_41 = arith.constant 2 : index
    %c0_42 = arith.constant 0 : index
    %c0_43 = arith.constant 0 : index
    %c0_44 = arith.constant 0 : index
    %47 = vector.load %arg2[%c2_41, %c0_42, %c0_43, %c0_44] : memref<3x3x48x256xbf16, #tpu.memory_space<vmem>>, vector<1x1x48x256xbf16>
    %48 = vector.shape_cast %47 : vector<1x1x48x256xbf16> to vector<48x256xbf16>
    %cst_45 = arith.constant dense<0.000000e+00> : vector<64x256xf32>
    %49 = tpu.matmul %46, %48, %cst_45 {dimension_numbers = #tpu.dot_dimension_numbers<[1], [0], [0], [1], [0, 0, 1, 1], [], []>} : vector<64x48xbf16>, vector<48x256xbf16>, vector<64x256xf32> -> vector<64x256xf32>
    %50 = arith.addf %42, %49 : vector<64x256xf32>
    %51 = vector.extract_strided_slice %44 {offsets = [0, 1, 0], sizes = [4, 16, 48], strides = [1, 1, 1]} : vector<4x18x48xbf16> to vector<4x16x48xbf16>
    %52 = vector.shape_cast %51 : vector<4x16x48xbf16> to vector<64x48xbf16>
    %c2_46 = arith.constant 2 : index
    %c1_47 = arith.constant 1 : index
    %c0_48 = arith.constant 0 : index
    %c0_49 = arith.constant 0 : index
    %53 = vector.load %arg2[%c2_46, %c1_47, %c0_48, %c0_49] : memref<3x3x48x256xbf16, #tpu.memory_space<vmem>>, vector<1x1x48x256xbf16>
    %54 = vector.shape_cast %53 : vector<1x1x48x256xbf16> to vector<48x256xbf16>
    %cst_50 = arith.constant dense<0.000000e+00> : vector<64x256xf32>
    %55 = tpu.matmul %52, %54, %cst_50 {dimension_numbers = #tpu.dot_dimension_numbers<[1], [0], [0], [1], [0, 0, 1, 1], [], []>} : vector<64x48xbf16>, vector<48x256xbf16>, vector<64x256xf32> -> vector<64x256xf32>
    %56 = arith.addf %50, %55 : vector<64x256xf32>
    %57 = vector.extract_strided_slice %44 {offsets = [0, 2, 0], sizes = [4, 16, 48], strides = [1, 1, 1]} : vector<4x18x48xbf16> to vector<4x16x48xbf16>
    %58 = vector.shape_cast %57 : vector<4x16x48xbf16> to vector<64x48xbf16>
    %c2_51 = arith.constant 2 : index
    %c2_52 = arith.constant 2 : index
    %c0_53 = arith.constant 0 : index
    %c0_54 = arith.constant 0 : index
    %59 = vector.load %arg2[%c2_51, %c2_52, %c0_53, %c0_54] : memref<3x3x48x256xbf16, #tpu.memory_space<vmem>>, vector<1x1x48x256xbf16>
    %60 = vector.shape_cast %59 : vector<1x1x48x256xbf16> to vector<48x256xbf16>
    %cst_55 = arith.constant dense<0.000000e+00> : vector<64x256xf32>
    %61 = tpu.matmul %58, %60, %cst_55 {dimension_numbers = #tpu.dot_dimension_numbers<[1], [0], [0], [1], [0, 0, 1, 1], [], []>} : vector<64x48xbf16>, vector<48x256xbf16>, vector<64x256xf32> -> vector<64x256xf32>
    %62 = arith.addf %56, %61 : vector<64x256xf32>
    %63 = vector.extract_strided_slice %62 {offsets = [0, 0], sizes = [64, 128], strides = [1, 1]} : vector<64x256xf32> to vector<64x128xf32>
    %64 = vector.extract_strided_slice %62 {offsets = [0, 128], sizes = [64, 128], strides = [1, 1]} : vector<64x256xf32> to vector<64x128xf32>
    %65 = arith.maximumf %63, %64 : vector<64x128xf32>
    %66 = vector.shape_cast %65 : vector<64x128xf32> to vector<4x8x2x128xf32>
    %cst_56 = arith.constant dense<0xFF800000> : vector<4x8x128xf32>
    %67 = vector.multi_reduction <maximumf>, %66, %cst_56 [2] : vector<4x8x2x128xf32> to vector<4x8x128xf32>
    %68 = vector.broadcast %1 : vector<1x1x128xf32> to vector<4x8x128xf32>
    %69 = arith.addf %67, %68 : vector<4x8x128xf32>
    %cst_57 = arith.constant 0.000000e+00 : f32
    %70 = vector.broadcast %cst_57 : f32 to vector<4x8x128xf32>
    %71 = arith.maximumf %69, %70 : vector<4x8x128xf32>
    %c0_58 = arith.constant 0 : index
    %c0_59 = arith.constant 0 : index
    %c0_60 = arith.constant 0 : index
    %c0_61 = arith.constant 0 : index
    %72 = vector.load %arg4[%c0_58, %c0_59, %c0_60, %c0_61] : memref<2x4x8x128xf32, #tpu.memory_space<vmem>>, vector<1x4x8x128xf32>
    %73 = vector.shape_cast %72 : vector<1x4x8x128xf32> to vector<4x8x128xf32>
    %74 = vector.shape_cast %71 : vector<4x8x128xf32> to vector<1x4x8x128xf32>
    tpu.vector_store %arg4[%c0_58, %c0_59, %c0_60, %c0_61], %74 {strides = array<i32>} : memref<2x4x8x128xf32, #tpu.memory_space<vmem>>, vector<1x4x8x128xf32>,
    %cst_62 = arith.constant 0.000000e+00 : f32
    %75 = vector.broadcast %cst_62 : f32 to vector<64x256xf32>
    %c1_63 = arith.constant 1 : index
    %c0_64 = arith.constant 0 : index
    %c0_65 = arith.constant 0 : index
    %c0_66 = arith.constant 0 : index
    %76 = vector.load %arg1[%c1_63, %c0_64, %c0_65, %c0_66] : memref<2x6x18x48xbf16, #tpu.memory_space<vmem>>, vector<1x4x18x48xbf16>
    %77 = vector.shape_cast %76 : vector<1x4x18x48xbf16> to vector<4x18x48xbf16>
    %78 = vector.extract_strided_slice %77 {offsets = [0, 0, 0], sizes = [4, 16, 48], strides = [1, 1, 1]} : vector<4x18x48xbf16> to vector<4x16x48xbf16>
    %79 = vector.shape_cast %78 : vector<4x16x48xbf16> to vector<64x48xbf16>
    %c0_67 = arith.constant 0 : index
    %c0_68 = arith.constant 0 : index
    %c0_69 = arith.constant 0 : index
    %c0_70 = arith.constant 0 : index
    %80 = vector.load %arg2[%c0_67, %c0_68, %c0_69, %c0_70] : memref<3x3x48x256xbf16, #tpu.memory_space<vmem>>, vector<1x1x48x256xbf16>
    %81 = vector.shape_cast %80 : vector<1x1x48x256xbf16> to vector<48x256xbf16>
    %cst_71 = arith.constant dense<0.000000e+00> : vector<64x256xf32>
    %82 = tpu.matmul %79, %81, %cst_71 {dimension_numbers = #tpu.dot_dimension_numbers<[1], [0], [0], [1], [0, 0, 1, 1], [], []>} : vector<64x48xbf16>, vector<48x256xbf16>, vector<64x256xf32> -> vector<64x256xf32>
    %83 = arith.addf %75, %82 : vector<64x256xf32>
    %84 = vector.extract_strided_slice %77 {offsets = [0, 1, 0], sizes = [4, 16, 48], strides = [1, 1, 1]} : vector<4x18x48xbf16> to vector<4x16x48xbf16>
    %85 = vector.shape_cast %84 : vector<4x16x48xbf16> to vector<64x48xbf16>
    %c0_72 = arith.constant 0 : index
    %c1_73 = arith.constant 1 : index
    %c0_74 = arith.constant 0 : index
    %c0_75 = arith.constant 0 : index
    %86 = vector.load %arg2[%c0_72, %c1_73, %c0_74, %c0_75] : memref<3x3x48x256xbf16, #tpu.memory_space<vmem>>, vector<1x1x48x256xbf16>
    %87 = vector.shape_cast %86 : vector<1x1x48x256xbf16> to vector<48x256xbf16>
    %cst_76 = arith.constant dense<0.000000e+00> : vector<64x256xf32>
    %88 = tpu.matmul %85, %87, %cst_76 {dimension_numbers = #tpu.dot_dimension_numbers<[1], [0], [0], [1], [0, 0, 1, 1], [], []>} : vector<64x48xbf16>, vector<48x256xbf16>, vector<64x256xf32> -> vector<64x256xf32>
    %89 = arith.addf %83, %88 : vector<64x256xf32>
    %90 = vector.extract_strided_slice %77 {offsets = [0, 2, 0], sizes = [4, 16, 48], strides = [1, 1, 1]} : vector<4x18x48xbf16> to vector<4x16x48xbf16>
    %91 = vector.shape_cast %90 : vector<4x16x48xbf16> to vector<64x48xbf16>
    %c0_77 = arith.constant 0 : index
    %c2_78 = arith.constant 2 : index
    %c0_79 = arith.constant 0 : index
    %c0_80 = arith.constant 0 : index
    %92 = vector.load %arg2[%c0_77, %c2_78, %c0_79, %c0_80] : memref<3x3x48x256xbf16, #tpu.memory_space<vmem>>, vector<1x1x48x256xbf16>
    %93 = vector.shape_cast %92 : vector<1x1x48x256xbf16> to vector<48x256xbf16>
    %cst_81 = arith.constant dense<0.000000e+00> : vector<64x256xf32>
    %94 = tpu.matmul %91, %93, %cst_81 {dimension_numbers = #tpu.dot_dimension_numbers<[1], [0], [0], [1], [0, 0, 1, 1], [], []>} : vector<64x48xbf16>, vector<48x256xbf16>, vector<64x256xf32> -> vector<64x256xf32>
    %95 = arith.addf %89, %94 : vector<64x256xf32>
    %c1_82 = arith.constant 1 : index
    %c1_83 = arith.constant 1 : index
    %c0_84 = arith.constant 0 : index
    %c0_85 = arith.constant 0 : index
    %96 = vector.load %arg1[%c1_82, %c1_83, %c0_84, %c0_85] : memref<2x6x18x48xbf16, #tpu.memory_space<vmem>>, vector<1x4x18x48xbf16>
    %97 = vector.shape_cast %96 : vector<1x4x18x48xbf16> to vector<4x18x48xbf16>
    %98 = vector.extract_strided_slice %97 {offsets = [0, 0, 0], sizes = [4, 16, 48], strides = [1, 1, 1]} : vector<4x18x48xbf16> to vector<4x16x48xbf16>
    %99 = vector.shape_cast %98 : vector<4x16x48xbf16> to vector<64x48xbf16>
    %c1_86 = arith.constant 1 : index
    %c0_87 = arith.constant 0 : index
    %c0_88 = arith.constant 0 : index
    %c0_89 = arith.constant 0 : index
    %100 = vector.load %arg2[%c1_86, %c0_87, %c0_88, %c0_89] : memref<3x3x48x256xbf16, #tpu.memory_space<vmem>>, vector<1x1x48x256xbf16>
    %101 = vector.shape_cast %100 : vector<1x1x48x256xbf16> to vector<48x256xbf16>
    %cst_90 = arith.constant dense<0.000000e+00> : vector<64x256xf32>
    %102 = tpu.matmul %99, %101, %cst_90 {dimension_numbers = #tpu.dot_dimension_numbers<[1], [0], [0], [1], [0, 0, 1, 1], [], []>} : vector<64x48xbf16>, vector<48x256xbf16>, vector<64x256xf32> -> vector<64x256xf32>
    %103 = arith.addf %95, %102 : vector<64x256xf32>
    %104 = vector.extract_strided_slice %97 {offsets = [0, 1, 0], sizes = [4, 16, 48], strides = [1, 1, 1]} : vector<4x18x48xbf16> to vector<4x16x48xbf16>
    %105 = vector.shape_cast %104 : vector<4x16x48xbf16> to vector<64x48xbf16>
    %c1_91 = arith.constant 1 : index
    %c1_92 = arith.constant 1 : index
    %c0_93 = arith.constant 0 : index
    %c0_94 = arith.constant 0 : index
    %106 = vector.load %arg2[%c1_91, %c1_92, %c0_93, %c0_94] : memref<3x3x48x256xbf16, #tpu.memory_space<vmem>>, vector<1x1x48x256xbf16>
    %107 = vector.shape_cast %106 : vector<1x1x48x256xbf16> to vector<48x256xbf16>
    %cst_95 = arith.constant dense<0.000000e+00> : vector<64x256xf32>
    %108 = tpu.matmul %105, %107, %cst_95 {dimension_numbers = #tpu.dot_dimension_numbers<[1], [0], [0], [1], [0, 0, 1, 1], [], []>} : vector<64x48xbf16>, vector<48x256xbf16>, vector<64x256xf32> -> vector<64x256xf32>
    %109 = arith.addf %103, %108 : vector<64x256xf32>
    %110 = vector.extract_strided_slice %97 {offsets = [0, 2, 0], sizes = [4, 16, 48], strides = [1, 1, 1]} : vector<4x18x48xbf16> to vector<4x16x48xbf16>
    %111 = vector.shape_cast %110 : vector<4x16x48xbf16> to vector<64x48xbf16>
    %c1_96 = arith.constant 1 : index
    %c2_97 = arith.constant 2 : index
    %c0_98 = arith.constant 0 : index
    %c0_99 = arith.constant 0 : index
    %112 = vector.load %arg2[%c1_96, %c2_97, %c0_98, %c0_99] : memref<3x3x48x256xbf16, #tpu.memory_space<vmem>>, vector<1x1x48x256xbf16>
    %113 = vector.shape_cast %112 : vector<1x1x48x256xbf16> to vector<48x256xbf16>
    %cst_100 = arith.constant dense<0.000000e+00> : vector<64x256xf32>
    %114 = tpu.matmul %111, %113, %cst_100 {dimension_numbers = #tpu.dot_dimension_numbers<[1], [0], [0], [1], [0, 0, 1, 1], [], []>} : vector<64x48xbf16>, vector<48x256xbf16>, vector<64x256xf32> -> vector<64x256xf32>
    %115 = arith.addf %109, %114 : vector<64x256xf32>
    %c1_101 = arith.constant 1 : index
    %c2_102 = arith.constant 2 : index
    %c0_103 = arith.constant 0 : index
    %c0_104 = arith.constant 0 : index
    %116 = vector.load %arg1[%c1_101, %c2_102, %c0_103, %c0_104] : memref<2x6x18x48xbf16, #tpu.memory_space<vmem>>, vector<1x4x18x48xbf16>
    %117 = vector.shape_cast %116 : vector<1x4x18x48xbf16> to vector<4x18x48xbf16>
    %118 = vector.extract_strided_slice %117 {offsets = [0, 0, 0], sizes = [4, 16, 48], strides = [1, 1, 1]} : vector<4x18x48xbf16> to vector<4x16x48xbf16>
    %119 = vector.shape_cast %118 : vector<4x16x48xbf16> to vector<64x48xbf16>
    %c2_105 = arith.constant 2 : index
    %c0_106 = arith.constant 0 : index
    %c0_107 = arith.constant 0 : index
    %c0_108 = arith.constant 0 : index
    %120 = vector.load %arg2[%c2_105, %c0_106, %c0_107, %c0_108] : memref<3x3x48x256xbf16, #tpu.memory_space<vmem>>, vector<1x1x48x256xbf16>
    %121 = vector.shape_cast %120 : vector<1x1x48x256xbf16> to vector<48x256xbf16>
    %cst_109 = arith.constant dense<0.000000e+00> : vector<64x256xf32>
    %122 = tpu.matmul %119, %121, %cst_109 {dimension_numbers = #tpu.dot_dimension_numbers<[1], [0], [0], [1], [0, 0, 1, 1], [], []>} : vector<64x48xbf16>, vector<48x256xbf16>, vector<64x256xf32> -> vector<64x256xf32>
    %123 = arith.addf %115, %122 : vector<64x256xf32>
    %124 = vector.extract_strided_slice %117 {offsets = [0, 1, 0], sizes = [4, 16, 48], strides = [1, 1, 1]} : vector<4x18x48xbf16> to vector<4x16x48xbf16>
    %125 = vector.shape_cast %124 : vector<4x16x48xbf16> to vector<64x48xbf16>
    %c2_110 = arith.constant 2 : index
    %c1_111 = arith.constant 1 : index
    %c0_112 = arith.constant 0 : index
    %c0_113 = arith.constant 0 : index
    %126 = vector.load %arg2[%c2_110, %c1_111, %c0_112, %c0_113] : memref<3x3x48x256xbf16, #tpu.memory_space<vmem>>, vector<1x1x48x256xbf16>
    %127 = vector.shape_cast %126 : vector<1x1x48x256xbf16> to vector<48x256xbf16>
    %cst_114 = arith.constant dense<0.000000e+00> : vector<64x256xf32>
    %128 = tpu.matmul %125, %127, %cst_114 {dimension_numbers = #tpu.dot_dimension_numbers<[1], [0], [0], [1], [0, 0, 1, 1], [], []>} : vector<64x48xbf16>, vector<48x256xbf16>, vector<64x256xf32> -> vector<64x256xf32>
    %129 = arith.addf %123, %128 : vector<64x256xf32>
    %130 = vector.extract_strided_slice %117 {offsets = [0, 2, 0], sizes = [4, 16, 48], strides = [1, 1, 1]} : vector<4x18x48xbf16> to vector<4x16x48xbf16>
    %131 = vector.shape_cast %130 : vector<4x16x48xbf16> to vector<64x48xbf16>
    %c2_115 = arith.constant 2 : index
    %c2_116 = arith.constant 2 : index
    %c0_117 = arith.constant 0 : index
    %c0_118 = arith.constant 0 : index
    %132 = vector.load %arg2[%c2_115, %c2_116, %c0_117, %c0_118] : memref<3x3x48x256xbf16, #tpu.memory_space<vmem>>, vector<1x1x48x256xbf16>
    %133 = vector.shape_cast %132 : vector<1x1x48x256xbf16> to vector<48x256xbf16>
    %cst_119 = arith.constant dense<0.000000e+00> : vector<64x256xf32>
    %134 = tpu.matmul %131, %133, %cst_119 {dimension_numbers = #tpu.dot_dimension_numbers<[1], [0], [0], [1], [0, 0, 1, 1], [], []>} : vector<64x48xbf16>, vector<48x256xbf16>, vector<64x256xf32> -> vector<64x256xf32>
    %135 = arith.addf %129, %134 : vector<64x256xf32>
    %136 = vector.extract_strided_slice %135 {offsets = [0, 0], sizes = [64, 128], strides = [1, 1]} : vector<64x256xf32> to vector<64x128xf32>
    %137 = vector.extract_strided_slice %135 {offsets = [0, 128], sizes = [64, 128], strides = [1, 1]} : vector<64x256xf32> to vector<64x128xf32>
    %138 = arith.maximumf %136, %137 : vector<64x128xf32>
    %139 = vector.shape_cast %138 : vector<64x128xf32> to vector<4x8x2x128xf32>
    %cst_120 = arith.constant dense<0xFF800000> : vector<4x8x128xf32>
    %140 = vector.multi_reduction <maximumf>, %139, %cst_120 [2] : vector<4x8x2x128xf32> to vector<4x8x128xf32>
    %141 = vector.broadcast %1 : vector<1x1x128xf32> to vector<4x8x128xf32>
    %142 = arith.addf %140, %141 : vector<4x8x128xf32>
    %cst_121 = arith.constant 0.000000e+00 : f32
    %143 = vector.broadcast %cst_121 : f32 to vector<4x8x128xf32>
    %144 = arith.maximumf %142, %143 : vector<4x8x128xf32>
    %c1_122 = arith.constant 1 : index
    %c0_123 = arith.constant 0 : index
    %c0_124 = arith.constant 0 : index
    %c0_125 = arith.constant 0 : index
    %145 = vector.load %arg4[%c1_122, %c0_123, %c0_124, %c0_125] : memref<2x4x8x128xf32, #tpu.memory_space<vmem>>, vector<1x4x8x128xf32>
    %146 = vector.shape_cast %145 : vector<1x4x8x128xf32> to vector<4x8x128xf32>
    %147 = vector.shape_cast %144 : vector<4x8x128xf32> to vector<1x4x8x128xf32>
    tpu.vector_store %arg4[%c1_122, %c0_123, %c0_124, %c0_125], %147 {strides = array<i32>} : memref<2x4x8x128xf32, #tpu.memory_space<vmem>>, vector<1x4x8x128xf32>,
    return
  }
  func.func @transform_0(%arg0: i32) -> (i32, i32, i32, i32) {
    %c0_i32 = arith.constant 0 : i32
    %c0_i32_0 = arith.constant 0 : i32
    %c0_i32_1 = arith.constant 0 : i32
    %c0_i32_2 = arith.constant 0 : i32
    return %arg0, %c0_i32, %c0_i32_0, %c0_i32_1 : i32, i32, i32, i32
  }
  func.func @transform_1(%arg0: i32) -> (i32, i32, i32, i32) {
    %c0_i32 = arith.constant 0 : i32
    %c0_i32_0 = arith.constant 0 : i32
    %c0_i32_1 = arith.constant 0 : i32
    %c0_i32_2 = arith.constant 0 : i32
    %c0_i32_3 = arith.constant 0 : i32
    return %c0_i32, %c0_i32_0, %c0_i32_1, %c0_i32_2 : i32, i32, i32, i32
  }
  func.func @transform_2(%arg0: i32) -> (i32, i32) {
    %c0_i32 = arith.constant 0 : i32
    %c0_i32_0 = arith.constant 0 : i32
    %c0_i32_1 = arith.constant 0 : i32
    return %c0_i32, %c0_i32_0 : i32, i32
  }
  func.func @transform_3(%arg0: i32) -> (i32, i32, i32, i32) {
    %c0_i32 = arith.constant 0 : i32
    %c0_i32_0 = arith.constant 0 : i32
    %c0_i32_1 = arith.constant 0 : i32
    %c0_i32_2 = arith.constant 0 : i32
    return %arg0, %c0_i32, %c0_i32_0, %c0_i32_1 : i32, i32, i32, i32
  }
}

</mosaic_0001>

<bundles_post_ra>
// kernel: tpu_custom_call.1
= control target key start
LH: loop header
LB: loop body
LE: loop exit
PB: predicated region body
PF: predicated region fallthrough
CT: control target
= control target key end

     0   :  { %8 = vsyncpa [#allocation3], 0  ;;  %s7153_s0 = inlined_call_operand.vmem [shape: bf16[2,6,18,48], index: 0, kind: input, shape index: {}]   ;;  %s7154_s1 = inlined_call_operand.hbm [shape: bf16[3,3,48,256], index: 1, kind: input, shape index: {}]   ;;  %s7155_s2 = inlined_call_operand.vmem [shape: f32[1,128], index: 2, kind: input, shape index: {}]   ;;  %s7156_s3 = inlined_call_operand.hbm [shape: f32[2,4,8,128], index: 3, kind: output, shape index: {}]  }
   0x1   :  { %9 = vsyncpa [#allocation4], 0  ;;  %s5296_s12 = smov [#allocation2]  }
   0x2   :  { %s17_s13 = sshll.u32 %s5296_s12, 4  ;;  %s18_s13 = int_to_ptr.vmem [resolvable:$true] %s17_s13 }
   0x3   :  { %s5260_s14 = scalar_lea.vmem %s18_s13, 6912  ;;  %p5265_p1 = scmp.lt.s32.totalorder %s18_s13, %s18_s13 }
   0x4   :  { %p5261_p0 = scmp.ne.s32.totalorder %s18_s13, %s5260_s14  ;;  %p5266_p2 = scmp.lt.s32.totalorder %s5260_s14, %s5260_s14 }
   0x6   :  { %p5267_p3 = por %p5266_p2, %p5265_p1 }
   0x8   :  { %p5268_p4 = pnand %p5267_p3, %p5261_p0 }
   0xa   :  { %5271 = shalt.err (!%p5268_p4)
}
   0xb   :  { %s5297_s15 = smov 128   ;;  %s5298_s16 = smov 8  }
   0xc   :  { %23 = dma.hbm_to_vmem [thread:$0]  %s7154_s1, 6912, %s18_s13, [#allocation3], %s5297_s15, %s5297_s15, %s5298_s16  }
   0xd   :  { %5292 = dma.done.wait [#allocation3], 6912  }
   0xe   :  { %5293 = vsyncadd [#allocation3], 4294960384  ;;  %v5299_v0 = vmov 0   ;;  %v5330_v1 = vld [vmem:[#allocation2 + $0x54] ss:$8 sps:$4 sm:$0xff]   ;;  %vm197_vm2 = vcmask 392192  }
   0xf   :  { %242 = vmatprep.mubr.bf16.mxu0 %v5299_v0  ;;  %377 = vmatprep.mubr.bf16.mxu1 %v5299_v0  ;;  %v5070_v2 = vld [vmem:[#allocation2 + $0x24] ss:$8 sps:$4 sm:$0xff]   ;;  %v5072_v3 = vld [vmem:[#allocation2 + $0x50] ss:$8 sps:$4 sm:$0xff]   ;;  %v5073_v4 = vld [vmem:[#allocation2 + $0x20] ss:$8 sps:$4 sm:$0xff]  }
  0x10   :  { %220 = vmatprep.subr.bf16.mxu0 %v5330_v1  ;;  %355 = vmatprep.subr.bf16.mxu1 %v5070_v2  ;;  %v5074_v5 = vld [vmem:[#allocation2 + $0x44] ss:$8 sps:$4 sm:$0xff]   ;;  %v5076_v6 = vld [vmem:[#allocation2 + $0x14] ss:$8 sps:$4 sm:$0xff]   ;;  %v5078_v7 = vld [vmem:[#allocation2 + $0x40] ss:$8 sps:$4 sm:$0xff]  }
  0x11   :  { %221 = vmatpush1.bf16.msra.mxu0 %v5072_v3  ;;  %356 = vmatpush1.bf16.msra.mxu1 %v5073_v4  ;;  %v5079_v8 = vld [vmem:[#allocation2 + $0x10] ss:$8 sps:$4 sm:$0xff]   ;;  %v5080_v9 = vld [vmem:[#allocation2 + $0x34] ss:$8 sps:$4 sm:$0xff]   ;;  %vm49_vm0 = vsmask.f32 3328 }
  0x12   :  { %222 = vmatprep.subr.bf16.mxu0 %v5074_v5  ;;  %357 = vmatprep.subr.bf16.mxu1 %v5076_v6  ;;  %v5082_v10 = vld [vmem:[#allocation2 + $0x4] ss:$8 sps:$4 sm:$0xff]   ;;  %v5084_v11 = vld [vmem:[#allocation2 + $0x30] ss:$8 sps:$4 sm:$0xff]   ;;  %v5085_v12 = vld [vmem:[#allocation2] ss:$8 sps:$4 sm:$0xff]  }
  0x13   :  { %v5336_v13 = vld [vmem:[%s7153_s0] sm:$0xf]  ;;  %v5341_v14 = vld [vmem:[%s7153_s0 + $0x4] sm:$0xf]  ;;  %v5346_v15 = vld [vmem:[%s7153_s0 + $0x8] sm:$0x1] }
  0x14   :  { %v53_v16 = vshrl.u32 %v5336_v13, 16  ;;  %v56_v17 = vshll.u32 %v5336_v13, 16  ;;  %v62_v18 = vshll.u32 %v5341_v14, 16  ;;  %v66_v19 = vshrl.u32 %v5341_v14, 16  ;;  %v5089_v26 = vld [vmem:[#allocation2 + $0x84] ss:$8 sps:$4 sm:$0xff]  }
  0x15   :  { %223 = vmatpush1.bf16.msra.mxu0 %v5078_v7  ;;  %358 = vmatpush1.bf16.msra.mxu1 %v5079_v8  ;;  %vm50_vm1 = vsmask.f32 7440  ;;  %v72_v20 = vshll.u32 %v5346_v15, 16  ;;  %v4739_v21 = vcombine.low %v5336_v13, %v5341_v14  ;;  %v5090_v28 = vld [vmem:[#allocation2 + $0xb0] ss:$8 sps:$4 sm:$0xff]   ;;  %vm422_vm4 = vcmask 1042432  }
  0x16   :  { %224 = vmatprep.subr.bf16.mxu0 %v5080_v9  ;;  %359 = vmatprep.subr.bf16.mxu1 %v5082_v10  ;;  %v55_v22 = vrot.slane %v53_v16, 4  ;;  %v58_v23 = vrot.slane %v56_v17, 5  ;;  %v64_v24 = vrot.slane %v62_v18, 5  ;;  %v68_v25 = vrot.slane %v66_v19, 4  ;;  %v5092_v29 = vld [vmem:[#allocation2 + $0xb4] ss:$8 sps:$4 sm:$0xff]   ;;  %vm5372_vm3 = vmor %vm49_vm0, %vm50_vm1 }
  0x17   :  { %v74_v27 = vrot.slane %v72_v20, 5  ;;  %v5358_v32 = vld [vmem:[%s7153_s0 + $0xc] sm:$0xf]  ;;  %v5363_v33 = vld [vmem:[%s7153_s0 + $0x10] sm:$0xf]  ;;  %vm423_vm5 = vcmask 1046532  }
  0x18   :  { %v59_v30 = vor.u32 %v58_v23, %v55_v22  ;;  %v69_v31 = vor.u32 %v68_v25, %v64_v24  ;;  %v5368_v34 = vld [vmem:[%s7153_s0 + $0x14] sm:$0x1]  ;;  %v77_v36 = vshrl.u32 %v5358_v32, 16  ;;  %v80_v37 = vshll.u32 %v5358_v32, 16  ;;  %v5087_v42 = vld [vmem:[#allocation2 + $0x80] ss:$8 sps:$4 sm:$0xff]   ;;  %vm5470_vm6 = vmor %vm422_vm4, %vm423_vm5 }
  0x19   :  { %225 = vmatpush1.bf16.msra.mxu0 %v5084_v11  ;;  %360 = vmatpush1.bf16.msra.mxu1 %v5085_v12  ;;  %v86_v38 = vshll.u32 %v5363_v33, 16  ;;  %v90_v39 = vshrl.u32 %v5363_v33, 16  ;;  %v96_v43 = vshll.u32 %v5368_v34, 16  ;;  %v5096_v48 = vld [vmem:[#allocation2 + $0x74] ss:$8 sps:$4 sm:$0xff]   ;;  %v4740_v57 = vcombine.low %v5358_v32, %v5363_v33 }
  0x1a   :  { %524 = vmatprep.subr.bf16.mxu0 %v5089_v26  ;;  %695 = vmatprep.subr.bf16.mxu1 %v5092_v29  ;;  %v60_v40 = vrot.slane %v59_v30, 4  ;;  %v70_v41 = vrot.slane %v69_v31, 4  ;;  %v79_v44 = vrot.slane %v77_v36, 4  ;;  %v82_v45 = vrot.slane %v80_v37, 5  ;;  %v5097_v52 = vld [vmem:[#allocation2 + $0xa0] ss:$8 sps:$4 sm:$0xff]  }
  0x1b   :  { %v88_v46 = vrot.slane %v86_v38, 5  ;;  %v92_v47 = vrot.slane %v90_v39, 4  ;;  %v98_v51 = vrot.slane %v96_v43, 5  ;;  %v5099_v53 = vld [vmem:[#allocation2 + $0xa4] ss:$8 sps:$4 sm:$0xff]   ;;  %vm1985_vm7 = vcmask 1041408  }
  0x1c   :  { %4749 = vmatmul.mubr.msk.bf16.vlgmr.msra.gmra.mxu1 %vm197_vm2, %v4739_v21  ;;  %v65_v49 = vsel %vm5372_vm3, %v60_v40, %v64_v24  ;;  %v75_v50 = vsel %vm5372_vm3, %v70_v41, %v74_v27  ;;  %v83_v55 = vor.u32 %v82_v45, %v79_v44  ;;  %v5392_v58 = vld [vmem:[%s7153_s0 + $0x18] sm:$0xf]  ;;  %v5397_v59 = vld [vmem:[%s7153_s0 + $0x1c] sm:$0xf]  ;;  %v5402_v60 = vld [vmem:[%s7153_s0 + $0x20] sm:$0x1] }
  0x1d   :  { %696 = vmatpush1.bf16.msra.mxu1 %v5090_v28  ;;  %387 = vmatprep.mubr.bf16.mxu1 %v5299_v0  ;;  %v4725_v54 = vcombine.low %v65_v49, %v75_v50  ;;  %v93_v56 = vor.u32 %v92_v47, %v88_v46  ;;  %v101_v61 = vshrl.u32 %v5392_v58, 16  ;;  %v104_v62 = vshll.u32 %v5392_v58, 16  ;;  %v5094_v5 = vld [vmem:[#allocation2 + $0x70] ss:$8 sps:$4 sm:$0xff]   ;;  %v5103_v11 = vld [vmem:[#allocation2 + $0x64] ss:$8 sps:$4 sm:$0xff]  }
  0x1e   :  { %697 = vmatprep.subr.bf16.mxu1 %v5099_v53  ;;  %v110_v63 = vshll.u32 %v5397_v59, 16  ;;  %v114_v2 = vshrl.u32 %v5397_v59, 16  ;;  %v84_v3 = vrot.slane %v83_v55, 4  ;;  %v120_v6 = vshll.u32 %v5402_v60, 16  ;;  %v5418_v17 = vld [vmem:[%s7153_s0 + $0x24] sm:$0xf] }
  0x1f   :  { %4735 = vmatmul.mubr.msk.bf16.vlgmr.msra.gmra.mxu0 %vm197_vm2, %v4725_v54  ;;  %v94_v4 = vrot.slane %v93_v56, 4  ;;  %v103_v7 = vrot.slane %v101_v61, 4  ;;  %v106_v8 = vrot.slane %v104_v62, 5  ;;  %v5423_v18 = vld [vmem:[%s7153_s0 + $0x28] sm:$0xf]  ;;  %v125_v22 = vshrl.u32 %v5418_v17, 16 }
  0x20   :  { %525 = vmatpush1.bf16.msra.mxu0 %v5087_v42  ;;  %252 = vmatprep.mubr.bf16.mxu0 %v5299_v0  ;;  %v112_v9 = vrot.slane %v110_v63, 5  ;;  %v116_v10 = vrot.slane %v114_v2, 4  ;;  %v89_v12 = vsel %vm5372_vm3, %v84_v3, %v88_v46  ;;  %v5101_v21 = vld [vmem:[#allocation2 + $0x60] ss:$8 sps:$4 sm:$0xff]   ;;  %v5105_v23 = vld [vmem:[#allocation2 + $0x90] ss:$8 sps:$4 sm:$0xff]   ;;  %v4741_v41 = vcombine.low %v5392_v58, %v5397_v59 }
  0x21   :  { %698 = vmatpush1.bf16.msra.mxu1 %v5097_v52  ;;  %v99_v16 = vsel %vm5372_vm3, %v94_v4, %v98_v51  ;;  %526 = vmatprep.subr.bf16.mxu0 %v5096_v48  ;;  %v107_v19 = vor.u32 %v106_v8, %v103_v7  ;;  %v128_v25 = vshll.u32 %v5418_v17, 16  ;;  %v134_v26 = vshll.u32 %v5423_v18, 16  ;;  %v5107_v28 = vld [vmem:[#allocation2 + $0x94] ss:$8 sps:$4 sm:$0xff]   ;;  %v5434_v37 = vld [vmem:[%s7153_s0 + $0x2c] sm:$0x1] }
  0x22   :  { %v117_v20 = vor.u32 %v116_v10, %v112_v9  ;;  %v4726_v24 = vcombine.low %v89_v12, %v99_v16  ;;  %v138_v27 = vshrl.u32 %v5423_v18, 16  ;;  %v122_v31 = vrot.slane %v120_v6, 5  ;;  %699 = vmatprep.subr.bf16.mxu1 %v5107_v28  ;;  %v5111_v42 = vld [vmem:[#allocation2 + $0xe4] ss:$8 sps:$4 sm:$0xff]   ;;  %v5114_v48 = vld [vmem:[#allocation2 + $0x114] ss:$8 sps:$4 sm:$0xff]  }
  0x23   :  { %v108_v29 = vrot.slane %v107_v19, 4  ;;  %v127_v36 = vrot.slane %v125_v22, 4  ;;  %v130_v38 = vrot.slane %v128_v25, 5  ;;  %v136_v39 = vrot.slane %v134_v26, 5  ;;  %v5121_v7 = vld [vmem:[#allocation2 + $0x104] ss:$8 sps:$4 sm:$0xff]  }
  0x24   :  { %4750 = vmatmul.mubr.msk.bf16.gmra.mxu1 %vm197_vm2, %v4740_v57  ;;  %527 = vmatpush1.bf16.msra.mxu0 %v5094_v5  ;;  %v118_v30 = vrot.slane %v117_v20, 4  ;;  %v140_v40 = vrot.slane %v138_v27, 4  ;;  %v144_v47 = vshll.u32 %v5434_v37, 16  ;;  %v4742_v53 = vcombine.low %v5418_v17, %v5423_v18  ;;  %v5460_v57 = vld [vmem:[%s7153_s0 + $0xc] sm:$0xf] }
  0x25   :  { %397 = vmatprep.mubr.bf16.mxu1 %v5299_v0  ;;  %528 = vmatprep.subr.bf16.mxu0 %v5103_v11  ;;  %v113_v43 = vsel %vm5372_vm3, %v108_v29, %v112_v9  ;;  %v131_v45 = vor.u32 %v130_v38, %v127_v36  ;;  %v427_v54 = vrot.slane %v5341_v14, 5  ;;  %v5466_v14 = vld [vmem:[%s7153_s0 + $0x10] sm:$0xf]  ;;  %v430_v62 = vrot.slane %v5346_v15, 5  ;;  %v5487_v8 = vld [vmem:[%s7153_s0 + $0x18] sm:$0xf] }
  0x26   :  { %700 = vmatpush1.bf16.msra.mxu1 %v5105_v23  ;;  %v123_v44 = vsel %vm5372_vm3, %v118_v30, %v122_v31  ;;  %v141_v46 = vor.u32 %v140_v40, %v136_v39  ;;  %v146_v52 = vrot.slane %v144_v47, 5  ;;  %v4753_v63 = vrot.slane %v5336_v13, 9  ;;  %v5112_v5 = vld [vmem:[#allocation2 + $0x110] ss:$8 sps:$4 sm:$0xff]   ;;  %v5492_v9 = vld [vmem:[%s7153_s0 + $0x1c] sm:$0xf] }
  0x27   :  { %4736 = vmatmul.mubr.msk.bf16.gmra.mxu0 %vm197_vm2, %v4726_v24  ;;  %1123 = vmatprep.subr.bf16.mxu1 %v5114_v48  ;;  %v4727_v49 = vcombine.low %v113_v43, %v123_v44  ;;  %v132_v50 = vrot.slane %v131_v45, 4  ;;  %v429_v2 = vrot.slane %v427_v54, 4  ;;  %v4783_v4 = vcombine.low %v5460_v57, %v5466_v14  ;;  %v5119_v10 = vld [vmem:[#allocation2 + $0x100] ss:$8 sps:$4 sm:$0xff]   ;;  %v5118_v20 = vld [vmem:[#allocation2 + $0xd4] ss:$8 sps:$4 sm:$0xff]  }
  0x28   :  { %262 = vmatprep.mubr.bf16.mxu0 %v5299_v0  ;;  %529 = vmatpush1.bf16.msra.mxu0 %v5101_v21  ;;  %v142_v51 = vrot.slane %v141_v46, 4  ;;  %v428_v6 = vsel %vm5470_vm6, %v4753_v63, %v427_v54  ;;  %v434_v13 = vrot.slane %v5363_v33, 5  ;;  %v5109_v12 = vld [vmem:[#allocation2 + $0xe0] ss:$8 sps:$4 sm:$0xff]   ;;  %v4754_v33 = vrot.slane %v5358_v32, 9 }
  0x29   :  { %941 = vmatprep.subr.bf16.mxu0 %v5111_v42  ;;  %v137_v55 = vsel %vm5372_vm3, %v132_v50, %v136_v39  ;;  %v431_v15 = vsel %vm5470_vm6, %v429_v2, %v430_v62  ;;  %v437_v19 = vrot.slane %v5368_v34, 5  ;;  %v5129_v21 = vld [vmem:[#allocation2 + $0xf4] ss:$8 sps:$4 sm:$0xff]   ;;  %v4784_v22 = vcombine.low %v5487_v8, %v5492_v9  ;;  %v5127_v23 = vld [vmem:[#allocation2 + $0xf0] ss:$8 sps:$4 sm:$0xff]  }
  0x2a   :  { %v147_v56 = vsel %vm5372_vm3, %v142_v51, %v146_v52  ;;  %v4757_v11 = vcombine.low %v428_v6, %v431_v15  ;;  %v436_v16 = vrot.slane %v434_v13, 4  ;;  %v435_v24 = vsel %vm5470_vm6, %v4754_v33, %v434_v13  ;;  %v5116_v34 = vld [vmem:[#allocation2 + $0xd0] ss:$8 sps:$4 sm:$0xff]   ;;  %v5135_v26 = vld [vmem:[#allocation2 + $0x174] ss:$8 sps:$4 sm:$0xff]  }
  0x2b   :  { %v4728_v61 = vcombine.low %v137_v55, %v147_v56  ;;  %v441_v25 = vrot.slane %v5397_v59, 5  ;;  %v5125_v27 = vld [vmem:[#allocation2 + $0xc4] ss:$8 sps:$4 sm:$0xff]   ;;  %v5516_v30 = vld [vmem:[%s7153_s0 + $0x28] sm:$0xf]  ;;  %v4755_v59 = vrot.slane %v5392_v58, 9 }
  0x2c   :  { %4751 = vmatmul.mubr.msk.bf16.gmra.mxu1 %vm197_vm2, %v4741_v41  ;;  %v438_v32 = vsel %vm5470_vm6, %v436_v16, %v437_v19  ;;  %v5511_v29 = vld [vmem:[%s7153_s0 + $0x24] sm:$0xf]  ;;  %v444_v36 = vrot.slane %v5402_v60, 5  ;;  %v5123_v38 = vld [vmem:[#allocation2 + $0xc0] ss:$8 sps:$4 sm:$0xff]   ;;  %v775_v39 = vshrl.u32 %v5460_v57, 16 }
  0x2d   :  { %407 = vmatprep.mubr.bf16.mxu1 %v5299_v0  ;;  %v4758_v28 = vcombine.low %v435_v24, %v438_v32  ;;  %v443_v31 = vrot.slane %v441_v25, 4  ;;  %v778_v40 = vshll.u32 %v5460_v57, 16  ;;  %v5132_v41 = vld [vmem:[#allocation2 + $0x144] ss:$8 sps:$4 sm:$0xff]   ;;  %v788_v42 = vshrl.u32 %v5466_v14, 16 }
  0x2e   :  { %v4785_v43 = vcombine.low %v5511_v29, %v5516_v30  ;;  %v784_v44 = vshll.u32 %v5466_v14, 16  ;;  %v442_v58 = vsel %vm5470_vm6, %v4755_v59, %v441_v25  ;;  %v448_v45 = vrot.slane %v5423_v18, 5  ;;  %v4773_v48 = vld [vmem:[%s7153_s0 + $0x14] sm:$0x1]  ;;  %v5541_v52 = vld [vmem:[%s7153_s0 + $0x30] sm:$0xf] }
  0x2f   :  { %4737 = vmatmul.mubr.msk.bf16.gmra.mxu0 %vm197_vm2, %v4727_v49  ;;  %v445_v60 = vsel %vm5470_vm6, %v443_v31, %v444_v36  ;;  %v777_v46 = vrot.slane %v775_v39, 4  ;;  %v780_v47 = vrot.slane %v778_v40, 5  ;;  %v790_v50 = vrot.slane %v788_v42, 4  ;;  %v5546_v18 = vld [vmem:[%s7153_s0 + $0x34] sm:$0xf] }
  0x30   :  { %272 = vmatprep.mubr.bf16.mxu0 %v5299_v0  ;;  %v786_v49 = vrot.slane %v784_v44, 5  ;;  %v4759_v51 = vcombine.low %v442_v58, %v445_v60  ;;  %v4756_v54 = vrot.slane %v5418_v17, 9  ;;  %v450_v55 = vrot.slane %v448_v45, 4  ;;  %v5141_v42 = vld [vmem:[#allocation2 + $0x164] ss:$8 sps:$4 sm:$0xff]  }
  0x31   :  { %v451_v56 = vrot.slane %v5434_v37, 5  ;;  %v802_v62 = vshll.u32 %v5487_v8, 16  ;;  %v781_v63 = vor.u32 %v780_v47, %v777_v46  ;;  %v794_v2 = vshll.u32 %v4773_v48, 16 }
  0x32   :  { %v791_v6 = vor.u32 %v790_v50, %v786_v49  ;;  %v808_v15 = vshll.u32 %v5492_v9, 16  ;;  %v4811_v17 = vrot.slane %v5460_v57, 9  ;;  %v1029_v37 = vrot.slane %v4773_v48, 5  ;;  %v4776_v57 = vld [vmem:[%s7153_s0 + $0x20] sm:$0x1] }
  0x33   :  { %v449_v13 = vsel %vm5470_vm6, %v4756_v54, %v448_v45  ;;  %v804_v33 = vrot.slane %v802_v62, 5  ;;  %v1033_v24 = vrot.slane %v5492_v9, 5  ;;  %v823_v32 = vshrl.u32 %v5511_v29, 16  ;;  %v4779_v45 = vld [vmem:[%s7153_s0 + $0x2c] sm:$0x1] }
  0x34   :  { %4752 = vmatmul.mubr.msk.bf16.gmra.mxu1 %vm197_vm2, %v4742_v53  ;;  %v1026_v53 = vrot.slane %v5466_v14, 5  ;;  %v792_v16 = vrot.slane %v791_v6, 4  ;;  %v5568_v19 = vrot.slane %v808_v15, 5  ;;  %v4812_v36 = vrot.slane %v5487_v8, 9  ;;  %v5130_v54 = vld [vmem:[#allocation2 + $0x140] ss:$8 sps:$4 sm:$0xff]  }
  0x35   :  { %717 = vmatprep.mubr.bf16.mxu1 %v5299_v0  ;;  %v1035_v39 = vrot.slane %v1033_v24, 4  ;;  %v1036_v40 = vrot.slane %v4776_v57, 5  ;;  %v825_v46 = vrot.slane %v823_v32, 4  ;;  %v5145_v62 = vld [vmem:[#allocation2 + $0x150] ss:$8 sps:$4 sm:$0xff]   ;;  %v4813_v6 = vrot.slane %v5511_v29, 9 }
  0x36   :  { %v1028_v14 = vrot.slane %v1026_v53, 4  ;;  %v5613_v15 = vld [vmem:[%s7153_s0 + $0x1c] sm:$0xf]  ;;  %vm2313_vm8 = vcmask 1041409   ;;  %vm2316_vm9 = vcmask 1042434   ;;  %vm2319_vm10 = vcmask 1043459  }
  0x37   :  { %4738 = vmatmul.mubr.msk.bf16.gmra.mxu0 %vm197_vm2, %v4728_v61  ;;  %v799_v61 = vshrl.u32 %v5487_v8, 16  ;;  %v1034_v8 = vsel %vm5470_vm6, %v4812_v36, %v1033_v24  ;;  %v1037_v48 = vsel %vm5470_vm6, %v1035_v39, %v1036_v40  ;;  %v5643_v39 = vld [vmem:[%s7153_s0 + $0x24] sm:$0xf]  ;;  %vm2322_vm11 = vcmask 1044484  }
  0x38   :  { %546 = vmatprep.mubr.bf16.mxu0 %v5299_v0  ;;  %vm2325_vm12 = vcmask 1045509   ;;  %vm2328_vm13 = vcmask 1046534   ;;  %vm2331_vm14 = vcmask 1047559  }
  0x3c   :  { %4793 = vmatmul.mubr.msk.bf16.vlgmr.msra.gmra.mxu1 %vm197_vm2, %v4783_v4  ;;  %v812_v4 = vshrl.u32 %v5492_v9, 16  ;;  %v5133_v9 = vld [vmem:[#allocation2 + $0x170] ss:$8 sps:$4 sm:$0xff]  }
  0x3d   :  { %1124 = vmatpush1.bf16.msra.mxu1 %v5112_v5  ;;  %727 = vmatprep.mubr.bf16.mxu1 %v5299_v0  ;;  %v4786_v5 = vcombine.low %v5541_v52, %v5546_v18 }
  0x3e   :  { %1125 = vmatprep.subr.bf16.mxu1 %v5121_v7  ;;  %v452_v7 = vsel %vm5470_vm6, %v450_v55, %v451_v56  ;;  %v5138_v55 = vld [vmem:[#allocation2 + $0x134] ss:$8 sps:$4 sm:$0xff]   ;;  %v847_v56 = vshrl.u32 %v5541_v52, 16 }
  0x3f   :  { %4767 = vmatmul.mubr.msk.bf16.vlgmr.msra.gmra.mxu0 %vm197_vm2, %v4757_v11  ;;  %v796_v11 = vrot.slane %v794_v2, 5 }
  0x40   :  { %942 = vmatpush1.bf16.msra.mxu0 %v5109_v12  ;;  %556 = vmatprep.mubr.bf16.mxu0 %v5299_v0  ;;  %v801_v12 = vrot.slane %v799_v61, 4  ;;  %v842_v61 = vshll.u32 %v4779_v45, 16 }
  0x41   :  { %1126 = vmatpush1.bf16.msra.mxu1 %v5119_v10  ;;  %943 = vmatprep.subr.bf16.mxu0 %v5118_v20  ;;  %v782_v10 = vrot.slane %v781_v63, 4  ;;  %v814_v20 = vrot.slane %v812_v4, 4  ;;  %v5147_v63 = vld [vmem:[#allocation2 + $0x154] ss:$8 sps:$4 sm:$0xff]   ;;  %v4816_v4 = vcombine.low %v1034_v8, %v1037_v48  ;;  %v1398_v48 = vshrl.u32 %v5643_v39, 16 }
  0x42   :  { %1127 = vmatprep.subr.bf16.mxu1 %v5129_v21  ;;  %v4760_v21 = vcombine.low %v449_v13, %v452_v7  ;;  %v850_v13 = vshll.u32 %v5541_v52, 16  ;;  %v860_v7 = vshrl.u32 %v5546_v18, 16 }
  0x43   :  { %v787_v25 = vsel %vm5372_vm3, %v782_v10, %v786_v49  ;;  %v815_v31 = vor.u32 %v814_v20, %v5568_v19  ;;  %v5139_v49 = vld [vmem:[#allocation2 + $0x160] ss:$8 sps:$4 sm:$0xff]   ;;  %v5136_v10 = vld [vmem:[#allocation2 + $0x130] ss:$8 sps:$4 sm:$0xff]  }
  0x44   :  { %4794 = vmatmul.mubr.msk.bf16.gmra.mxu1 %vm197_vm2, %v4784_v22  ;;  %944 = vmatpush1.bf16.msra.mxu0 %v5116_v34  ;;  %v1027_v22 = vsel %vm5470_vm6, %v4811_v17, %v1026_v53  ;;  %v826_v34 = vshll.u32 %v5511_v29, 16  ;;  %v1040_v53 = vrot.slane %v5516_v30, 5  ;;  %v1043_v29 = vrot.slane %v4779_v45, 5 }
  0x45   :  { %737 = vmatprep.mubr.bf16.mxu1 %v5299_v0  ;;  %1128 = vmatpush1.bf16.msra.mxu1 %v5127_v23  ;;  %v1030_v23 = vsel %vm5470_vm6, %v1028_v14, %v1029_v37  ;;  %v816_v60 = vrot.slane %v815_v31, 4  ;;  %v862_v31 = vrot.slane %v860_v7, 4 }
  0x46   :  { %1540 = vmatprep.subr.bf16.mxu1 %v5135_v26  ;;  %945 = vmatprep.subr.bf16.mxu0 %v5125_v27  ;;  %v805_v26 = vor.u32 %v804_v33, %v801_v12  ;;  %v818_v27 = vshll.u32 %v4776_v57, 16  ;;  %v4815_v59 = vcombine.low %v1027_v22, %v1030_v23  ;;  %v828_v47 = vrot.slane %v826_v34, 5  ;;  %v5144_v33 = vld [vmem:[#allocation2 + $0x124] ss:$8 sps:$4 sm:$0xff]  }
  0x47   :  { %4768 = vmatmul.mubr.msk.bf16.gmra.mxu0 %vm197_vm2, %v4758_v28  ;;  %v797_v28 = vsel %vm5372_vm3, %v792_v16, %v796_v11  ;;  %v1042_v37 = vrot.slane %v1040_v53, 4  ;;  %v856_v11 = vshll.u32 %v5546_v18, 16  ;;  %v844_v12 = vrot.slane %v842_v61, 5 }
  0x48   :  { %566 = vmatprep.mubr.bf16.mxu0 %v5299_v0  ;;  %946 = vmatpush1.bf16.msra.mxu0 %v5123_v38  ;;  %v836_v38 = vshrl.u32 %v5516_v30, 16  ;;  %v806_v44 = vrot.slane %v805_v26, 4  ;;  %v820_v58 = vrot.slane %v818_v27, 5  ;;  %v1387_v22 = vshrl.u32 %v5613_v15, 16 }
  0x49   :  { %1294 = vmatprep.subr.bf16.mxu0 %v5132_v41  ;;  %v832_v41 = vshll.u32 %v5516_v30, 16  ;;  %v5608_v30 = vld [vmem:[%s7153_s0 + $0x18] sm:$0xf]  ;;  %v1383_v23 = vshll.u32 %v5613_v15, 16  ;;  %v1041_v32 = vsel %vm5470_vm6, %v4813_v6, %v1040_v53  ;;  %v1044_v34 = vsel %vm5470_vm6, %v1042_v37, %v1043_v29 }
  0x4a   :  { %v811_v2 = vsel %vm5372_vm3, %v806_v44, %v5568_v19  ;;  %v821_v17 = vsel %vm5372_vm3, %v816_v60, %v820_v58  ;;  %v1374_v16 = vshrl.u32 %v5608_v30, 16  ;;  %v1377_v57 = vshll.u32 %v5608_v30, 16  ;;  %v5655_v60 = vld [vmem:[%s7153_s0 + $0x20] sm:$0x1] }
  0x4b   :  { %v5597_v50 = vrot.slane %v832_v41, 5  ;;  %v4798_v19 = vcombine.low %v811_v2, %v821_v17  ;;  %v1047_v26 = vrot.slane %v5546_v18, 5  ;;  %v849_v27 = vrot.slane %v847_v56, 4  ;;  %v5678_v17 = vld [vmem:[%s7153_s0 + $0x30] sm:$0xf] }
  0x4c   :  { %4795 = vmatmul.mubr.msk.bf16.gmra.mxu1 %vm197_vm2, %v4785_v43  ;;  %v4797_v43 = vcombine.low %v787_v25, %v797_v28  ;;  %v4782_v25 = vld [vmem:[%s7153_s0 + $0x38] sm:$0x1]  ;;  %v852_v28 = vrot.slane %v850_v13, 5  ;;  %v1376_v36 = vrot.slane %v1374_v16, 4  ;;  %v4817_v40 = vcombine.low %v1041_v32, %v1044_v34 }
  0x4d   :  { %747 = vmatprep.mubr.bf16.mxu1 %v5299_v0  ;;  %v1385_v41 = vrot.slane %v1383_v23, 5  ;;  %v1049_v44 = vrot.slane %v1047_v26, 4  ;;  %v1050_v58 = vrot.slane %v4782_v25, 5  ;;  %v1393_v53 = vshll.u32 %v5655_v60, 16 }
  0x4e   :  { %v853_v8 = vor.u32 %v852_v28, %v849_v27  ;;  %v5711_v27 = vld [vmem:[%s7153_s0 + $0x38] sm:$0x1] }
  0x4f   :  { %4769 = vmatmul.mubr.msk.bf16.gmra.mxu0 %vm197_vm2, %v4759_v51  ;;  %v838_v51 = vrot.slane %v836_v38, 4  ;;  %v1379_v38 = vrot.slane %v1377_v57, 5  ;;  %v1395_v29 = vrot.slane %v1393_v53, 5  ;;  %v5163_v53 = vld [vmem:[#allocation2 + $0x34] ss:$8 sps:$4 sm:$0xff]  }
  0x50   :  { %576 = vmatprep.mubr.bf16.mxu0 %v5299_v0 }
  0x51   :  { %v839_v14 = vor.u32 %v838_v51, %v5597_v50 }
  0x53   :  { %v840_v24 = vrot.slane %v839_v14, 4 }
  0x54   :  { %4796 = vmatmul.mubr.msk.bf16.gmra.mxu1 %vm197_vm2, %v4786_v5  ;;  %v829_v5 = vor.u32 %v828_v47, %v825_v46  ;;  %v866_v46 = vshll.u32 %v4782_v25, 16  ;;  %v5662_v47 = vld [vmem:[%s7153_s0 + $0x28] sm:$0xf] }
  0x55   :  { %1145 = vmatprep.mubr.bf16.mxu1 %v5299_v0  ;;  %v1411_v56 = vshrl.u32 %v5662_v47, 16  ;;  %v1407_v61 = vshll.u32 %v5662_v47, 16 }
  0x56   :  { %v830_v20 = vrot.slane %v829_v5, 4  ;;  %v868_v2 = vrot.slane %v866_v46, 5  ;;  %v1400_v5 = vrot.slane %v1398_v48, 4 }
  0x57   :  { %4770 = vmatmul.mubr.msk.bf16.gmra.mxu0 %vm197_vm2, %v4760_v21  ;;  %v5142_v21 = vld [vmem:[#allocation2 + $0x120] ss:$8 sps:$4 sm:$0xff]   ;;  %v1409_v13 = vrot.slane %v1407_v61, 5  ;;  %v1413_v7 = vrot.slane %v1411_v56, 4  ;;  %v5749_v61 = vld [vmem:[%s7153_s0 + $0x4c] sm:$0xf] }
  0x58   :  { %963 = vmatprep.mubr.bf16.mxu0 %v5299_v0  ;;  %v835_v18 = vsel %vm5372_vm3, %v830_v20, %v5597_v50  ;;  %v5744_v56 = vld [vmem:[%s7153_s0 + $0x48] sm:$0xf] }
  0x59   :  { %v1414_v32 = vor.u32 %v1413_v7, %v1409_v13  ;;  %v2403_v7 = vshrl.u32 %v5744_v56, 16 }
  0x5c   :  { %4825 = vmatmul.mubr.msk.bf16.vlgmr.msra.gmra.mxu1 %vm197_vm2, %v4815_v59  ;;  %v5637_v59 = vrot.slane %v856_v11, 5 }
  0x5d   :  { %1541 = vmatpush1.bf16.msra.mxu1 %v5133_v9  ;;  %1155 = vmatprep.mubr.bf16.mxu1 %v5299_v0  ;;  %v5151_v9 = vld [vmem:[#allocation2 + $0x1a4] ss:$8 sps:$4 sm:$0xff]  }
  0x5e   :  { %1542 = vmatprep.subr.bf16.mxu1 %v5141_v42  ;;  %v1389_v42 = vrot.slane %v1387_v22, 4  ;;  %v863_v45 = vor.u32 %v862_v31, %v5637_v59 }
  0x5f   :  { %4807 = vmatmul.mubr.msk.bf16.vlgmr.msra.gmra.mxu0 %vm197_vm2, %v4797_v43  ;;  %v4814_v43 = vrot.slane %v5541_v52, 9  ;;  %v1380_v52 = vor.u32 %v1379_v38, %v1376_v36  ;;  %v1415_v38 = vrot.slane %v1414_v32, 4 }
  0x60   :  { %1295 = vmatpush1.bf16.msra.mxu0 %v5130_v54  ;;  %973 = vmatprep.mubr.bf16.mxu0 %v5299_v0  ;;  %v1390_v51 = vor.u32 %v1389_v42, %v1385_v41  ;;  %v1441_v42 = vshll.u32 %v5711_v27, 16 }
  0x61   :  { %1543 = vmatpush1.bf16.msra.mxu1 %v5139_v49  ;;  %1296 = vmatprep.subr.bf16.mxu0 %v5138_v55  ;;  %v1401_v49 = vshll.u32 %v5643_v39, 16  ;;  %v1048_v54 = vsel %vm5470_vm6, %v4814_v43, %v1047_v26  ;;  %v1051_v55 = vsel %vm5470_vm6, %v1049_v44, %v1050_v58 }
  0x62   :  { %1544 = vmatprep.subr.bf16.mxu1 %v5147_v63  ;;  %v864_v63 = vrot.slane %v863_v45, 4  ;;  %v4818_v14 = vcombine.low %v1048_v54, %v1051_v55  ;;  %v1391_v37 = vrot.slane %v1390_v51, 4  ;;  %v5249_v51 = vld [vmem:[#allocation2 + $0x44] ss:$8 sps:$4 sm:$0xff]   ;;  %v1443_v54 = vrot.slane %v1441_v42, 5 }
  0x63   :  { %v1403_v6 = vrot.slane %v1401_v49, 5  ;;  %v5149_v49 = vld [vmem:[#allocation2 + $0x1a0] ss:$8 sps:$4 sm:$0xff]   ;;  %v5161_v55 = vld [vmem:[#allocation2 + $0x30] ss:$8 sps:$4 sm:$0xff]  }
  0x64   :  { %4826 = vmatmul.mubr.msk.bf16.gmra.mxu1 %vm197_vm2, %v4816_v4  ;;  %1297 = vmatpush1.bf16.msra.mxu0 %v5136_v10  ;;  %v1381_v4 = vrot.slane %v1380_v52, 4  ;;  %v5684_v10 = vld [vmem:[%s7153_s0 + $0x34] sm:$0xf]  ;;  %v1396_v20 = vsel %vm5372_vm3, %v1391_v37, %v1395_v29 }
  0x65   :  { %1165 = vmatprep.mubr.bf16.mxu1 %v5299_v0  ;;  %1545 = vmatpush1.bf16.msra.mxu1 %v5145_v62  ;;  %v854_v62 = vrot.slane %v853_v8, 4  ;;  %v1404_v57 = vor.u32 %v1403_v6, %v1400_v5  ;;  %v1435_v22 = vshrl.u32 %v5684_v10, 16  ;;  %v1431_v23 = vshll.u32 %v5684_v10, 16  ;;  %v5248_v8 = vld [vmem:[#allocation2 + $0x50] ss:$8 sps:$4 sm:$0xff]  }
  0x66   :  { %2568 = vmatprep.subr.bf16.mxu1 %v5330_v1  ;;  %1298 = vmatprep.subr.bf16.mxu0 %v5144_v33  ;;  %v845_v1 = vsel %vm5372_vm3, %v840_v24, %v844_v12  ;;  %v869_v12 = vsel %vm5372_vm3, %v864_v63, %v868_v2  ;;  %v5695_v33 = vld [vmem:[%s7153_s0 + $0x2c] sm:$0x1]  ;;  %v1386_v16 = vsel %vm5372_vm3, %v1381_v4, %v1385_v41  ;;  %v5153_v63 = vld [vmem:[#allocation2 + $0x190] ss:$8 sps:$4 sm:$0xff]   ;;  %v5754_v5 = vld [vmem:[%s7153_s0 + $0x44] sm:$0x1] }
  0x67   :  { %4808 = vmatmul.mubr.msk.bf16.gmra.mxu0 %vm197_vm2, %v4798_v19  ;;  %v4799_v50 = vcombine.low %v835_v18, %v845_v1  ;;  %v859_v11 = vsel %vm5372_vm3, %v854_v62, %v5637_v59  ;;  %v1422_v19 = vshrl.u32 %v5678_v17, 16  ;;  %v1417_v34 = vshll.u32 %v5695_v33, 16  ;;  %v5719_v18 = vld [vmem:[%s7153_s0 + $0x3c] sm:$0xf] }
  0x68   :  { %983 = vmatprep.mubr.bf16.mxu0 %v5299_v0  ;;  %1299 = vmatpush1.bf16.msra.mxu0 %v5142_v21  ;;  %v1425_v21 = vshll.u32 %v5678_v17, 16  ;;  %v4800_v24 = vcombine.low %v859_v11, %v869_v12  ;;  %v4855_v25 = vcombine.low %v1386_v16, %v1396_v20  ;;  %v1405_v26 = vrot.slane %v1404_v57, 4  ;;  %v5169_v57 = vld [vmem:[#allocation2 + $0x84] ss:$8 sps:$4 sm:$0xff]  }
  0x69   :  { %1722 = vmatprep.subr.bf16.mxu0 %v5151_v9  ;;  %v1424_v28 = vrot.slane %v1422_v19, 4  ;;  %v5713_v31 = vrot.slane %v1431_v23, 5  ;;  %v1437_v36 = vrot.slane %v1435_v22, 4  ;;  %v1419_v9 = vrot.slane %v1417_v34, 5  ;;  %v5159_v19 = vld [vmem:[#allocation2 + $0x184] ss:$8 sps:$4 sm:$0xff]  }
  0x6a   :  { %v1427_v59 = vrot.slane %v1425_v21, 5  ;;  %v4841_v41 = vcombine.low %v5608_v30, %v5613_v15  ;;  %v1410_v1 = vsel %vm5372_vm3, %v1405_v26, %v1409_v13  ;;  %v1446_v58 = vshrl.u32 %v5719_v18, 16  ;;  %v5157_v34 = vld [vmem:[#allocation2 + $0x180] ss:$8 sps:$4 sm:$0xff]  }
  0x6b   :  { %v1438_v44 = vor.u32 %v1437_v36, %v5713_v31  ;;  %v1420_v45 = vsel %vm5372_vm3, %v1415_v38, %v1419_v9  ;;  %v1449_v46 = vshll.u32 %v5719_v18, 16  ;;  %v2406_v11 = vshll.u32 %v5744_v56, 16  ;;  %v5166_v36 = vld [vmem:[#allocation2 + $0x24] ss:$8 sps:$4 sm:$0xff]   ;;  %v5783_v9 = vld [vmem:[%s7153_s0 + $0x54] sm:$0xf] }
  0x6c   :  { %4827 = vmatmul.mubr.msk.bf16.gmra.mxu1 %vm197_vm2, %v4817_v40  ;;  %v5725_v40 = vld [vmem:[%s7153_s0 + $0x40] sm:$0xf]  ;;  %v1428_v43 = vor.u32 %v1427_v59, %v1424_v28  ;;  %v4856_v62 = vcombine.low %v1410_v1, %v1420_v45  ;;  %v1448_v6 = vrot.slane %v1446_v58, 4  ;;  %v2412_v12 = vshll.u32 %v5749_v61, 16 }
  0x6d   :  { %1175 = vmatprep.mubr.bf16.mxu1 %v5299_v0  ;;  %v1459_v52 = vshrl.u32 %v5725_v40, 16  ;;  %v1455_v48 = vshll.u32 %v5725_v40, 16  ;;  %v1439_v4 = vrot.slane %v1438_v44, 4  ;;  %v1451_v37 = vrot.slane %v1449_v46, 5 }
  0x6e   :  { %v1429_v2 = vrot.slane %v1428_v43, 4  ;;  %v2416_v16 = vshrl.u32 %v5749_v61, 16  ;;  %v4842_v20 = vcombine.low %v5643_v39, %v5662_v47  ;;  %v1465_v32 = vshll.u32 %v5754_v5, 16 }
  0x6f   :  { %4809 = vmatmul.mubr.msk.bf16.gmra.mxu0 %vm197_vm2, %v4799_v50  ;;  %v5155_v50 = vld [vmem:[#allocation2 + $0x194] ss:$8 sps:$4 sm:$0xff]   ;;  %v5757_v29 = vrot.slane %v1455_v48, 5  ;;  %v1461_v13 = vrot.slane %v1459_v52, 4  ;;  %v1444_v22 = vsel %vm5372_vm3, %v1439_v4, %v1443_v54  ;;  %v1452_v23 = vor.u32 %v1451_v37, %v1448_v6 }
  0x70   :  { %993 = vmatprep.mubr.bf16.mxu0 %v5299_v0  ;;  %v1434_v21 = vsel %vm5372_vm3, %v1429_v2, %v5713_v31  ;;  %v2408_v26 = vrot.slane %v2406_v11, 5  ;;  %v2414_v28 = vrot.slane %v2412_v12, 5  ;;  %v2418_v59 = vrot.slane %v2416_v16, 4  ;;  %v5778_v31 = vld [vmem:[%s7153_s0 + $0x50] sm:$0x1] }
  0x71   :  { %v4857_v38 = vcombine.low %v1434_v21, %v1444_v22  ;;  %v1453_v42 = vrot.slane %v1452_v23, 4  ;;  %v1467_v43 = vrot.slane %v1465_v32, 5  ;;  %v2427_v45 = vshrl.u32 %v5783_v9, 16 }
  0x72   :  { %v2419_v58 = vor.u32 %v2418_v59, %v2414_v28  ;;  %v2430_v46 = vshll.u32 %v5783_v9, 16  ;;  %v1628_v11 = vrot.slane %v5655_v60, 5  ;;  %v4844_v23 = vcombine.low %v5719_v18, %v5725_v40 }
  0x73   :  { %v2429_v2 = vrot.slane %v2427_v45, 4  ;;  %v5864_v45 = vld [vmem:[%s7153_s0 + $0x70] sm:$0xf] }
  0x74   :  { %4828 = vmatmul.mubr.msk.bf16.gmra.mxu1 %vm197_vm2, %v4818_v14  ;;  %v5250_v14 = vld [vmem:[#allocation2 + $0x40] ss:$8 sps:$4 sm:$0xff]   ;;  %v2432_v4 = vrot.slane %v2430_v46, 5  ;;  %v4870_v46 = vrot.slane %v5643_v39, 9  ;;  %v5173_v39 = vld [vmem:[#allocation2 + $0x70] ss:$8 sps:$4 sm:$0xff]  }
  0x75   :  { %1562 = vmatprep.mubr.bf16.mxu1 %v5299_v0 }
  0x77   :  { %4810 = vmatmul.mubr.msk.bf16.gmra.mxu0 %vm197_vm2, %v4800_v24  ;;  %v1462_v24 = vor.u32 %v1461_v13, %v5757_v29  ;;  %v4869_v13 = vrot.slane %v5608_v30, 9 }
  0x78   :  { %1316 = vmatprep.mubr.bf16.mxu0 %v5299_v0 }
  0x79   :  { %v1463_v1 = vrot.slane %v1462_v24, 4 }
  0x7c   :  { %4865 = vmatmul.mubr.msk.bf16.vlgmr.msra.gmra.mxu1 %vm197_vm2, %v4855_v25  ;;  %v2405_v25 = vrot.slane %v2403_v7, 4 }
  0x7d   :  { %2569 = vmatpush1.bf16.msra.mxu1 %v5248_v8  ;;  %1572 = vmatprep.mubr.bf16.mxu1 %v5299_v0  ;;  %v2422_v8 = vshll.u32 %v5778_v31, 16 }
  0x7e   :  { %2570 = vmatprep.subr.bf16.mxu1 %v5249_v51  ;;  %v2409_v44 = vor.u32 %v2408_v26, %v2405_v25  ;;  %v1468_v51 = vsel %vm5372_vm3, %v1463_v1, %v1467_v43  ;;  %v5167_v43 = vld [vmem:[#allocation2 + $0x80] ss:$8 sps:$4 sm:$0xff]  }
  0x7f   :  { %4851 = vmatmul.mubr.msk.bf16.vlgmr.msra.gmra.mxu0 %vm197_vm2, %v4841_v41  ;;  %v5788_v41 = vld [vmem:[%s7153_s0 + $0x58] sm:$0xf] }
  0x80   :  { %1723 = vmatpush1.bf16.msra.mxu0 %v5149_v49  ;;  %1326 = vmatprep.mubr.bf16.mxu0 %v5299_v0  ;;  %v2436_v52 = vshll.u32 %v5788_v41, 16  ;;  %v2440_v48 = vshrl.u32 %v5788_v41, 16  ;;  %v4843_v49 = vcombine.low %v5678_v17, %v5684_v10  ;;  %v2410_v54 = vrot.slane %v2409_v44, 4  ;;  %v5853_v44 = vld [vmem:[%s7153_s0 + $0x68] sm:$0x1] }
  0x81   :  { %2571 = vmatpush1.bf16.msra.mxu1 %v5250_v14  ;;  %1724 = vmatprep.subr.bf16.mxu0 %v5155_v50  ;;  %v1458_v50 = vsel %vm5372_vm3, %v1453_v42, %v5757_v29  ;;  %v5823_v29 = vld [vmem:[%s7153_s0 + $0x64] sm:$0xf] }
  0x82   :  { %2572 = vmatprep.subr.bf16.mxu1 %v5163_v53  ;;  %v1625_v53 = vrot.slane %v5613_v15, 5  ;;  %v5812_v6 = vrot.slane %v2436_v52, 5  ;;  %v2442_v14 = vrot.slane %v2440_v48, 4  ;;  %v4858_v37 = vcombine.low %v1458_v50, %v1468_v51  ;;  %v5818_v15 = vld [vmem:[%s7153_s0 + $0x60] sm:$0xf] }
  0x83   :  { %v2415_v16 = vsel %vm5372_vm3, %v2410_v54, %v2414_v28  ;;  %v2451_v21 = vshrl.u32 %v5818_v15, 16  ;;  %v2454_v30 = vshll.u32 %v5818_v15, 16  ;;  %v2460_v22 = vshll.u32 %v5823_v29, 16 }
  0x84   :  { %4866 = vmatmul.mubr.msk.bf16.gmra.mxu1 %vm197_vm2, %v4856_v62  ;;  %1725 = vmatpush1.bf16.msra.mxu0 %v5153_v63  ;;  %v2424_v62 = vrot.slane %v2422_v8, 5  ;;  %v5810_v63 = vld [vmem:[%s7153_s0 + $0x5c] sm:$0x1]  ;;  %v1627_v7 = vrot.slane %v1625_v53, 4  ;;  %v2464_v60 = vshrl.u32 %v5823_v29, 16  ;;  %v1626_v24 = vsel %vm5470_vm6, %v4869_v13, %v1625_v53 }
  0x85   :  { %1582 = vmatprep.mubr.bf16.mxu1 %v5299_v0  ;;  %2573 = vmatpush1.bf16.msra.mxu1 %v5161_v55  ;;  %v2420_v55 = vrot.slane %v2419_v58, 4  ;;  %v2446_v12 = vshll.u32 %v5810_v63, 16  ;;  %v5847_v42 = vrot.slane %v2460_v22, 5  ;;  %v5175_v58 = vld [vmem:[#allocation2 + $0x74] ss:$8 sps:$4 sm:$0xff]   ;;  %v1635_v48 = vrot.slane %v5695_v33, 5 }
  0x86   :  { %2868 = vmatprep.subr.bf16.mxu1 %v5169_v57  ;;  %1726 = vmatprep.subr.bf16.mxu0 %v5159_v19  ;;  %v2433_v19 = vor.u32 %v2432_v4, %v2429_v2  ;;  %v1629_v32 = vsel %vm5470_vm6, %v1627_v7, %v1628_v11  ;;  %v2466_v1 = vrot.slane %v2464_v60, 4  ;;  %v5859_v8 = vld [vmem:[%s7153_s0 + $0x6c] sm:$0xf]  ;;  %v2470_v54 = vshll.u32 %v5853_v44, 16  ;;  %v5164_v4 = vld [vmem:[#allocation2 + $0x20] ss:$8 sps:$4 sm:$0xff]  }
  0x87   :  { %4852 = vmatmul.mubr.msk.bf16.gmra.mxu0 %vm197_vm2, %v4842_v20  ;;  %v2425_v57 = vsel %vm5372_vm3, %v2420_v55, %v2424_v62  ;;  %v2443_v20 = vor.u32 %v2442_v14, %v5812_v6  ;;  %v2448_v59 = vrot.slane %v2446_v12, 5  ;;  %v2475_v33 = vshrl.u32 %v5859_v8, 16  ;;  %v5181_v13 = vld [vmem:[#allocation2 + $0x64] ss:$8 sps:$4 sm:$0xff]   ;;  %v5170_v11 = vld [vmem:[#allocation2 + $0x10] ss:$8 sps:$4 sm:$0xff]  }
  0x88   :  { %1336 = vmatprep.mubr.bf16.mxu0 %v5299_v0  ;;  %1727 = vmatpush1.bf16.msra.mxu0 %v5157_v34  ;;  %v1632_v34 = vrot.slane %v5662_v47, 5  ;;  %v4900_v25 = vcombine.low %v2415_v16, %v2425_v57  ;;  %v2434_v26 = vrot.slane %v2433_v19, 4  ;;  %v4873_v47 = vcombine.low %v1626_v24, %v1629_v32  ;;  %v5179_v22 = vld [vmem:[#allocation2 + $0x60] ss:$8 sps:$4 sm:$0xff]   ;;  %v5188_v24 = vld [vmem:[#allocation2 + $0xe4] ss:$8 sps:$4 sm:$0xff]  }
  0x89   :  { %2703 = vmatprep.subr.bf16.mxu0 %v5166_v36  ;;  %v2444_v28 = vrot.slane %v2443_v20, 4  ;;  %v2453_v36 = vrot.slane %v2451_v21, 4  ;;  %v2467_v53 = vor.u32 %v2466_v1, %v5847_v42  ;;  %v2478_v55 = vshll.u32 %v5859_v8, 16  ;;  %v5178_v32 = vld [vmem:[#allocation2 + $0x4] ss:$8 sps:$4 sm:$0xff]  }
  0x8a   :  { %v1634_v52 = vrot.slane %v1632_v34, 4  ;;  %v2484_v62 = vshll.u32 %v5864_v45, 16  ;;  %v2488_v2 = vshrl.u32 %v5864_v45, 16  ;;  %v2472_v57 = vrot.slane %v2470_v54, 5 }
  0x8b   :  { %v2449_v50 = vsel %vm5372_vm3, %v2444_v28, %v2448_v59  ;;  %v2468_v16 = vrot.slane %v2467_v53, 4  ;;  %v2477_v19 = vrot.slane %v2475_v33, 4  ;;  %v2480_v20 = vrot.slane %v2478_v55, 5 }
  0x8c   :  { %4867 = vmatmul.mubr.msk.bf16.gmra.mxu1 %vm197_vm2, %v4857_v38  ;;  %v2456_v38 = vrot.slane %v2454_v30, 5  ;;  %v1636_v14 = vsel %vm5470_vm6, %v1634_v52, %v1635_v48  ;;  %v2486_v21 = vrot.slane %v2484_v62, 5  ;;  %v2490_v30 = vrot.slane %v2488_v2, 4 }
  0x8d   :  { %1592 = vmatprep.mubr.bf16.mxu1 %v5299_v0  ;;  %v1639_v60 = vrot.slane %v5684_v10, 5  ;;  %v2473_v10 = vsel %vm5372_vm3, %v2468_v16, %v2472_v57  ;;  %v1642_v1 = vrot.slane %v5711_v27, 5  ;;  %v1646_v27 = vrot.slane %v5725_v40, 5  ;;  %v5195_v16 = vld [vmem:[#allocation2 + $0xd4] ss:$8 sps:$4 sm:$0xff]  }
  0x8e   :  { %v2457_v51 = vor.u32 %v2456_v38, %v2453_v36  ;;  %v2491_v28 = vor.u32 %v2490_v30, %v2486_v21  ;;  %v4871_v36 = vrot.slane %v5678_v17, 9  ;;  %v2772_v53 = vrot.slane %v5749_v61, 5  ;;  %v5183_v30 = vld [vmem:[#allocation2 + $0xb0] ss:$8 sps:$4 sm:$0xff]  }
  0x8f   :  { %4853 = vmatmul.mubr.msk.bf16.gmra.mxu0 %vm197_vm2, %v4843_v49  ;;  %v2439_v49 = vsel %vm5372_vm3, %v2434_v26, %v5812_v6  ;;  %v1633_v6 = vsel %vm5470_vm6, %v4870_v46, %v1632_v34  ;;  %v2481_v26 = vor.u32 %v2480_v20, %v2477_v19  ;;  %v1641_v38 = vrot.slane %v1639_v60, 4 }
  0x90   :  { %1346 = vmatprep.mubr.bf16.mxu0 %v5299_v0  ;;  %v4901_v7 = vcombine.low %v2439_v49, %v2449_v50  ;;  %v2458_v12 = vrot.slane %v2457_v51, 4  ;;  %v4874_v34 = vcombine.low %v1633_v6, %v1636_v14  ;;  %v2492_v46 = vrot.slane %v2491_v28, 4  ;;  %v5210_v28 = vld [vmem:[#allocation2 + $0x144] ss:$8 sps:$4 sm:$0xff]  }
  0x91   :  { %v1640_v48 = vsel %vm5470_vm6, %v4871_v36, %v1639_v60  ;;  %v1643_v17 = vsel %vm5470_vm6, %v1641_v38, %v1642_v1  ;;  %v4872_v54 = vrot.slane %v5719_v18, 9  ;;  %v1649_v33 = vrot.slane %v5754_v5, 5  ;;  %v5203_v60 = vld [vmem:[#allocation2 + $0xc4] ss:$8 sps:$4 sm:$0xff]  }
  0x92   :  { %v4875_v49 = vcombine.low %v1640_v48, %v1643_v17  ;;  %v4928_v55 = vrot.slane %v5744_v56, 9  ;;  %v2774_v62 = vrot.slane %v2772_v53, 4  ;;  %v2775_v2 = vrot.slane %v5778_v31, 5 }
  0x93   :  { %v2779_v31 = vrot.slane %v5788_v41, 5  ;;  %v2786_v57 = vrot.slane %v5823_v29, 5  ;;  %v4914_v19 = vcombine.low %v5744_v56, %v5749_v61  ;;  %v2789_v56 = vrot.slane %v5853_v44, 5  ;;  %v5190_v61 = vld [vmem:[#allocation2 + $0xa0] ss:$8 sps:$4 sm:$0xff]  }
  0x94   :  { %4868 = vmatmul.mubr.msk.bf16.gmra.mxu1 %vm197_vm2, %v4858_v37  ;;  %v5172_v37 = vld [vmem:[#allocation2 + $0x14] ss:$8 sps:$4 sm:$0xff]   ;;  %v2773_v5 = vsel %vm5470_vm6, %v4928_v55, %v2772_v53  ;;  %v2776_v14 = vsel %vm5470_vm6, %v2774_v62, %v2775_v2  ;;  %v2793_v1 = vrot.slane %v5864_v45, 5 }
  0x95   :  { %2590 = vmatprep.mubr.bf16.mxu1 %v5299_v0  ;;  %v5199_v44 = vld [vmem:[#allocation2 + $0x94] ss:$8 sps:$4 sm:$0xff]  }
  0x96   :  { %v2795_v48 = vrot.slane %v2793_v1, 4 }
  0x97   :  { %4854 = vmatmul.mubr.msk.bf16.gmra.mxu0 %vm197_vm2, %v4844_v23  ;;  %v5891_v23 = vld [vmem:[%s7153_s0 + $0x74] sm:$0x1] }
  0x98   :  { %1744 = vmatprep.mubr.bf16.mxu0 %v5299_v0  ;;  %v2494_v59 = vshll.u32 %v5891_v23, 16  ;;  %v2796_v17 = vrot.slane %v5891_v23, 5  ;;  %v5991_v23 = vld [vmem:[%s7153_s0 + $0x5c] sm:$0x1] }
  0x9a   :  { %v2496_v52 = vrot.slane %v2494_v59, 5  ;;  %v4915_v59 = vcombine.low %v5783_v9, %v5788_v41  ;;  %v5197_v41 = vld [vmem:[#allocation2 + $0x90] ss:$8 sps:$4 sm:$0xff]  }
  0x9c   :  { %4910 = vmatmul.mubr.msk.bf16.vlgmr.msra.gmra.mxu1 %vm197_vm2, %v4900_v25  ;;  %v2463_v25 = vsel %vm5372_vm3, %v2458_v12, %v5847_v42  ;;  %v5185_v42 = vld [vmem:[#allocation2 + $0xb4] ss:$8 sps:$4 sm:$0xff]   ;;  %v2497_v51 = vsel %vm5372_vm3, %v2492_v46, %v2496_v52  ;;  %v2782_v12 = vrot.slane %v5810_v63, 5  ;;  %v5193_v63 = vld [vmem:[#allocation2 + $0xd0] ss:$8 sps:$4 sm:$0xff]   ;;  %v4931_v52 = vrot.slane %v5859_v8, 9 }
  0x9d   :  { %2869 = vmatpush1.bf16.msra.mxu1 %v5167_v43  ;;  %2600 = vmatprep.mubr.bf16.mxu1 %v5299_v0  ;;  %v5176_v43 = vld [vmem:[#allocation2] ss:$8 sps:$4 sm:$0xff]  }
  0x9e   :  { %2870 = vmatprep.subr.bf16.mxu1 %v5175_v58  ;;  %v2482_v58 = vrot.slane %v2481_v26, 4  ;;  %v5959_v26 = vld [vmem:[%s7153_s0 + $0x58] sm:$0xf]  ;;  %v2794_v55 = vsel %vm5470_vm6, %v4931_v52, %v2793_v1 }
  0x9f   :  { %4883 = vmatmul.mubr.msk.bf16.vlgmr.msra.gmra.mxu0 %vm197_vm2, %v4873_v47  ;;  %v4902_v47 = vcombine.low %v2463_v25, %v2473_v10  ;;  %v5201_v25 = vld [vmem:[#allocation2 + $0xc0] ss:$8 sps:$4 sm:$0xff]   ;;  %v5954_v10 = vld [vmem:[%s7153_s0 + $0x54] sm:$0xf]  ;;  %v6047_v1 = vld [vmem:[%s7153_s0 + $0x78] sm:$0xf] }
  0xa0   :  { %2704 = vmatpush1.bf16.msra.mxu0 %v5164_v4  ;;  %1754 = vmatprep.mubr.bf16.mxu0 %v5299_v0  ;;  %v2487_v50 = vsel %vm5372_vm3, %v2482_v58, %v2486_v21  ;;  %v1647_v4 = vsel %vm5470_vm6, %v4872_v54, %v1646_v27  ;;  %v5207_v58 = vld [vmem:[#allocation2 + $0x114] ss:$8 sps:$4 sm:$0xff]   ;;  %v5985_v54 = vld [vmem:[%s7153_s0 + $0x64] sm:$0xf] }
  0xa1   :  { %2871 = vmatpush1.bf16.msra.mxu1 %v5173_v39  ;;  %2705 = vmatprep.subr.bf16.mxu0 %v5172_v37  ;;  %v1648_v39 = vrot.slane %v1646_v27, 4  ;;  %v4903_v40 = vcombine.low %v2487_v50, %v2497_v51  ;;  %v4932_v37 = vcombine.low %v2773_v5, %v2776_v14  ;;  %v5979_v27 = vld [vmem:[%s7153_s0 + $0x60] sm:$0xf]  ;;  %v3155_v62 = vshrl.u32 %v5985_v54, 16 }
  0xa2   :  { %2872 = vmatprep.subr.bf16.mxu1 %v5181_v13  ;;  %v5186_v13 = vld [vmem:[#allocation2 + $0xe0] ss:$8 sps:$4 sm:$0xff]   ;;  %v3151_v2 = vshll.u32 %v5985_v54, 16  ;;  %v3137_v5 = vshll.u32 %v5991_v23, 16 }
  0xa3   :  { %v1650_v6 = vsel %vm5470_vm6, %v1648_v39, %v1649_v33  ;;  %v3142_v39 = vshrl.u32 %v5979_v27, 16  ;;  %v3145_v33 = vshll.u32 %v5979_v27, 16 }
  0xa4   :  { %4911 = vmatmul.mubr.msk.bf16.gmra.mxu1 %vm197_vm2, %v4901_v7  ;;  %2706 = vmatpush1.bf16.msra.mxu0 %v5170_v11  ;;  %v4876_v18 = vcombine.low %v1647_v4, %v1650_v6  ;;  %v4929_v7 = vrot.slane %v5783_v9, 9  ;;  %v2781_v11 = vrot.slane %v2779_v31, 4  ;;  %v3127_v9 = vshll.u32 %v5959_v26, 16 }
  0xa5   :  { %2610 = vmatprep.mubr.bf16.mxu1 %v5299_v0  ;;  %2873 = vmatpush1.bf16.msra.mxu1 %v5179_v22  ;;  %v5192_v22 = vld [vmem:[#allocation2 + $0xa4] ss:$8 sps:$4 sm:$0xff]   ;;  %v2797_v4 = vsel %vm5470_vm6, %v2795_v48, %v2796_v17  ;;  %v3144_v14 = vrot.slane %v3142_v39, 4  ;;  %v3190_v48 = vshrl.u32 %v6047_v1, 16  ;;  %v5215_v17 = vld [vmem:[#allocation2 + $0x130] ss:$8 sps:$4 sm:$0xff]  }
  0xa6   :  { %3283 = vmatprep.subr.bf16.mxu1 %v5188_v24  ;;  %2707 = vmatprep.subr.bf16.mxu0 %v5178_v32  ;;  %v2780_v20 = vsel %vm5470_vm6, %v4929_v7, %v2779_v31  ;;  %v2783_v21 = vsel %vm5470_vm6, %v2781_v11, %v2782_v12  ;;  %v4930_v32 = vrot.slane %v5818_v15, 9  ;;  %v3129_v51 = vrot.slane %v3127_v9, 5  ;;  %v6009_v31 = vld [vmem:[%s7153_s0 + $0x68] sm:$0x1]  ;;  %v5205_v39 = vld [vmem:[#allocation2 + $0x110] ss:$8 sps:$4 sm:$0xff]  }
  0xa7   :  { %4884 = vmatmul.mubr.msk.bf16.gmra.mxu0 %vm197_vm2, %v4874_v34  ;;  %v4933_v24 = vcombine.low %v2780_v20, %v2783_v21  ;;  %v2788_v34 = vrot.slane %v2786_v57, 4  ;;  %v3139_v12 = vrot.slane %v3137_v5, 5  ;;  %v3161_v20 = vshll.u32 %v6009_v31, 16 }
  0xa8   :  { %1764 = vmatprep.mubr.bf16.mxu0 %v5299_v0  ;;  %2708 = vmatpush1.bf16.msra.mxu0 %v5176_v43  ;;  %v2787_v36 = vsel %vm5470_vm6, %v4930_v32, %v2786_v57  ;;  %v3118_v43 = vshrl.u32 %v5954_v10, 16  ;;  %v6021_v57 = vld [vmem:[%s7153_s0 + $0x70] sm:$0xf]  ;;  %v4917_v21 = vcombine.low %v5859_v8, %v5864_v45 }
  0xa9   :  { %3038 = vmatprep.subr.bf16.mxu0 %v5185_v42  ;;  %v2790_v38 = vsel %vm5470_vm6, %v2788_v34, %v2789_v56  ;;  %v3121_v42 = vshll.u32 %v5954_v10, 16  ;;  %v3179_v32 = vshrl.u32 %v6021_v57, 16  ;;  %v3175_v34 = vshll.u32 %v6021_v57, 16 }
  0xaa   :  { %v4934_v46 = vcombine.low %v2787_v36, %v2790_v38  ;;  %v3163_v45 = vrot.slane %v3161_v20, 5  ;;  %v5232_v20 = vld [vmem:[#allocation2 + $0x1a4] ss:$8 sps:$4 sm:$0xff]  }
  0xab   :  { %v3123_v50 = vrot.slane %v3121_v42, 5  ;;  %v6042_v36 = vrot.slane %v3175_v34, 5  ;;  %v3181_v38 = vrot.slane %v3179_v32, 4  ;;  %v6053_v42 = vld [vmem:[%s7153_s0 + $0x7c] sm:$0xf] }
  0xac   :  { %4912 = vmatmul.mubr.msk.bf16.gmra.mxu1 %vm197_vm2, %v4902_v47  ;;  %v3131_v47 = vshrl.u32 %v5959_v26, 16 }
  0xad   :  { %2620 = vmatprep.mubr.bf16.mxu1 %v5299_v0 }
  0xae   :  { %v3133_v53 = vrot.slane %v3131_v47, 4  ;;  %v4958_v47 = vcombine.low %v5954_v10, %v5959_v26 }
  0xaf   :  { %4885 = vmatmul.mubr.msk.bf16.gmra.mxu0 %vm197_vm2, %v4875_v49  ;;  %v3120_v49 = vrot.slane %v3118_v43, 4  ;;  %v5217_v43 = vld [vmem:[#allocation2 + $0x134] ss:$8 sps:$4 sm:$0xff]  }
  0xb0   :  { %1774 = vmatprep.mubr.bf16.mxu0 %v5299_v0 }
  0xb1   :  { %v3124_v6 = vor.u32 %v3123_v50, %v3120_v49  ;;  %v3182_v49 = vor.u32 %v3181_v38, %v6042_v36  ;;  %v3193_v50 = vshll.u32 %v6047_v1, 16 }
  0xb3   :  { %v3125_v7 = vrot.slane %v3124_v6, 4 }
  0xb4   :  { %4913 = vmatmul.mubr.msk.bf16.gmra.mxu1 %vm197_vm2, %v4903_v40  ;;  %v4916_v40 = vcombine.low %v5818_v15, %v5823_v29  ;;  %v3147_v15 = vrot.slane %v3145_v33, 5  ;;  %v4935_v29 = vcombine.low %v2794_v55, %v2797_v4  ;;  %v5225_v55 = vld [vmem:[#allocation2 + $0x124] ss:$8 sps:$4 sm:$0xff]  }
  0xb5   :  { %2890 = vmatprep.mubr.bf16.mxu1 %v5299_v0 }
  0xb7   :  { %4886 = vmatmul.mubr.msk.bf16.gmra.mxu0 %vm197_vm2, %v4876_v18  ;;  %v3134_v18 = vor.u32 %v3133_v53, %v3129_v51  ;;  %v3199_v53 = vshll.u32 %v6053_v42, 16 }
  0xb8   :  { %2725 = vmatprep.mubr.bf16.mxu0 %v5299_v0 }
  0xb9   :  { %v3135_v11 = vrot.slane %v3134_v18, 4  ;;  %v3192_v18 = vrot.slane %v3190_v48, 4 }
  0xbc   :  { %4942 = vmatmul.mubr.msk.bf16.vlgmr.msra.gmra.mxu1 %vm197_vm2, %v4932_v37  ;;  %v3153_v37 = vrot.slane %v3151_v2, 5 }
  0xbd   :  { %3284 = vmatpush1.bf16.msra.mxu1 %v5186_v13  ;;  %2900 = vmatprep.mubr.bf16.mxu1 %v5299_v0  ;;  %v3157_v13 = vrot.slane %v3155_v62, 4 }
  0xbe   :  { %3285 = vmatprep.subr.bf16.mxu1 %v5195_v16  ;;  %v6015_v16 = vld [vmem:[%s7153_s0 + $0x6c] sm:$0xf] }
  0xbf   :  { %4924 = vmatmul.mubr.msk.bf16.vlgmr.msra.gmra.mxu0 %vm197_vm2, %v4914_v19  ;;  %v3148_v19 = vor.u32 %v3147_v15, %v3144_v14  ;;  %v3183_v14 = vrot.slane %v3182_v49, 4  ;;  %v3195_v15 = vrot.slane %v3193_v50, 5 }
  0xc0   :  { %3039 = vmatpush1.bf16.msra.mxu0 %v5183_v30  ;;  %2735 = vmatprep.mubr.bf16.mxu0 %v5299_v0  ;;  %v3166_v30 = vshrl.u32 %v6015_v16, 16 }
  0xc1   :  { %3286 = vmatpush1.bf16.msra.mxu1 %v5193_v63  ;;  %3040 = vmatprep.subr.bf16.mxu0 %v5192_v22  ;;  %v3158_v63 = vor.u32 %v3157_v13, %v3153_v37  ;;  %v3169_v22 = vshll.u32 %v6015_v16, 16  ;;  %v3149_v8 = vrot.slane %v3148_v19, 4  ;;  %v5223_v13 = vld [vmem:[#allocation2 + $0x120] ss:$8 sps:$4 sm:$0xff]  }
  0xc2   :  { %3287 = vmatprep.subr.bf16.mxu1 %v5203_v60  ;;  %v3130_v60 = vsel %vm5372_vm3, %v3125_v7, %v3129_v51  ;;  %v3203_v51 = vshrl.u32 %v6053_v42, 16  ;;  %v6076_v19 = vld [vmem:[%s7153_s0 + $0x80] sm:$0x1] }
  0xc3   :  { %v3154_v9 = vsel %vm5372_vm3, %v3149_v8, %v3153_v37  ;;  %v3196_v8 = vor.u32 %v3195_v15, %v3192_v18 }
  0xc4   :  { %4943 = vmatmul.mubr.msk.bf16.gmra.mxu1 %vm197_vm2, %v4933_v24  ;;  %3041 = vmatpush1.bf16.msra.mxu0 %v5190_v61  ;;  %v3140_v24 = vsel %vm5372_vm3, %v3135_v11, %v3139_v12  ;;  %v5208_v61 = vld [vmem:[#allocation2 + $0x140] ss:$8 sps:$4 sm:$0xff]   ;;  %v3205_v37 = vrot.slane %v3203_v51, 4 }
  0xc5   :  { %2910 = vmatprep.mubr.bf16.mxu1 %v5299_v0  ;;  %3288 = vmatpush1.bf16.msra.mxu1 %v5201_v25  ;;  %v4972_v56 = vcombine.low %v3130_v60, %v3140_v24  ;;  %v3159_v25 = vrot.slane %v3158_v63, 4  ;;  %v5212_v12 = vld [vmem:[#allocation2 + $0x100] ss:$8 sps:$4 sm:$0xff]   ;;  %v5221_v63 = vld [vmem:[#allocation2 + $0xf4] ss:$8 sps:$4 sm:$0xff]   ;;  %v4959_v60 = vcombine.low %v5979_v27, %v5985_v54 }
  0xc6   :  { %3634 = vmatprep.subr.bf16.mxu1 %v5210_v28  ;;  %3042 = vmatprep.subr.bf16.mxu0 %v5199_v44  ;;  %v3168_v28 = vrot.slane %v3166_v30, 4  ;;  %v3171_v44 = vrot.slane %v3169_v22, 5 }
  0xc7   :  { %4925 = vmatmul.mubr.msk.bf16.gmra.mxu0 %vm197_vm2, %v4915_v59  ;;  %v6040_v59 = vld [vmem:[%s7153_s0 + $0x74] sm:$0x1] }
  0xc8   :  { %2745 = vmatprep.mubr.bf16.mxu0 %v5299_v0  ;;  %3043 = vmatpush1.bf16.msra.mxu0 %v5197_v41  ;;  %v3185_v52 = vshll.u32 %v6040_v59, 16 }
  0xc9   :  { %3464 = vmatprep.subr.bf16.mxu0 %v5207_v58  ;;  %v3164_v58 = vsel %vm5372_vm3, %v3159_v25, %v3163_v45 }
  0xca   :  { %v4973_v2 = vcombine.low %v3154_v9, %v3164_v58  ;;  %v3187_v6 = vrot.slane %v3185_v52, 5 }
  0xcc   :  { %4944 = vmatmul.mubr.msk.bf16.gmra.mxu1 %vm197_vm2, %v4934_v46  ;;  %v3172_v46 = vor.u32 %v3171_v44, %v3168_v28  ;;  %v3188_v34 = vsel %vm5372_vm3, %v3183_v14, %v3187_v6  ;;  %v5219_v28 = vld [vmem:[#allocation2 + $0xf0] ss:$8 sps:$4 sm:$0xff]  }
  0xcd   :  { %2920 = vmatprep.mubr.bf16.mxu1 %v5299_v0 }
  0xce   :  { %v3173_v4 = vrot.slane %v3172_v46, 4 }
  0xcf   :  { %4926 = vmatmul.mubr.msk.bf16.gmra.mxu0 %vm197_vm2, %v4916_v40  ;;  %v5214_v40 = vld [vmem:[#allocation2 + $0x104] ss:$8 sps:$4 sm:$0xff]  }
  0xd0   :  { %2755 = vmatprep.mubr.bf16.mxu0 %v5299_v0  ;;  %v3178_v24 = vsel %vm5372_vm3, %v3173_v4, %v6042_v36  ;;  %v5229_v36 = vld [vmem:[#allocation2 + $0x174] ss:$8 sps:$4 sm:$0xff]  }
  0xd4   :  { %4945 = vmatmul.mubr.msk.bf16.gmra.mxu1 %vm197_vm2, %v4935_v29  ;;  %v3201_v29 = vrot.slane %v3199_v53, 5  ;;  %v4960_v53 = vcombine.low %v6015_v16, %v6021_v57 }
  0xd5   :  { %3305 = vmatprep.mubr.bf16.mxu1 %v5299_v0 }
  0xd6   :  { %v3206_v45 = vor.u32 %v3205_v37, %v3201_v29 }
  0xd7   :  { %4927 = vmatmul.mubr.msk.bf16.gmra.mxu0 %vm197_vm2, %v4917_v21 }
  0xd8   :  { %3060 = vmatprep.mubr.bf16.mxu0 %v5299_v0  ;;  %v3207_v58 = vrot.slane %v3206_v45, 4 }
  0xdc   :  { %v379_v41 = vpop.f32.mrf.mxu1  ;;  %4982 = vmatmul.mubr.msk.bf16.vlgmr.msra.gmra.mxu1 %vm197_vm2, %v4972_v56  ;;  %v3209_v56 = vshll.u32 %v6076_v19, 16 }
  0xdd   :  { %3635 = vmatpush1.bf16.msra.mxu1 %v5208_v61  ;;  %3315 = vmatprep.mubr.bf16.mxu1 %v5299_v0 }
  0xde   :  { %v381_v33 = vpop.f32.mrf.mxu1  ;;  %3636 = vmatprep.subr.bf16.mxu1 %v5217_v43  ;;  %v3211_v46 = vrot.slane %v3209_v56, 5 }
  0xdf   :  { %v244_v5 = vpop.f32.mrf.mxu0  ;;  %4968 = vmatmul.mubr.msk.bf16.vlgmr.msra.gmra.mxu0 %vm197_vm2, %v4958_v47  ;;  %v4974_v47 = vcombine.low %v3178_v24, %v3188_v34 }
  0xe0   :  { %v383_v62 = vpop.f32.mrf.mxu1  ;;  %v6070_v7 = vadd.f32 %v379_v41, %v244_v5  ;;  %3465 = vmatpush1.bf16.msra.mxu0 %v5205_v39  ;;  %3070 = vmatprep.mubr.bf16.mxu0 %v5299_v0  ;;  %v3197_v41 = vrot.slane %v3196_v8, 4  ;;  %v3368_v5 = vrot.slane %v5959_v26, 5  ;;  %v6126_v26 = vld [vmem:[%s7153_s0 + $0x60] sm:$0xf] }
  0xe1   :  { %3637 = vmatpush1.bf16.msra.mxu1 %v5215_v17  ;;  %v246_v21 = vpop.f32.mrf.mxu0  ;;  %3466 = vmatprep.subr.bf16.mxu0 %v5214_v40 }
  0xe2   :  { %v385_v11 = vpop.f32.mrf.mxu1  ;;  %3638 = vmatprep.subr.bf16.mxu1 %v5225_v55  ;;  %v6078_v30 = vadd.f32 %v381_v33, %v246_v21  ;;  %v3202_v39 = vsel %vm5372_vm3, %v3197_v41, %v3201_v29  ;;  %v3212_v33 = vsel %vm5372_vm3, %v3207_v58, %v3211_v46  ;;  %v4986_v21 = vrot.slane %v5954_v10, 9  ;;  %v6157_v46 = vld [vmem:[%s7153_s0 + $0x6c] sm:$0xf] }
  0xe3   :  { %v248_v32 = vpop.f32.mrf.mxu0  ;;  %v4975_v6 = vcombine.low %v3202_v39, %v3212_v33  ;;  %v5227_v39 = vld [vmem:[#allocation2 + $0x170] ss:$8 sps:$4 sm:$0xff]  }
  0xe4   :  { %v389_v22 = vpop.f32.mrf.mxu1  ;;  %4983 = vmatmul.mubr.msk.bf16.gmra.mxu1 %vm197_vm2, %v4973_v2  ;;  %v6090_v61 = vadd.f32 %v383_v62, %v248_v32  ;;  %3467 = vmatpush1.bf16.msra.mxu0 %v5212_v12  ;;  %v4961_v12 = vcombine.low %v6047_v1, %v6053_v42 }
  0xe5   :  { %3325 = vmatprep.mubr.bf16.mxu1 %v5299_v0  ;;  %3639 = vmatpush1.bf16.msra.mxu1 %v5223_v13  ;;  %v250_v44 = vpop.f32.mrf.mxu0 }
  0xe6   :  { %v391_v25 = vpop.f32.mrf.mxu1  ;;  %4060 = vmatprep.subr.bf16.mxu1 %v5232_v20  ;;  %3468 = vmatprep.subr.bf16.mxu0 %v5221_v63  ;;  %v6092_v38 = vadd.f32 %v385_v11, %v250_v44  ;;  %v6131_v20 = vld [vmem:[%s7153_s0 + $0x64] sm:$0xf]  ;;  %v3370_v63 = vrot.slane %v3368_v5, 4 }
  0xe7   :  { %v254_v9 = vpop.f32.mrf.mxu0  ;;  %4969 = vmatmul.mubr.msk.bf16.gmra.mxu0 %vm197_vm2, %v4959_v60  ;;  %v5016_v45 = vcombine.low %v6126_v26, %v6131_v20 }
  0xe8   :  { %v393_v43 = vpop.f32.mrf.mxu1  ;;  %v6095_v52 = vadd.f32 %v389_v22, %v254_v9  ;;  %3080 = vmatprep.mubr.bf16.mxu0 %v5299_v0  ;;  %3469 = vmatpush1.bf16.msra.mxu0 %v5219_v28  ;;  %v3371_v22 = vrot.slane %v5991_v23, 5  ;;  %v3375_v28 = vrot.slane %v5985_v54, 5  ;;  %v3369_v23 = vsel %vm5470_vm6, %v4986_v21, %v3368_v5 }
  0xe9   :  { %v256_v17 = vpop.f32.mrf.mxu0  ;;  %3879 = vmatprep.subr.bf16.mxu0 %v5229_v36 }
  0xea   :  { %v395_v48 = vpop.f32.mrf.mxu1  ;;  %v6098_v49 = vadd.f32 %v391_v25, %v256_v17  ;;  %v5230_v25 = vld [vmem:[#allocation2 + $0x1a0] ss:$8 sps:$4 sm:$0xff]   ;;  %v3372_v36 = vsel %vm5470_vm6, %v3370_v63, %v3371_v22  ;;  %v5237_v17 = vld [vmem:[#allocation2 + $0x190] ss:$8 sps:$4 sm:$0xff]  }
  0xeb   :  { %v258_v51 = vpop.f32.mrf.mxu0  ;;  %v4990_v54 = vcombine.low %v3369_v23, %v3372_v36  ;;  %v5234_v63 = vld [vmem:[#allocation2 + $0x160] ss:$8 sps:$4 sm:$0xff]  }
  0xec   :  { %v399_v50 = vpop.f32.mrf.mxu1  ;;  %4984 = vmatmul.mubr.msk.bf16.gmra.mxu1 %vm197_vm2, %v4974_v47  ;;  %v6108_v40 = vadd.f32 %v393_v43, %v258_v51  ;;  %v5239_v43 = vld [vmem:[#allocation2 + $0x194] ss:$8 sps:$4 sm:$0xff]   ;;  %v3378_v51 = vrot.slane %v6009_v31, 5  ;;  %v3382_v31 = vrot.slane %v6021_v57, 5 }
  0xed   :  { %3335 = vmatprep.mubr.bf16.mxu1 %v5299_v0  ;;  %v260_v62 = vpop.f32.mrf.mxu0 }
  0xee   :  { %v401_v55 = vpop.f32.mrf.mxu1  ;;  %v6110_v2 = vadd.f32 %v395_v48, %v260_v62  ;;  %v6162_v48 = vld [vmem:[%s7153_s0 + $0x70] sm:$0xf]  ;;  %v3384_v36 = vrot.slane %v3382_v31, 4 }
  0xef   :  { %v264_v18 = vpop.f32.mrf.mxu0  ;;  %4970 = vmatmul.mubr.msk.bf16.gmra.mxu0 %vm197_vm2, %v4960_v53 }
  0xf0   :  { %v403_v4 = vpop.f32.mrf.mxu1  ;;  %v6114_v14 = vadd.f32 %v399_v50, %v264_v18  ;;  %3090 = vmatprep.mubr.bf16.mxu0 %v5299_v0  ;;  %v4987_v50 = vrot.slane %v5979_v27, 9  ;;  %v5245_v27 = vld [vmem:[#allocation2 + $0x180] ss:$8 sps:$4 sm:$0xff]  }
  0xf1   :  { %v266_v29 = vpop.f32.mrf.mxu0 }
  0xf2   :  { %v405_v15 = vpop.f32.mrf.mxu1  ;;  %v6117_v37 = vadd.f32 %v401_v55, %v266_v29  ;;  %v3377_v55 = vrot.slane %v3375_v28, 4 }
  0xf3   :  { %v268_v11 = vpop.f32.mrf.mxu0 }
  0xf4   :  { %v409_v13 = vpop.f32.mrf.mxu1  ;;  %4985 = vmatmul.mubr.msk.bf16.gmra.mxu1 %vm197_vm2, %v4975_v6  ;;  %v6135_v60 = vadd.f32 %v403_v4, %v268_v11  ;;  %v5236_v4 = vld [vmem:[#allocation2 + $0x164] ss:$8 sps:$4 sm:$0xff]   ;;  %v3379_v21 = vsel %vm5470_vm6, %v3377_v55, %v3378_v51 }
  0xf5   :  { %3656 = vmatprep.mubr.bf16.mxu1 %v5299_v0  ;;  %v270_v32 = vpop.f32.mrf.mxu0  ;;  %v5247_v6 = vld [vmem:[#allocation2 + $0x184] ss:$8 sps:$4 sm:$0xff]  }
  0xf6   :  { %v411_v24 = vpop.f32.mrf.mxu1  ;;  %v6137_v34 = vadd.f32 %v405_v15, %v270_v32  ;;  %v5017_v15 = vcombine.low %v6157_v46, %v6162_v48 }
  0xf7   :  { %v274_v56 = vpop.f32.mrf.mxu0  ;;  %4971 = vmatmul.mubr.msk.bf16.gmra.mxu0 %vm197_vm2, %v4961_v12  ;;  %v3376_v12 = vsel %vm5470_vm6, %v4987_v50, %v3375_v28  ;;  %v6190_v28 = vld [vmem:[%s7153_s0 + $0x78] sm:$0xf] }
  0xf8   :  { %v413_v8 = vpop.f32.mrf.mxu1  ;;  %v6143_v10 = vadd.f32 %v409_v13, %v274_v56  ;;  %3486 = vmatprep.mubr.bf16.mxu0 %v5299_v0 }
  0xf9   :  { %v276_v47 = vpop.f32.mrf.mxu0 }
  0xfa   :  { %v415_v44 = vpop.f32.mrf.mxu1  ;;  %v6150_v9 = vadd.f32 %v411_v24, %v276_v47  ;;  %v5243_v24 = vld [vmem:[#allocation2 + $0x154] ss:$8 sps:$4 sm:$0xff]   ;;  %v3714_v47 = vshrl.u32 %v6126_v26, 16 }
  0xfb   :  { %v278_v58 = vpop.f32.mrf.mxu0 }
  0xfc   :  { %v719_v41 = vpop.f32.mrf.mxu1  ;;  %5026 = vmatmul.mubr.msk.bf16.vlgmr.msra.gmra.mxu1 %vm197_vm2, %v5016_v45  ;;  %v6166_v53 = vadd.f32 %v413_v8, %v278_v58  ;;  %v4988_v8 = vrot.slane %v6015_v16, 9  ;;  %v3385_v45 = vrot.slane %v6040_v59, 5  ;;  %v3727_v58 = vshrl.u32 %v6131_v20, 16 }
  0xfd   :  { %4061 = vmatpush1.bf16.msra.mxu1 %v5230_v25  ;;  %3666 = vmatprep.mubr.bf16.mxu1 %v5299_v0  ;;  %v280_v62 = vpop.f32.mrf.mxu0  ;;  %v4991_v25 = vcombine.low %v3376_v12, %v3379_v21 }
  0xfe   :  { %v721_v33 = vpop.f32.mrf.mxu1  ;;  %4062 = vmatprep.subr.bf16.mxu1 %v5239_v43  ;;  %v6168_v18 = vadd.f32 %v415_v44, %v280_v62  ;;  %v3389_v44 = vrot.slane %v6053_v42, 5  ;;  %v5241_v43 = vld [vmem:[#allocation2 + $0x150] ss:$8 sps:$4 sm:$0xff]   ;;  %v3383_v62 = vsel %vm5470_vm6, %v4988_v8, %v3382_v31 }
  0xff   :  { %v548_v29 = vpop.f32.mrf.mxu0  ;;  %5000 = vmatmul.mubr.msk.bf16.vlgmr.msra.gmra.mxu0 %vm197_vm2, %v4990_v54 }
 0x100   :  { %v723_v5 = vpop.f32.mrf.mxu1  ;;  %v587_v13 = vadd.f32 %v548_v29, %v6070_v7  ;;  %3880 = vmatpush1.bf16.msra.mxu0 %v5227_v39  ;;  %3496 = vmatprep.mubr.bf16.mxu0 %v5299_v0  ;;  %v4989_v39 = vrot.slane %v6047_v1, 9  ;;  %v3391_v1 = vrot.slane %v3389_v44, 4  ;;  %v6229_v29 = vld [vmem:[%s7153_s0 + $0x88] sm:$0xf] }
 0x101   :  { %4063 = vmatpush1.bf16.msra.mxu1 %v5237_v17  ;;  %v550_v22 = vpop.f32.mrf.mxu0  ;;  %3881 = vmatprep.subr.bf16.mxu0 %v5236_v4  ;;  %v3723_v17 = vshll.u32 %v6131_v20, 16 }
 0x102   :  { %v725_v11 = vpop.f32.mrf.mxu1  ;;  %4064 = vmatprep.subr.bf16.mxu1 %v5247_v6  ;;  %v6180_v32 = vadd.f32 %v719_v41, %v587_v13  ;;  %v588_v57 = vadd.f32 %v550_v22, %v6078_v30  ;;  %v6195_v30 = vld [vmem:[%s7153_s0 + $0x7c] sm:$0xf]  ;;  %v3717_v41 = vshll.u32 %v6126_v26, 16  ;;  %v3729_v13 = vrot.slane %v3727_v58, 4 }
 0x103   :  { %v552_v56 = vpop.f32.mrf.mxu0  ;;  %v6231_v31 = vrot.slane %v3723_v17, 5  ;;  %v3964_v22 = vrot.slane %v6131_v20, 5  ;;  %v3390_v8 = vsel %vm5470_vm6, %v4989_v39, %v3389_v44  ;;  %v3741_v17 = vshll.u32 %v6157_v46, 16 }
 0x104   :  { %v729_v7 = vpop.f32.mrf.mxu1  ;;  %5027 = vmatmul.mubr.msk.bf16.gmra.mxu1 %vm197_vm2, %v5017_v15  ;;  %v6198_v16 = vadd.f32 %v721_v33, %v588_v57  ;;  %v589_v59 = vadd.f32 %v552_v56, %v6090_v61  ;;  %3882 = vmatpush1.bf16.msra.mxu0 %v5234_v63  ;;  %v5018_v61 = vcombine.low %v6190_v28, %v6195_v30  ;;  %v3392_v33 = vrot.slane %v6076_v19, 5  ;;  %v6224_v19 = vld [vmem:[%s7153_s0 + $0x84] sm:$0xf]  ;;  %v5006_v63 = vld [vmem:[%s7153_s0 + $0x68] sm:$0x1] }
 0x105   :  { %3676 = vmatprep.mubr.bf16.mxu1 %v5299_v0  ;;  %4065 = vmatpush1.bf16.msra.mxu1 %v5245_v27  ;;  %v554_v54 = vpop.f32.mrf.mxu0  ;;  %v3719_v27 = vrot.slane %v3717_v41, 5  ;;  %v3967_v58 = vrot.slane %v5006_v63, 5  ;;  %v3747_v39 = vshll.u32 %v6162_v48, 16 }
 0x106   :  { %v731_v23 = vpop.f32.mrf.mxu1  ;;  %3883 = vmatprep.subr.bf16.mxu0 %v5243_v24  ;;  %v6205_v50 = vadd.f32 %v723_v5, %v589_v59  ;;  %v590_v42 = vadd.f32 %v554_v54, %v6092_v38  ;;  %v3386_v38 = vsel %vm5470_vm6, %v3384_v36, %v3385_v45  ;;  %v3393_v56 = vsel %vm5470_vm6, %v3391_v1, %v3392_v33 }
 0x107   :  { %v558_v55 = vpop.f32.mrf.mxu0  ;;  %5001 = vmatmul.mubr.msk.bf16.gmra.mxu0 %vm197_vm2, %v4991_v25  ;;  %v4992_v57 = vcombine.low %v3383_v62, %v3386_v38  ;;  %v5019_v25 = vcombine.low %v6224_v19, %v6229_v29  ;;  %v3730_v36 = vor.u32 %v3729_v13, %v6231_v31  ;;  %v3738_v54 = vshrl.u32 %v6157_v46, 16 }
 0x108   :  { %v733_v51 = vpop.f32.mrf.mxu1  ;;  %v6215_v4 = vadd.f32 %v725_v11, %v590_v42  ;;  %v591_v6 = vadd.f32 %v558_v55, %v6095_v52  ;;  %3506 = vmatprep.mubr.bf16.mxu0 %v5299_v0  ;;  %3884 = vmatpush1.bf16.msra.mxu0 %v5241_v43  ;;  %v3716_v52 = vrot.slane %v3714_v47, 4  ;;  %v3733_v43 = vshll.u32 %v5006_v63, 16 }
 0x109   :  { %v560_v15 = vpop.f32.mrf.mxu0  ;;  %v5044_v47 = vrot.slane %v6126_v26, 9  ;;  %v3751_v42 = vshrl.u32 %v6162_v48, 16  ;;  %v3971_v1 = vrot.slane %v6162_v48, 5  ;;  %v3743_v63 = vrot.slane %v3741_v17, 5 }
 0x10a   :  { %v735_v5 = vpop.f32.mrf.mxu1  ;;  %v6233_v11 = vadd.f32 %v729_v7, %v591_v6  ;;  %v592_v12 = vadd.f32 %v560_v15, %v6098_v49  ;;  %v3720_v20 = vor.u32 %v3719_v27, %v3716_v52  ;;  %v3731_v6 = vrot.slane %v3730_v36, 4 }
 0x10b   :  { %v562_v24 = vpop.f32.mrf.mxu0  ;;  %v3735_v38 = vrot.slane %v3733_v43, 5  ;;  %v3753_v48 = vrot.slane %v3751_v42, 4 }
 0x10c   :  { %v739_v21 = vpop.f32.mrf.mxu1  ;;  %5028 = vmatmul.mubr.msk.bf16.gmra.mxu1 %vm197_vm2, %v5018_v61  ;;  %v6244_v7 = vadd.f32 %v731_v23, %v592_v12  ;;  %v593_v49 = vadd.f32 %v562_v24, %v6108_v40  ;;  %v3966_v40 = vrot.slane %v3964_v22, 4  ;;  %v3721_v62 = vrot.slane %v3720_v20, 4 }
 0x10d   :  { %3686 = vmatprep.mubr.bf16.mxu1 %v5299_v0  ;;  %v564_v59 = vpop.f32.mrf.mxu0  ;;  %v3740_v12 = vrot.slane %v3738_v54, 4  ;;  %v6275_v24 = vrot.slane %v3747_v39, 5  ;;  %v3973_v20 = vrot.slane %v3971_v1, 4 }
 0x10e   :  { %v741_v45 = vpop.f32.mrf.mxu1  ;;  %v6253_v41 = vadd.f32 %v733_v51, %v593_v49  ;;  %v594_v44 = vadd.f32 %v564_v59, %v6110_v2  ;;  %v4993_v2 = vcombine.low %v3390_v8, %v3393_v56  ;;  %v5009_v49 = vld [vmem:[%s7153_s0 + $0x74] sm:$0x1]  ;;  %v5045_v59 = vrot.slane %v6157_v46, 9 }
 0x10f   :  { %v568_v61 = vpop.f32.mrf.mxu0  ;;  %5002 = vmatmul.mubr.msk.bf16.gmra.mxu0 %vm197_vm2, %v4992_v57  ;;  %v3974_v36 = vrot.slane %v5009_v49, 5  ;;  %v3754_v54 = vor.u32 %v3753_v48, %v6275_v24  ;;  %v3775_v46 = vshrl.u32 %v6195_v30, 16  ;;  %v3786_v48 = vshrl.u32 %v6224_v19, 16 }
 0x110   :  { %v743_v23 = vpop.f32.mrf.mxu1  ;;  %v6261_v33 = vadd.f32 %v735_v5, %v594_v44  ;;  %v595_v26 = vadd.f32 %v568_v61, %v6114_v14  ;;  %3516 = vmatprep.mubr.bf16.mxu0 %v5299_v0  ;;  %v3965_v14 = vsel %vm5470_vm6, %v5044_v47, %v3964_v22  ;;  %v3968_v5 = vsel %vm5470_vm6, %v3966_v40, %v3967_v58 }
 0x111   :  { %v570_v55 = vpop.f32.mrf.mxu0  ;;  %v5048_v44 = vcombine.low %v3965_v14, %v3968_v5  ;;  %v3744_v58 = vor.u32 %v3743_v63, %v3740_v12  ;;  %v3755_v14 = vrot.slane %v3754_v54, 4  ;;  %v3777_v63 = vrot.slane %v3775_v46, 4 }
 0x112   :  { %v745_v51 = vpop.f32.mrf.mxu1  ;;  %v6266_v15 = vadd.f32 %v739_v21, %v595_v26  ;;  %v596_v52 = vadd.f32 %v570_v55, %v6117_v37  ;;  %v3762_v21 = vshrl.u32 %v6190_v28, 16  ;;  %v3765_v37 = vshll.u32 %v6190_v28, 16 }
 0x113   :  { %v572_v13 = vpop.f32.mrf.mxu0  ;;  %v3972_v26 = vsel %vm5470_vm6, %v5045_v59, %v3971_v1  ;;  %v3978_v1 = vrot.slane %v6195_v30, 5  ;;  %v5046_v59 = vrot.slane %v6190_v28, 9 }
 0x114   :  { %v749_v27 = vpop.f32.mrf.mxu1  ;;  %5029 = vmatmul.mubr.msk.bf16.gmra.mxu1 %vm197_vm2, %v5019_v25  ;;  %v6279_v57 = vadd.f32 %v741_v45, %v596_v52  ;;  %v597_v8 = vadd.f32 %v572_v13, %v6135_v60  ;;  %v3726_v25 = vsel %vm5372_vm3, %v3721_v62, %v6231_v31  ;;  %v3736_v60 = vsel %vm5372_vm3, %v3731_v6, %v3735_v38 }
 0x115   :  { %4082 = vmatprep.mubr.bf16.mxu1 %v5299_v0  ;;  %v574_v56 = vpop.f32.mrf.mxu0  ;;  %v3757_v31 = vshll.u32 %v5009_v49, 16  ;;  %v5030_v39 = vcombine.low %v3726_v25, %v3736_v60  ;;  %v3767_v6 = vrot.slane %v3765_v37, 5  ;;  %v3745_v52 = vrot.slane %v3744_v58, 4 }
 0x116   :  { %v751_v22 = vpop.f32.mrf.mxu1  ;;  %v6289_v43 = vadd.f32 %v743_v23, %v597_v8  ;;  %v598_v45 = vadd.f32 %v574_v56, %v6137_v34  ;;  %v3771_v34 = vshll.u32 %v6195_v30, 16  ;;  %v3799_v37 = vshrl.u32 %v6229_v29, 16  ;;  %v5012_v30 = vld [vmem:[%s7153_s0 + $0x80] sm:$0x1] }
 0x117   :  { %v578_v40 = vpop.f32.mrf.mxu0  ;;  %5003 = vmatmul.mubr.msk.bf16.gmra.mxu0 %vm197_vm2, %v4993_v2  ;;  %v3975_v2 = vsel %vm5470_vm6, %v3973_v20, %v3974_v36  ;;  %v3759_v5 = vrot.slane %v3757_v31, 5  ;;  %v3750_v36 = vsel %vm5372_vm3, %v3745_v52, %v6275_v24  ;;  %v3981_v60 = vrot.slane %v5012_v30, 5 }
 0x118   :  { %v753_v47 = vpop.f32.mrf.mxu1  ;;  %v6297_v17 = vadd.f32 %v745_v51, %v598_v45  ;;  %v599_v23 = vadd.f32 %v578_v40, %v6143_v10  ;;  %3901 = vmatprep.mubr.bf16.mxu0 %v5299_v0  ;;  %v3764_v10 = vrot.slane %v3762_v21, 4  ;;  %v3789_v21 = vshll.u32 %v6224_v19, 16 }
 0x119   :  { %v580_v61 = vpop.f32.mrf.mxu0  ;;  %v5049_v49 = vcombine.low %v3972_v26, %v3975_v2  ;;  %v3760_v45 = vsel %vm5372_vm3, %v3755_v14, %v3759_v5  ;;  %v3781_v40 = vshll.u32 %v5012_v30, 16  ;;  %v3795_v58 = vshll.u32 %v6229_v29, 16  ;;  %v5015_v14 = vld [vmem:[%s7153_s0 + $0x8c] sm:$0x1] }
 0x11a   :  { %v755_v42 = vpop.f32.mrf.mxu1  ;;  %v6306_v55 = vadd.f32 %v749_v27, %v599_v23  ;;  %v600_v51 = vadd.f32 %v580_v61, %v6150_v9  ;;  %v6319_v9 = vrot.slane %v3771_v34, 5  ;;  %v3768_v25 = vor.u32 %v3767_v6, %v3764_v10 }
 0x11b   :  { %v582_v38 = vpop.f32.mrf.mxu0  ;;  %v5031_v24 = vcombine.low %v3750_v36, %v3760_v45  ;;  %v3979_v23 = vsel %vm5470_vm6, %v5046_v59, %v3978_v1  ;;  %v3788_v61 = vrot.slane %v3786_v48, 4  ;;  %v3985_v26 = vrot.slane %v6229_v29, 5 }
 0x11c   :  { %v6309_v62 = vpop.f32.mrf.mxu1  ;;  %5058 = vmatmul.mubr.msk.bf16.vlgmr.msra.gmra.mxu1 %vm197_vm2, %v5048_v44  ;;  %v6314_v13 = vadd.f32 %v751_v22, %v600_v51  ;;  %v601_v27 = vadd.f32 %v582_v38, %v6166_v53  ;;  %v3778_v28 = vor.u32 %v3777_v63, %v6319_v9  ;;  %v3769_v46 = vrot.slane %v3768_v25, 4 }
 0x11d   :  { %4092 = vmatprep.mubr.bf16.mxu1 %v5299_v0  ;;  %v584_v8 = vpop.f32.mrf.mxu0  ;;  %v3783_v10 = vrot.slane %v3781_v40, 5  ;;  %v3797_v6 = vrot.slane %v3795_v58, 5  ;;  %v3801_v38 = vrot.slane %v3799_v37, 4  ;;  %v5047_v48 = vrot.slane %v6224_v19, 9 }
 0x11e   :  { %v6317_v12 = vpop.f32.mrf.mxu1  ;;  %v6327_v22 = vadd.f32 %v753_v47, %v601_v27  ;;  %v602_v53 = vadd.f32 %v584_v8, %v6168_v18  ;;  %v3980_v47 = vrot.slane %v3978_v1, 4  ;;  %v3779_v51 = vrot.slane %v3778_v28, 4 }
 0x11f   :  { %v6333_v20 = vpop.f32.mrf.mxu0  ;;  %5040 = vmatmul.mubr.msk.bf16.vlgmr.msra.gmra.mxu0 %vm197_vm2, %v5030_v39  ;;  %v3791_v39 = vrot.slane %v3789_v21, 5  ;;  %v3774_v1 = vsel %vm5372_vm3, %v3769_v46, %v6319_v9  ;;  %v3987_v21 = vrot.slane %v3985_v26, 4  ;;  %v3988_v37 = vrot.slane %v5015_v14, 5 }
 0x120   :  { %v6330_v56 = vpop.f32.mrf.mxu1  ;;  %v6341_v44 = vadd.f32 %v755_v42, %v602_v53  ;;  %3911 = vmatprep.mubr.bf16.mxu0 %v5299_v0  ;;  %v3982_v34 = vsel %vm5470_vm6, %v3980_v47, %v3981_v60  ;;  %v3784_v30 = vsel %vm5372_vm3, %v3779_v51, %v3783_v10  ;;  %v3802_v53 = vor.u32 %v3801_v38, %v3797_v6 }
 0x121   :  { %v6348_v54 = vpop.f32.mrf.mxu0  ;;  %v5050_v27 = vcombine.low %v3979_v23, %v3982_v34  ;;  %v3792_v29 = vor.u32 %v3791_v39, %v3788_v61  ;;  %v3805_v25 = vshll.u32 %v5015_v14, 16  ;;  %v5032_v47 = vcombine.low %v3774_v1, %v3784_v30 }
 0x122   :  { %v6343_v18 = vpop.f32.mrf.mxu1  ;;  %v3986_v60 = vsel %vm5470_vm6, %v5047_v48, %v3985_v26  ;;  %v3989_v28 = vsel %vm5470_vm6, %v3987_v21, %v3988_v37 }
 0x123   :  { %v6353_v42 = vpop.f32.mrf.mxu0  ;;  %v5051_v39 = vcombine.low %v3986_v60, %v3989_v28 }
 0x124   :  { %v1157_v31 = vpop.f32.mrf.mxu1  ;;  %5059 = vmatmul.mubr.msk.bf16.gmra.mxu1 %vm197_vm2, %v5049_v49 }
 0x125   :  { %4102 = vmatprep.mubr.bf16.mxu1 %v5299_v0  ;;  %v6359_v52 = vpop.f32.mrf.mxu0 }
 0x126   :  { %v1159_v2 = vpop.f32.mrf.mxu1 }
 0x127   :  { %v975_v63 = vpop.f32.mrf.mxu0  ;;  %5041 = vmatmul.mubr.msk.bf16.gmra.mxu0 %vm197_vm2, %v5031_v24  ;;  %v3807_v24 = vrot.slane %v3805_v25, 5 }
 0x128   :  { %v1161_v5 = vpop.f32.mrf.mxu1  ;;  %v1008_v8 = vadd.f32 %v975_v63, %v6233_v11  ;;  %3921 = vmatprep.mubr.bf16.mxu0 %v5299_v0  ;;  %v3793_v11 = vrot.slane %v3792_v29, 4 }
 0x129   :  { %v977_v9 = vpop.f32.mrf.mxu0 }
 0x12a   :  { %v1163_v49 = vpop.f32.mrf.mxu1  ;;  %v6373_v59 = vadd.f32 %v1157_v31, %v1008_v8  ;;  %v1009_v36 = vadd.f32 %v977_v9, %v6244_v7  ;;  %v3803_v7 = vrot.slane %v3802_v53, 4 }
 0x12b   :  { %v979_v19 = vpop.f32.mrf.mxu0 }
 0x12c   :  { %v1167_v45 = vpop.f32.mrf.mxu1  ;;  %5060 = vmatmul.mubr.msk.bf16.gmra.mxu1 %vm197_vm2, %v5050_v27  ;;  %v6382_v40 = vadd.f32 %v1159_v2, %v1009_v36  ;;  %v1010_v58 = vadd.f32 %v979_v19, %v6253_v41  ;;  %v3798_v41 = vsel %vm5372_vm3, %v3793_v11, %v3797_v6  ;;  %v3808_v10 = vsel %vm5372_vm3, %v3803_v7, %v3807_v24 }
 0x12d   :  { %4112 = vmatprep.mubr.bf16.mxu1 %v5299_v0  ;;  %v981_v46 = vpop.f32.mrf.mxu0  ;;  %v5033_v27 = vcombine.low %v3798_v41, %v3808_v10 }
 0x12e   :  { %v1169_v31 = vpop.f32.mrf.mxu1  ;;  %v6385_v23 = vadd.f32 %v1161_v5, %v1010_v58  ;;  %v1011_v34 = vadd.f32 %v981_v46, %v6261_v33 }
 0x12f   :  { %v985_v51 = vpop.f32.mrf.mxu0  ;;  %5042 = vmatmul.mubr.msk.bf16.gmra.mxu0 %vm197_vm2, %v5032_v47 }
 0x130   :  { %v1171_v61 = vpop.f32.mrf.mxu1  ;;  %v6389_v26 = vadd.f32 %v1163_v49, %v1011_v34  ;;  %v1012_v3 = vadd.f32 %v985_v51, %v6266_v15  ;;  %3931 = vmatprep.mubr.bf16.mxu0 %v5299_v0 }
 0x131   :  { %v987_v38 = vpop.f32.mrf.mxu0 }
 0x132   :  { %v1173_v2 = vpop.f32.mrf.mxu1  ;;  %v1194_v33 = vadd.f32 %v1167_v45, %v1012_v3  ;;  %v1013_v14 = vadd.f32 %v987_v38, %v6279_v57 }
 0x133   :  { %v989_v1 = vpop.f32.mrf.mxu0 }
 0x134   :  { %v1177_v5 = vpop.f32.mrf.mxu1  ;;  %5061 = vmatmul.mubr.msk.bf16.gmra.mxu1 %vm197_vm2, %v5051_v39  ;;  %v1195_v63 = vadd.f32 %v1169_v31, %v1013_v14  ;;  %v1014_v15 = vadd.f32 %v989_v1, %v6289_v43 }
 0x135   :  { %v991_v0 = vpop.f32.mrf.mxu0 }
 0x136   :  { %v1179_v29 = vpop.f32.mrf.mxu1  ;;  %v1196_v48 = vadd.f32 %v1171_v61, %v1014_v15  ;;  %v1015_v6 = vadd.f32 %v991_v0, %v6297_v17 }
 0x137   :  { %v995_v35 = vpop.f32.mrf.mxu0  ;;  %5043 = vmatmul.mubr.msk.bf16.gmra.mxu0 %vm197_vm2, %v5033_v27 }
 0x138   :  { %v1181_v21 = vpop.f32.mrf.mxu1  ;;  %v1197_v37 = vadd.f32 %v1173_v2, %v1015_v6  ;;  %v1016_v57 = vadd.f32 %v995_v35, %v6306_v55  ;;  %v1005_v35 = vadd.f32 %v6348_v54, %v6198_v16  ;;  %v1006_v16 = vadd.f32 %v6353_v42, %v6205_v50 }
 0x139   :  { %v997_v49 = vpop.f32.mrf.mxu0  ;;  %v1007_v54 = vadd.f32 %v6359_v52, %v6215_v4 }
 0x13a   :  { %v1183_v8 = vpop.f32.mrf.mxu1  ;;  %v1198_v30 = vadd.f32 %v1177_v5, %v1016_v57  ;;  %v1017_v53 = vadd.f32 %v997_v49, %v6314_v13  ;;  %v1188_v50 = vadd.f32 %v6330_v56, %v1006_v16 }
 0x13b   :  { %v999_v43 = vpop.f32.mrf.mxu0  ;;  %v1189_v4 = vadd.f32 %v6343_v18, %v1007_v54 }
 0x13c   :  { %v6404_v25 = vpop.f32.mrf.mxu1  ;;  %v1199_v9 = vadd.f32 %v1179_v29, %v1017_v53  ;;  %v1018_v36 = vadd.f32 %v999_v43, %v6327_v22 }
 0x13d   :  { %v1001_v17 = vpop.f32.mrf.mxu0 }
 0x13e   :  { %v6407_v45 = vpop.f32.mrf.mxu1  ;;  %v1200_v19 = vadd.f32 %v1181_v21, %v1018_v36  ;;  %v1019_v47 = vadd.f32 %v1001_v17, %v6341_v44  ;;  %v1004_v21 = vadd.f32 %v6333_v20, %v6180_v32  ;;  %v1821_v20 = vlaneseq }
 0x13f   :  { %v1318_v55 = vpop.f32.mrf.mxu0 }
 0x140   :  { %v6410_v11 = vpop.f32.mrf.mxu1  ;;  %v1201_v60 = vadd.f32 %v1183_v8, %v1019_v47  ;;  %v1186_v17 = vadd.f32 %v6309_v62, %v1004_v21 }
 0x141   :  { %v1320_v58 = vpop.f32.mrf.mxu0 }
 0x142   :  { %v6412_v28 = vpop.f32.mrf.mxu1 }
 0x143   :  { %v1322_v31 = vpop.f32.mrf.mxu0 }
 0x144   :  { %v6414_v13 = vpop.f32.mrf.mxu1 }
 0x145   :  { %v1324_v24 = vpop.f32.mrf.mxu0 }
 0x146   :  { %v6416_v7 = vpop.f32.mrf.mxu1 }
 0x147   :  { %v6420_v46 = vpop.f32.mrf.mxu0 }
 0x148   :  { %v6418_v22 = vpop.f32.mrf.mxu1 }
 0x149   :  { %v6424_v44 = vpop.f32.mrf.mxu0 }
 0x14a   :  { %v6422_v34 = vpop.f32.mrf.mxu1 }
 0x14b   :  { %v6426_v39 = vpop.f32.mrf.mxu0 }
 0x14c   :  { %v1584_v61 = vpop.f32.mrf.mxu1 }
 0x14d   :  { %v6428_v3 = vpop.f32.mrf.mxu0 }
 0x14e   :  { %v1586_v51 = vpop.f32.mrf.mxu1 }
 0x14f   :  { %v1338_v41 = vpop.f32.mrf.mxu0 }
 0x150   :  { %v1588_v2 = vpop.f32.mrf.mxu1  ;;  %v1365_v10 = vadd.f32 %v1338_v41, %v1194_v33 }
 0x151   :  { %v1340_v14 = vpop.f32.mrf.mxu0 }
 0x152   :  { %v1590_v38 = vpop.f32.mrf.mxu1  ;;  %v6430_v5 = vadd.f32 %v1584_v61, %v1365_v10  ;;  %v1366_v1 = vadd.f32 %v1340_v14, %v1195_v63  ;;  %v5300_v61 = vmov 1983009808  }
 0x153   :  { %v1342_v15 = vpop.f32.mrf.mxu0  ;;  %v1819_v32 = vunpack.c.l.s4 %v5300_v61 }
 0x154   :  { %v1594_v27 = vpop.f32.mrf.mxu1  ;;  %v6432_v29 = vadd.f32 %v1586_v51, %v1366_v1  ;;  %v1367_v0 = vadd.f32 %v1342_v15, %v1196_v48  ;;  %v1187_v48 = vadd.f32 %v6317_v12, %v1005_v35  ;;  %v1822_v15 = vshrl.u32 %v1821_v20, 7 }
 0x155   :  { %v1344_v57 = vpop.f32.mrf.mxu0  ;;  %v1820_v1 = vunpack.c.0.s8 %v1819_v32 }
 0x156   :  { %v1596_v6 = vpop.f32.mrf.mxu1  ;;  %v6438_v8 = vadd.f32 %v1588_v2, %v1367_v0  ;;  %v1368_v33 = vadd.f32 %v1344_v57, %v1197_v37  ;;  %v1358_v62 = vadd.f32 %v1320_v58, %v1187_v48  ;;  %v1360_v0 = vadd.f32 %v1324_v24, %v1189_v4 }
 0x157   :  { %v1348_v53 = vpop.f32.mrf.mxu0  ;;  %v6468_v18 = vsub.s32 %v1820_v1, %v1822_v15 }
 0x158   :  { %v1598_v49 = vpop.f32.mrf.mxu1  ;;  %v6440_v43 = vadd.f32 %v1590_v38, %v1368_v33  ;;  %v1369_v63 = vadd.f32 %v1348_v53, %v1198_v30  ;;  %v1357_v30 = vadd.f32 %v1318_v55, %v1186_v17  ;;  %v1606_v24 = vadd.f32 %v6412_v28, %v1360_v0 }
 0x159   :  { %v1350_v47 = vpop.f32.mrf.mxu0  ;;  %7163 = vst [vmem:[#allocation8_spill] sm:$0xff] %v6468_v18 }
 0x15a   :  { %v1600_v36 = vpop.f32.mrf.mxu1  ;;  %v6448_v37 = vadd.f32 %v1594_v27, %v1369_v63  ;;  %v1370_v51 = vadd.f32 %v1350_v47, %v1199_v9  ;;  %v1603_v55 = vadd.f32 %v6404_v25, %v1357_v30  ;;  %v1604_v27 = vadd.f32 %v6407_v45, %v1358_v62 }
 0x15b   :  { %v1352_v41 = vpop.f32.mrf.mxu0  ;;  %v1362_v25 = vadd.f32 %v6424_v44, %v6382_v40  ;;  %v1363_v63 = vadd.f32 %v6426_v39, %v6385_v23 }
 0x15c   :  { %v6450_v2 = vpop.f32.mrf.mxu1  ;;  %v6452_v10 = vadd.f32 %v1596_v6, %v1370_v51  ;;  %v1371_v12 = vadd.f32 %v1352_v41, %v1200_v19  ;;  %v1359_v19 = vadd.f32 %v1322_v31, %v1188_v50 }
 0x15d   :  { %v1354_v14 = vpop.f32.mrf.mxu0  ;;  %v1608_v28 = vadd.f32 %v6416_v7, %v1362_v25  ;;  %v1609_v32 = vadd.f32 %v6418_v22, %v1363_v63 }
 0x15e   :  { %v6454_v38 = vpop.f32.mrf.mxu1  ;;  %v6458_v42 = vadd.f32 %v1598_v49, %v1371_v12  ;;  %v1372_v52 = vadd.f32 %v1354_v14, %v1201_v60  ;;  %v1361_v60 = vadd.f32 %v6420_v46, %v6373_v59  ;;  %v1605_v31 = vadd.f32 %v6410_v11, %v1359_v19 }
 0x15f   :  { %v1746_v58 = vpop.f32.mrf.mxu0 }
 0x160   :  { %v6460_v9 = vpop.f32.mrf.mxu1  ;;  %v6464_v6 = vadd.f32 %v1600_v36, %v1372_v52  ;;  %v1785_v56 = vadd.f32 %v1746_v58, %v1603_v55  ;;  %v1364_v36 = vadd.f32 %v6428_v3, %v6389_v26  ;;  %v1607_v11 = vadd.f32 %v6414_v13, %v1361_v60 }
 0x161   :  { %v1748_v35 = vpop.f32.mrf.mxu0 }
 0x162   :  { %v6466_v21 = vpop.f32.mrf.mxu1  ;;  %v1786_v57 = vadd.f32 %v1748_v35, %v1604_v27  ;;  %v6495_v20 = vadd.f32 %v6422_v34, %v1364_v36 }
 0x163   :  { %v1750_v45 = vpop.f32.mrf.mxu0 }
 0x164   :  { %v6470_v33 = vpop.f32.mrf.mxu1  ;;  %v1801_v49 = vmax.f32 %v1785_v56, %v1786_v57  ;;  %v1787_v40 = vadd.f32 %v1750_v45, %v1605_v31 }
 0x165   :  { %v1752_v17 = vpop.f32.mrf.mxu0 }
 0x166   :  { %v6478_v53 = vpop.f32.mrf.mxu1  ;;  %v1817_v59 = vcombine.high %v1801_v49, %v1801_v49  ;;  %v1824_v46 = vrot.slane %v1801_v49, %v6468_v18  ;;  %v1788_v44 = vadd.f32 %v1752_v17, %v1606_v24 }
 0x167   :  { %v1756_v47 = vpop.f32.mrf.mxu0 }
 0x168   :  { %v6485_v48 = vpop.f32.mrf.mxu1  ;;  %v1831_v61 = vrot.slane %v1817_v59, %v6468_v18  ;;  %v1832_v23 = vcombine.high %v1824_v46, %v1824_v46  ;;  %v1986_v39 = vsel %vm1985_vm7, %v1824_v46, -inf  ;;  %v1802_v26 = vmax.f32 %v1787_v40, %v1788_v44 }
 0x169   :  { %v1987_v16 = vrot.slane %v1986_v39, 4  ;;  %v6497_v54 = vadd.f32 %v1756_v47, %v1607_v11  ;;  %v1758_v13 = vpop.f32.mrf.mxu0 }
 0x16a   :  { %v6491_v3 = vpop.f32.mrf.mxu1  ;;  %v1833_v51 = vcombine.high %v1831_v61, %v1831_v61  ;;  %v1993_v7 = vsel %vm1985_vm7, %v1832_v23, -inf  ;;  %v2000_v30 = vsel %vm1985_vm7, %v1831_v61, -inf  ;;  %v1834_v41 = vcombine.high %v1802_v26, %v1802_v26 }
 0x16b   :  { %v1988_v12 = vmax.f32 %v1986_v39, %v1987_v16  ;;  %v1994_v14 = vrot.slane %v1993_v7, 4  ;;  %v2001_v1 = vrot.slane %v2000_v30, 4  ;;  %v1841_v22 = vrot.slane %v1802_v26, %v6468_v18  ;;  %v1760_v15 = vpop.f32.mrf.mxu0  ;;  %v6529_v39 = vld [vmem:[%s7155_s2] ss:$0 sm:$0xff] }
 0x16c   :  { %v6501_v62 = vpop.f32.mrf.mxu1  ;;  %v2007_v34 = vsel %vm1985_vm7, %v1833_v51, -inf  ;;  %v1848_v50 = vrot.slane %v1834_v41, %v6468_v18  ;;  %v6506_v4 = vadd.f32 %v1758_v13, %v1608_v28  ;;  %v6508_v52 = vadd.f32 %v1760_v15, %v1609_v32 }
 0x16d   :  { %7164 = vst [vmem:[#allocation9_spill] sm:$0xff] %v6501_v62  ;;  %v1989_v58 = vrot.slane %v1988_v12, 2  ;;  %v1995_v27 = vmax.f32 %v1993_v7, %v1994_v14  ;;  %v2002_v19 = vmax.f32 %v2000_v30, %v2001_v1  ;;  %v2008_v0 = vrot.slane %v2007_v34, 4  ;;  %v6512_v35 = vpop.f32.mrf.mxu0 }
 0x16e   :  { %v6510_v55 = vpop.f32.mrf.mxu1  ;;  %v1849_v56 = vcombine.high %v1841_v22, %v1841_v22  ;;  %v1850_v57 = vcombine.high %v1848_v50, %v1848_v50  ;;  %v2014_v60 = vsel %vm1985_vm7, %v1841_v22, -inf  ;;  %v2028_v25 = vsel %vm1985_vm7, %v1848_v50, -inf }
 0x16f   :  { %7165 = vst [vmem:[#allocation10_spill] sm:$0xff] %v6510_v55  ;;  %v1990_v31 = vmax.f32 %v1988_v12, %v1989_v58  ;;  %v1996_v24 = vrot.slane %v1995_v27, 2  ;;  %v2003_v49 = vrot.slane %v2002_v19, 2  ;;  %v2009_v63 = vmax.f32 %v2007_v34, %v2008_v0  ;;  %v6518_v36 = vpop.f32.mrf.mxu0 }
 0x170   :  { %v6516_v45 = vpop.f32.mrf.mxu1  ;;  %v2015_v17 = vrot.slane %v2014_v60, 4  ;;  %v2021_v59 = vsel %vm1985_vm7, %v1849_v56, -inf  ;;  %v2029_v46 = vrot.slane %v2028_v25, 4  ;;  %v2035_v40 = vsel %vm1985_vm7, %v1850_v57, -inf }
 0x171   :  { %7166 = vst [vmem:[#allocation11_spill] sm:$0xff] %v6516_v45  ;;  %v1991_v11 = vrot.slane %v1990_v31, 1  ;;  %v1997_v28 = vmax.f32 %v1995_v27, %v1996_v24  ;;  %v2004_v47 = vmax.f32 %v2002_v19, %v2003_v49  ;;  %v2010_v61 = vrot.slane %v2009_v63, 2  ;;  %v6524_v23 = vpop.f32.mrf.mxu0 }
 0x172   :  { %v6522_v44 = vpop.f32.mrf.mxu1  ;;  %v2016_v26 = vmax.f32 %v2014_v60, %v2015_v17  ;;  %v2022_v32 = vrot.slane %v2021_v59, 4  ;;  %v2030_v16 = vmax.f32 %v2028_v25, %v2029_v46  ;;  %v2036_v13 = vrot.slane %v2035_v40, 4 }
 0x173   :  { %7167 = vst [vmem:[#allocation12_spill] sm:$0xff] %v6522_v44  ;;  %v1992_v7 = vmax.f32 %v1990_v31, %v1991_v11  ;;  %v1998_v30 = vrot.slane %v1997_v28, 1  ;;  %v2005_v41 = vrot.slane %v2004_v47, 1  ;;  %v2011_v12 = vmax.f32 %v2009_v63, %v2010_v61  ;;  %v6533_v14 = vpop.f32.mrf.mxu0 }
 0x174   :  { %v6531_v51 = vpop.f32.mrf.mxu1  ;;  %v2017_v1 = vrot.slane %v2016_v26, 2  ;;  %v2023_v22 = vmax.f32 %v2021_v59, %v2022_v32  ;;  %v2031_v15 = vrot.slane %v2030_v16, 2  ;;  %v2037_v34 = vmax.f32 %v2035_v40, %v2036_v13 }
 0x175   :  { %7168 = vst [vmem:[#allocation13_spill] sm:$0xff] %v6531_v51  ;;  %v1999_v58 = vmax.f32 %v1997_v28, %v1998_v30  ;;  %v2006_v27 = vmax.f32 %v2004_v47, %v2005_v41  ;;  %v2012_v19 = vrot.slane %v2011_v12, 1  ;;  %v2216_v0 = vadd.f32 %v6529_v39, %v1992_v7  ;;  %v6538_v56 = vpop.f32.mrf.mxu0 }
 0x176   :  { %v6535_v50 = vpop.f32.mrf.mxu1  ;;  %v2018_v57 = vmax.f32 %v2016_v26, %v2017_v1  ;;  %v2024_v60 = vrot.slane %v2023_v22, 2  ;;  %v2032_v25 = vmax.f32 %v2030_v16, %v2031_v15  ;;  %v2038_v31 = vrot.slane %v2037_v34, 2 }
 0x177   :  { %7169 = vst [vmem:[#allocation14_spill] sm:$0xff] %v6535_v50  ;;  %v2013_v49 = vmax.f32 %v2011_v12, %v2012_v19  ;;  %v2217_v63 = vadd.f32 %v6529_v39, %v1999_v58  ;;  %v2218_v17 = vadd.f32 %v6529_v39, %v2006_v27  ;;  %v2248_v59 = vmax.f32 %v2216_v0, 0.0  ;;  %v6544_v46 = vpop.f32.mrf.mxu0 }
 0x178   :  { %v6540_v24 = vpop.f32.mrf.mxu1  ;;  %v2019_v40 = vrot.slane %v2018_v57, 1  ;;  %v2025_v11 = vmax.f32 %v2023_v22, %v2024_v60  ;;  %v2033_v28 = vrot.slane %v2032_v25, 1  ;;  %v2039_v47 = vmax.f32 %v2037_v34, %v2038_v31 }
 0x179   :  { %7170 = vst [vmem:[#allocation15_spill] sm:$0xff] %v6540_v24  ;;  %v2219_v26 = vadd.f32 %v6529_v39, %v2013_v49  ;;  %v2249_v32 = vmax.f32 %v2217_v63, 0.0  ;;  %v2250_v16 = vmax.f32 %v2218_v17, 0.0  ;;  %v1803_v13 = vmax.f32 %v6497_v54, %v6506_v4  ;;  %v6551_v7 = vpop.f32.mrf.mxu0 }
 0x17a   :  { %v6546_v61 = vpop.f32.mrf.mxu1  ;;  %v2020_v30 = vmax.f32 %v2018_v57, %v2019_v40  ;;  %v2026_v41 = vrot.slane %v2025_v11, 1  ;;  %v2034_v12 = vmax.f32 %v2032_v25, %v2033_v28  ;;  %v2040_v1 = vrot.slane %v2039_v47, 1 }
 0x17b   :  { %7171 = vst [vmem:[#allocation16_spill] sm:$0xff] %v6546_v61  ;;  %v2251_v15 = vmax.f32 %v2219_v26, 0.0  ;;  %v2312_v34 = vrot.slane %v2249_v32, 7  ;;  %v2315_v58 = vrot.slane %v2250_v16, 6  ;;  %v1851_v27 = vcombine.high %v1803_v13, %v1803_v13  ;;  %v6555_v19 = vpop.f32.mrf.mxu0 }
 0x17c   :  { %v6553_v22 = vpop.f32.mrf.mxu1  ;;  %v2027_v0 = vmax.f32 %v2025_v11, %v2026_v41  ;;  %v2041_v60 = vmax.f32 %v2039_v47, %v2040_v1  ;;  %v2220_v54 = vadd.f32 %v6529_v39, %v2020_v30  ;;  %v2222_v4 = vadd.f32 %v6529_v39, %v2034_v12 }
 0x17d   :  { %v2314_v25 = vsel %vm2313_vm8, %v2312_v34, %v2248_v59  ;;  %v2318_v31 = vrot.slane %v2251_v15, 5  ;;  %v1858_v49 = vrot.slane %v1803_v13, %v6468_v18  ;;  %v1865_v63 = vrot.slane %v1851_v27, %v6468_v18  ;;  %v6564_v17 = vpop.f32.mrf.mxu0 }
 0x17e   :  { %v6559_v57 = vpop.f32.mrf.mxu1  ;;  %v2317_v40 = vsel %vm2316_vm9, %v2315_v58, %v2314_v25  ;;  %v2221_v11 = vadd.f32 %v6529_v39, %v2027_v0  ;;  %v2223_v28 = vadd.f32 %v6529_v39, %v2041_v60  ;;  %v2252_v47 = vmax.f32 %v2220_v54, 0.0 }
 0x17f   :  { %v2254_v32 = vmax.f32 %v2222_v4, 0.0  ;;  %v2320_v16 = vsel %vm2319_vm10, %v2318_v31, %v2317_v40  ;;  %v1866_v59 = vcombine.high %v1858_v49, %v1858_v49  ;;  %v1867_v30 = vcombine.high %v1865_v63, %v1865_v63  ;;  %v6572_v41 = vpop.f32.mrf.mxu0 }
 0x180   :  { %v6569_v26 = vpop.f32.mrf.mxu1  ;;  %v2253_v13 = vmax.f32 %v2221_v11, 0.0  ;;  %v2255_v12 = vmax.f32 %v2223_v28, 0.0  ;;  %v2321_v1 = vrot.slane %v2252_v47, 4  ;;  %v2042_v15 = vsel %vm1985_vm7, %v1858_v49, -inf }
 0x181   :  { %v2327_v58 = vrot.slane %v2254_v32, 2  ;;  %v2043_v27 = vrot.slane %v2042_v15, 4  ;;  %v2049_v0 = vsel %vm1985_vm7, %v1866_v59, -inf  ;;  %v2056_v60 = vsel %vm1985_vm7, %v1865_v63, -inf  ;;  %v6579_v54 = vpop.f32.mrf.mxu0 }
 0x182   :  { %v6575_v34 = vpop.f32.mrf.mxu1  ;;  %v2323_v4 = vsel %vm2322_vm11, %v2321_v1, %v2320_v16  ;;  %v2324_v25 = vrot.slane %v2253_v13, 3  ;;  %v2330_v31 = vrot.slane %v2255_v12, 1  ;;  %v2050_v40 = vrot.slane %v2049_v0, 4 }
 0x183   :  { %v2044_v28 = vmax.f32 %v2042_v15, %v2043_v27  ;;  %v2057_v47 = vrot.slane %v2056_v60, 4  ;;  %v2063_v49 = vsel %vm1985_vm7, %v1867_v30, -inf  ;;  %v1792_v32 = vadd.f32 %v6512_v35, %v6495_v20  ;;  %v6587_v61 = vpop.f32.mrf.mxu0 }
 0x184   :  { %v6582_v11 = vpop.f32.mrf.mxu1  ;;  %v2326_v63 = vsel %vm2325_vm12, %v2324_v25, %v2323_v4  ;;  %v2051_v59 = vmax.f32 %v2049_v0, %v2050_v40  ;;  %v2064_v24 = vrot.slane %v2063_v49, 4  ;;  %v1793_v16 = vadd.f32 %v6518_v36, %v6430_v5 }
 0x185   :  { %v2329_v12 = vsel %vm2328_vm13, %v2327_v58, %v2326_v63  ;;  %v2045_v1 = vrot.slane %v2044_v28, 2  ;;  %v2058_v15 = vmax.f32 %v2056_v60, %v2057_v47  ;;  %v1804_v30 = vmax.f32 %v6508_v52, %v1792_v32  ;;  %v6596_v27 = vpop.f32.mrf.mxu0 }
 0x186   :  { %v6592_v13 = vpop.f32.mrf.mxu1  ;;  %v2332_v20 = vsel %vm2331_vm14, %v2330_v31, %v2329_v12  ;;  %v2052_v35 = vrot.slane %v2051_v59, 2  ;;  %v2065_v50 = vmax.f32 %v2063_v49, %v2064_v24  ;;  %v1794_v0 = vadd.f32 %v6524_v23, %v6432_v29 }
 0x187   :  { %2379 = vst [vmem:[#allocation5] sm:$0xff] %v2332_v20  ;;  %v2046_v5 = vmax.f32 %v2044_v28, %v2045_v1  ;;  %v2059_v36 = vrot.slane %v2058_v15, 2  ;;  %v1868_v25 = vcombine.high %v1804_v30, %v1804_v30  ;;  %v1875_v58 = vrot.slane %v1804_v30, %v6468_v18  ;;  %v6604_v60 = vpop.f32.mrf.mxu0 }
 0x188   :  { %v6601_v4 = vpop.f32.mrf.mxu1  ;;  %v2053_v52 = vmax.f32 %v2051_v59, %v2052_v35  ;;  %v2066_v40 = vrot.slane %v2065_v50, 2  ;;  %v1805_v47 = vmax.f32 %v1793_v16, %v1794_v0  ;;  %v6608_v31 = vadd.f32 %v6533_v14, %v6438_v8 }
 0x189   :  { %v2047_v29 = vrot.slane %v2046_v5, 1  ;;  %v2060_v23 = vmax.f32 %v2058_v15, %v2059_v36  ;;  %v1882_v49 = vrot.slane %v1868_v25, %v6468_v18  ;;  %v1883_v28 = vcombine.high %v1875_v58, %v1875_v58  ;;  %v6613_v32 = vpop.f32.mrf.mxu0 }
 0x18a   :  { %v6610_v24 = vpop.f32.mrf.mxu1  ;;  %v2054_v63 = vrot.slane %v2053_v52, 1  ;;  %v2067_v12 = vmax.f32 %v2065_v50, %v2066_v40  ;;  %v2070_v1 = vsel %vm1985_vm7, %v1875_v58, -inf  ;;  %v1885_v59 = vcombine.high %v1805_v47, %v1805_v47 }
 0x18b   :  { %7172 = vst [vmem:[#allocation17_spill] sm:$0xff] %v6610_v24  ;;  %v2048_v16 = vmax.f32 %v2046_v5, %v2047_v29  ;;  %v2061_v20 = vrot.slane %v2060_v23, 1  ;;  %v1884_v8 = vcombine.high %v1882_v49, %v1882_v49  ;;  %v2071_v14 = vrot.slane %v2070_v1, 4  ;;  %v6618_v35 = vpop.f32.mrf.mxu0 }
 0x18c   :  { %v6616_v30 = vpop.f32.mrf.mxu1  ;;  %v2055_v0 = vmax.f32 %v2053_v52, %v2054_v63  ;;  %v2068_v15 = vrot.slane %v2067_v12, 1  ;;  %v2077_v36 = vsel %vm1985_vm7, %v1883_v28, -inf  ;;  %v2084_v25 = vsel %vm1985_vm7, %v1882_v49, -inf }
 0x18d   :  { %7173 = vst [vmem:[#allocation18_spill] sm:$0xff] %v6616_v30  ;;  %v2062_v50 = vmax.f32 %v2060_v23, %v2061_v20  ;;  %v2224_v58 = vadd.f32 %v6529_v39, %v2048_v16  ;;  %v2072_v40 = vmax.f32 %v2070_v1, %v2071_v14  ;;  %v2078_v44 = vrot.slane %v2077_v36, 4  ;;  %v6625_v45 = vpop.f32.mrf.mxu0 }
 0x18e   :  { %v6622_v51 = vpop.f32.mrf.mxu1  ;;  %v2069_v5 = vmax.f32 %v2067_v12, %v2068_v15  ;;  %v2225_v29 = vadd.f32 %v6529_v39, %v2055_v0  ;;  %v2085_v55 = vrot.slane %v2084_v25, 4  ;;  %v2091_v52 = vsel %vm1985_vm7, %v1884_v8, -inf }
 0x18f   :  { %7174 = vst [vmem:[#allocation19_spill] sm:$0xff] %v6622_v51  ;;  %v2226_v28 = vadd.f32 %v6529_v39, %v2062_v50  ;;  %v2256_v49 = vmax.f32 %v2224_v58, 0.0  ;;  %v2073_v30 = vrot.slane %v2072_v40, 2  ;;  %v2079_v51 = vmax.f32 %v2077_v36, %v2078_v44  ;;  %v6632_v23 = vpop.f32.mrf.mxu0 }
 0x190   :  { %v6629_v63 = vpop.f32.mrf.mxu1  ;;  %7176 = vst [vmem:[#allocation21_spill] sm:$0xff] %v6632_v23  ;;  %v2227_v1 = vadd.f32 %v6529_v39, %v2069_v5  ;;  %v2257_v16 = vmax.f32 %v2225_v29, 0.0  ;;  %v2086_v20 = vmax.f32 %v2084_v25, %v2085_v55  ;;  %v2092_v14 = vrot.slane %v2091_v52, 4 }
 0x191   :  { %7175 = vst [vmem:[#allocation20_spill] sm:$0xff] %v6629_v63  ;;  %v2258_v0 = vmax.f32 %v2226_v28, 0.0  ;;  %v2074_v15 = vmax.f32 %v2072_v40, %v2073_v30  ;;  %v2080_v24 = vrot.slane %v2079_v51, 2  ;;  %v1892_v8 = vrot.slane %v1805_v47, %v6468_v18  ;;  %v6638_v63 = vpop.f32.mrf.mxu0 }
 0x192   :  { %v6635_v12 = vpop.f32.mrf.mxu1  ;;  %7178 = vst [vmem:[#allocation23_spill] sm:$0xff] %v6638_v63  ;;  %v2259_v50 = vmax.f32 %v2227_v1, 0.0  ;;  %v2333_v58 = vrot.slane %v2257_v16, 7  ;;  %v2087_v62 = vrot.slane %v2086_v20, 2  ;;  %v2093_v44 = vmax.f32 %v2091_v52, %v2092_v14 }
 0x193   :  { %7177 = vst [vmem:[#allocation22_spill] sm:$0xff] %v6635_v12  ;;  %v2335_v23 = vrot.slane %v2258_v0, 6  ;;  %v2075_v5 = vrot.slane %v2074_v15, 1  ;;  %v2081_v29 = vmax.f32 %v2079_v51, %v2080_v24  ;;  %v1899_v55 = vrot.slane %v1885_v59, %v6468_v18  ;;  %v6643_v25 = vpop.f32.mrf.mxu0 }
 0x194   :  { %v6640_v36 = vpop.f32.mrf.mxu1  ;;  %7180 = vst [vmem:[#allocation25_spill] sm:$0xff] %v6643_v25  ;;  %v2334_v30 = vsel %vm2313_vm8, %v2333_v58, %v2256_v49  ;;  %v2337_v40 = vrot.slane %v2259_v50, 5  ;;  %v2088_v28 = vmax.f32 %v2086_v20, %v2087_v62  ;;  %v2094_v47 = vrot.slane %v2093_v44, 2 }
 0x195   :  { %7179 = vst [vmem:[#allocation24_spill] sm:$0xff] %v6640_v36  ;;  %v2336_v1 = vsel %vm2316_vm9, %v2335_v23, %v2334_v30  ;;  %v2076_v16 = vmax.f32 %v2074_v15, %v2075_v5  ;;  %v2082_v52 = vrot.slane %v2081_v29, 1  ;;  %v1900_v14 = vcombine.high %v1892_v8, %v1892_v8  ;;  %v6649_v36 = vpop.f32.mrf.mxu0 }
 0x196   :  { %v6646_v12 = vpop.f32.mrf.mxu1  ;;  %7182 = vst [vmem:[#allocation27_spill] sm:$0xff] %v6649_v36  ;;  %v2089_v0 = vrot.slane %v2088_v28, 1  ;;  %v2095_v51 = vmax.f32 %v2093_v44, %v2094_v47  ;;  %v2338_v24 = vsel %vm2319_vm10, %v2337_v40, %v2336_v1  ;;  %v1901_v59 = vcombine.high %v1899_v55, %v1899_v55 }
 0x197   :  { %7181 = vst [vmem:[#allocation26_spill] sm:$0xff] %v6646_v12  ;;  %v2083_v49 = vmax.f32 %v2081_v29, %v2082_v52  ;;  %v2228_v62 = vadd.f32 %v6529_v39, %v2076_v16  ;;  %v2098_v20 = vsel %vm1985_vm7, %v1892_v8, -inf  ;;  %v2105_v50 = vsel %vm1985_vm7, %v1900_v14, -inf  ;;  %v6657_v23 = vpop.f32.mrf.mxu0 }
 0x198   :  { %v6652_v25 = vpop.f32.mrf.mxu1  ;;  %7184 = vst [vmem:[#allocation29_spill] sm:$0xff] %v6657_v23  ;;  %v2090_v15 = vmax.f32 %v2088_v28, %v2089_v0  ;;  %v2096_v58 = vrot.slane %v2095_v51, 1  ;;  %v2099_v5 = vrot.slane %v2098_v20, 4  ;;  %v2106_v30 = vrot.slane %v2105_v50, 4 }
 0x199   :  { %7183 = vst [vmem:[#allocation28_spill] sm:$0xff] %v6652_v25  ;;  %v2229_v44 = vadd.f32 %v6529_v39, %v2083_v49  ;;  %v2260_v40 = vmax.f32 %v2228_v62, 0.0  ;;  %v2112_v47 = vsel %vm1985_vm7, %v1899_v55, -inf  ;;  %v2119_v29 = vsel %vm1985_vm7, %v1901_v59, -inf  ;;  %v6664_v1 = vpop.f32.mrf.mxu0 }
 0x19a   :  { %v6659_v12 = vpop.f32.mrf.mxu1  ;;  %7186 = vst [vmem:[#allocation31_spill] sm:$0xff] %v6664_v1  ;;  %v2097_v8 = vmax.f32 %v2095_v51, %v2096_v58  ;;  %v2230_v16 = vadd.f32 %v6529_v39, %v2090_v15  ;;  %v2100_v52 = vmax.f32 %v2098_v20, %v2099_v5  ;;  %v2107_v14 = vmax.f32 %v2105_v50, %v2106_v30 }
 0x19b   :  { %7185 = vst [vmem:[#allocation30_spill] sm:$0xff] %v6659_v12  ;;  %v2261_v0 = vmax.f32 %v2229_v44, 0.0  ;;  %v2339_v25 = vrot.slane %v2260_v40, 4  ;;  %v2113_v23 = vrot.slane %v2112_v47, 4  ;;  %v2120_v12 = vrot.slane %v2119_v29, 4  ;;  %v6669_v36 = vpop.f32.mrf.mxu0 }
 0x19c   :  { %v6667_v28 = vpop.f32.mrf.mxu1  ;;  %7188 = vst [vmem:[#allocation33_spill] sm:$0xff] %v6669_v36  ;;  %v2231_v49 = vadd.f32 %v6529_v39, %v2097_v8  ;;  %v2262_v55 = vmax.f32 %v2230_v16, 0.0  ;;  %v2101_v62 = vrot.slane %v2100_v52, 2  ;;  %v2108_v59 = vrot.slane %v2107_v14, 2 }
 0x19d   :  { %7187 = vst [vmem:[#allocation32_spill] sm:$0xff] %v6667_v28  ;;  %v2340_v51 = vsel %vm2322_vm11, %v2339_v25, %v2338_v24  ;;  %v2341_v15 = vrot.slane %v2261_v0, 3  ;;  %v2114_v20 = vmax.f32 %v2112_v47, %v2113_v23  ;;  %v2121_v50 = vmax.f32 %v2119_v29, %v2120_v12  ;;  %v6675_v58 = vpop.f32.mrf.mxu0 }
 0x19e   :  { %v6672_v63 = vpop.f32.mrf.mxu1  ;;  %v2263_v5 = vmax.f32 %v2231_v49, 0.0  ;;  %v2343_v30 = vrot.slane %v2262_v55, 2  ;;  %v2102_v44 = vmax.f32 %v2100_v52, %v2101_v62  ;;  %v2109_v40 = vmax.f32 %v2107_v14, %v2108_v59 }
 0x19f   :  { %7189 = vst [vmem:[#allocation34_spill] sm:$0xff] %v6672_v63  ;;  %v2342_v8 = vsel %vm2325_vm12, %v2341_v15, %v2340_v51  ;;  %v2115_v16 = vrot.slane %v2114_v20, 2  ;;  %v2122_v36 = vrot.slane %v2121_v50, 2  ;;  %v1796_v63 = vadd.f32 %v6538_v56, %v6440_v43  ;;  %v6682_v1 = vpop.f32.mrf.mxu0 }
 0x1a0   :  { %v6677_v28 = vpop.f32.mrf.mxu1  ;;  %v2344_v25 = vsel %vm2328_vm13, %v2343_v30, %v2342_v8  ;;  %v2345_v12 = vrot.slane %v2263_v5, 1  ;;  %v2103_v24 = vrot.slane %v2102_v44, 1  ;;  %v2110_v23 = vrot.slane %v2109_v40, 1 }
 0x1a1   :  { %v2116_v29 = vmax.f32 %v2114_v20, %v2115_v16  ;;  %v2123_v52 = vmax.f32 %v2121_v50, %v2122_v36  ;;  %v1806_v14 = vmax.f32 %v6608_v31, %v1796_v63  ;;  %v1797_v0 = vadd.f32 %v6544_v46, %v6448_v37  ;;  %v6690_v49 = vpop.f32.mrf.mxu0 }
 0x1a2   :  { %v6685_v47 = vpop.f32.mrf.mxu1  ;;  %v2346_v43 = vsel %vm2331_vm14, %v2345_v12, %v2344_v25  ;;  %v2104_v56 = vmax.f32 %v2102_v44, %v2103_v24  ;;  %v2111_v55 = vmax.f32 %v2109_v40, %v2110_v23  ;;  %v1798_v62 = vadd.f32 %v6551_v7, %v6452_v10 }
 0x1a3   :  { %7190 = vst [vmem:[#allocation35_spill] sm:$0xff] %v6685_v47  ;;  %2380 = vst [vmem:[#allocation5 + $0x8] sm:$0xff] %v2346_v43  ;;  %v2117_v51 = vrot.slane %v2116_v29, 1  ;;  %v2124_v15 = vrot.slane %v2123_v52, 1  ;;  %v1902_v36 = vcombine.high %v1806_v14, %v1806_v14  ;;  %v1909_v31 = vrot.slane %v1806_v14, %v6468_v18  ;;  %v6698_v63 = vpop.f32.mrf.mxu0 }
 0x1a4   :  { %v6695_v59 = vpop.f32.mrf.mxu1  ;;  %v2232_v37 = vadd.f32 %v6529_v39, %v2104_v56  ;;  %v2233_v46 = vadd.f32 %v6529_v39, %v2111_v55  ;;  %v1807_v20 = vmax.f32 %v1797_v0, %v1798_v62  ;;  %v6704_v50 = vadd.f32 %v6555_v19, %v6458_v42 }
 0x1a5   :  { %7191 = vst [vmem:[#allocation36_spill] sm:$0xff] %v6695_v59  ;;  %v2118_v7 = vmax.f32 %v2116_v29, %v2117_v51  ;;  %v2125_v5 = vmax.f32 %v2123_v52, %v2124_v15  ;;  %v1916_v30 = vrot.slane %v1902_v36, %v6468_v18  ;;  %v1917_v44 = vcombine.high %v1909_v31, %v1909_v31  ;;  %v6709_v40 = vpop.f32.mrf.mxu0 }
 0x1a6   :  { %v6706_v10 = vpop.f32.mrf.mxu1  ;;  %v2264_v8 = vmax.f32 %v2232_v37, 0.0  ;;  %v2265_v16 = vmax.f32 %v2233_v46, 0.0  ;;  %v2126_v25 = vsel %vm1985_vm7, %v1909_v31, -inf  ;;  %v1919_v12 = vcombine.high %v1807_v20, %v1807_v20 }
 0x1a7   :  { %7192 = vst [vmem:[#allocation37_spill] sm:$0xff] %v6706_v10  ;;  %v2234_v23 = vadd.f32 %v6529_v39, %v2118_v7  ;;  %v2235_v42 = vadd.f32 %v6529_v39, %v2125_v5  ;;  %v1918_v19 = vcombine.high %v1916_v30, %v1916_v30  ;;  %v2127_v14 = vrot.slane %v2126_v25, 4  ;;  %v6716_v29 = vpop.f32.mrf.mxu0 }
 0x1a8   :  { %v6712_v24 = vpop.f32.mrf.mxu1  ;;  %v2347_v52 = vrot.slane %v2265_v16, 7  ;;  %v2133_v0 = vsel %vm1985_vm7, %v1917_v44, -inf  ;;  %v2140_v43 = vsel %vm1985_vm7, %v1916_v30, -inf  ;;  %v1926_v56 = vrot.slane %v1807_v20, %v6468_v18 }
 0x1a9   :  { %7193 = vst [vmem:[#allocation38_spill] sm:$0xff] %v6712_v24  ;;  %v2266_v62 = vmax.f32 %v2234_v23, 0.0  ;;  %v2267_v51 = vmax.f32 %v2235_v42, 0.0  ;;  %v2128_v15 = vmax.f32 %v2126_v25, %v2127_v14  ;;  %v2134_v36 = vrot.slane %v2133_v0, 4  ;;  %v6723_v31 = vpop.f32.mrf.mxu0 }
 0x1aa   :  { %v6721_v55 = vpop.f32.mrf.mxu1  ;;  %7195 = vst [vmem:[#allocation40_spill] sm:$0xff] %v6723_v31  ;;  %v2348_v37 = vsel %vm2313_vm8, %v2347_v52, %v2264_v8  ;;  %v2141_v46 = vrot.slane %v2140_v43, 4  ;;  %v2147_v7 = vsel %vm1985_vm7, %v1918_v19, -inf  ;;  %v1933_v5 = vrot.slane %v1919_v12, %v6468_v18 }
 0x1ab   :  { %7194 = vst [vmem:[#allocation39_spill] sm:$0xff] %v6721_v55  ;;  %v2349_v30 = vrot.slane %v2266_v62, 6  ;;  %v2351_v16 = vrot.slane %v2267_v51, 5  ;;  %v2129_v20 = vrot.slane %v2128_v15, 2  ;;  %v2135_v24 = vmax.f32 %v2133_v0, %v2134_v36  ;;  %v6730_v55 = vpop.f32.mrf.mxu0 }
 0x1ac   :  { %v6728_v44 = vpop.f32.mrf.mxu1  ;;  %7197 = vst [vmem:[#allocation42_spill] sm:$0xff] %v6730_v55  ;;  %v2142_v23 = vmax.f32 %v2140_v43, %v2141_v46  ;;  %v2148_v25 = vrot.slane %v2147_v7, 4  ;;  %v1934_v42 = vcombine.high %v1926_v56, %v1926_v56  ;;  %v1935_v14 = vcombine.high %v1933_v5, %v1933_v5 }
 0x1ad   :  { %7196 = vst [vmem:[#allocation41_spill] sm:$0xff] %v6728_v44  ;;  %v2350_v8 = vsel %vm2316_vm9, %v2349_v30, %v2348_v37  ;;  %v2130_v52 = vmax.f32 %v2128_v15, %v2129_v20  ;;  %v2136_v19 = vrot.slane %v2135_v24, 2  ;;  %v2154_v12 = vsel %vm1985_vm7, %v1926_v56, -inf  ;;  %v6736_v31 = vpop.f32.mrf.mxu0 }
 0x1ae   :  { %v6732_v10 = vpop.f32.mrf.mxu1  ;;  %7199 = vst [vmem:[#allocation44_spill] sm:$0xff] %v6736_v31  ;;  %v2143_v62 = vrot.slane %v2142_v23, 2  ;;  %v2149_v51 = vmax.f32 %v2147_v7, %v2148_v25  ;;  %v2352_v0 = vsel %vm2319_vm10, %v2351_v16, %v2350_v8  ;;  %v2155_v36 = vrot.slane %v2154_v12, 4 }
 0x1af   :  { %7198 = vst [vmem:[#allocation43_spill] sm:$0xff] %v6732_v10  ;;  %v2131_v43 = vrot.slane %v2130_v52, 1  ;;  %v2137_v46 = vmax.f32 %v2135_v24, %v2136_v19  ;;  %v2161_v55 = vsel %vm1985_vm7, %v1934_v42, -inf  ;;  %v2168_v10 = vsel %vm1985_vm7, %v1933_v5, -inf  ;;  %v6743_v37 = vpop.f32.mrf.mxu0 }
 0x1b0   :  { %v6739_v44 = vpop.f32.mrf.mxu1  ;;  %7201 = vst [vmem:[#allocation46_spill] sm:$0xff] %v6743_v37  ;;  %v2144_v15 = vmax.f32 %v2142_v23, %v2143_v62  ;;  %v2150_v30 = vrot.slane %v2149_v51, 2  ;;  %v2156_v56 = vmax.f32 %v2154_v12, %v2155_v36  ;;  %v2162_v20 = vrot.slane %v2161_v55, 4 }
 0x1b1   :  { %7200 = vst [vmem:[#allocation45_spill] sm:$0xff] %v6739_v44  ;;  %v2132_v7 = vmax.f32 %v2130_v52, %v2131_v43  ;;  %v2138_v25 = vrot.slane %v2137_v46, 1  ;;  %v2169_v16 = vrot.slane %v2168_v10, 4  ;;  %v2175_v8 = vsel %vm1985_vm7, %v1935_v14, -inf  ;;  %v6748_v44 = vpop.f32.mrf.mxu0 }
 0x1b2   :  { %v6745_v31 = vpop.f32.mrf.mxu1  ;;  %7203 = vst [vmem:[#allocation48_spill] sm:$0xff] %v6748_v44  ;;  %v2145_v24 = vrot.slane %v2144_v15, 1  ;;  %v2151_v19 = vmax.f32 %v2149_v51, %v2150_v30  ;;  %v2157_v42 = vrot.slane %v2156_v56, 2  ;;  %v2163_v59 = vmax.f32 %v2161_v55, %v2162_v20 }
 0x1b3   :  { %7202 = vst [vmem:[#allocation47_spill] sm:$0xff] %v6745_v31  ;;  %v2139_v37 = vmax.f32 %v2137_v46, %v2138_v25  ;;  %v2236_v23 = vadd.f32 %v6529_v39, %v2132_v7  ;;  %v2170_v12 = vmax.f32 %v2168_v10, %v2169_v16  ;;  %v2176_v62 = vrot.slane %v2175_v8, 4  ;;  %v6753_v36 = vpop.f32.mrf.mxu0 }
 0x1b4   :  { %v6750_v5 = vpop.f32.mrf.mxu1  ;;  %v2146_v52 = vmax.f32 %v2144_v15, %v2145_v24  ;;  %v2152_v43 = vrot.slane %v2151_v19, 1  ;;  %v2158_v31 = vmax.f32 %v2156_v56, %v2157_v42  ;;  %v2164_v47 = vrot.slane %v2163_v59, 2 }
 0x1b5   :  { %7204 = vst [vmem:[#allocation49_spill] sm:$0xff] %v6750_v5  ;;  %v2237_v44 = vadd.f32 %v6529_v39, %v2139_v37  ;;  %v2268_v51 = vmax.f32 %v2236_v23, 0.0  ;;  %v2171_v30 = vrot.slane %v2170_v12, 2  ;;  %v2177_v55 = vmax.f32 %v2175_v8, %v2176_v62  ;;  %v6758_v20 = vpop.f32.mrf.mxu0 }
 0x1b6   :  { %v6755_v14 = vpop.f32.mrf.mxu1  ;;  %v2153_v46 = vmax.f32 %v2151_v19, %v2152_v43  ;;  %v2238_v7 = vadd.f32 %v6529_v39, %v2146_v52  ;;  %v2159_v10 = vrot.slane %v2158_v31, 1  ;;  %v2165_v25 = vmax.f32 %v2163_v59, %v2164_v47 }
 0x1b7   :  { %7205 = vst [vmem:[#allocation50_spill] sm:$0xff] %v6755_v14  ;;  %v2269_v15 = vmax.f32 %v2237_v44, 0.0  ;;  %v2353_v24 = vrot.slane %v2268_v51, 4  ;;  %v2172_v56 = vmax.f32 %v2170_v12, %v2171_v30  ;;  %v2178_v42 = vrot.slane %v2177_v55, 2  ;;  %v6763_v5 = vpop.f32.mrf.mxu0 }
 0x1b8   :  { %v6761_v16 = vpop.f32.mrf.mxu1  ;;  %v2239_v37 = vadd.f32 %v6529_v39, %v2153_v46  ;;  %v2270_v23 = vmax.f32 %v2238_v7, 0.0  ;;  %v2160_v14 = vmax.f32 %v2158_v31, %v2159_v10  ;;  %v2166_v8 = vrot.slane %v2165_v25, 1 }
 0x1b9   :  { %7206 = vst [vmem:[#allocation51_spill] sm:$0xff] %v6761_v16  ;;  %v2354_v19 = vsel %vm2322_vm11, %v2353_v24, %v2352_v0  ;;  %v2355_v52 = vrot.slane %v2269_v15, 3  ;;  %v2173_v43 = vrot.slane %v2172_v56, 1  ;;  %v2179_v47 = vmax.f32 %v2177_v55, %v2178_v42  ;;  %v6769_v59 = vpop.f32.mrf.mxu0 }
 0x1ba   :  { %v6766_v62 = vpop.f32.mrf.mxu1  ;;  %v2271_v44 = vmax.f32 %v2239_v37, 0.0  ;;  %v2357_v51 = vrot.slane %v2270_v23, 2  ;;  %v2167_v12 = vmax.f32 %v2165_v25, %v2166_v8  ;;  %v2240_v30 = vadd.f32 %v6529_v39, %v2160_v14 }
 0x1bb   :  { %v2356_v46 = vsel %vm2325_vm12, %v2355_v52, %v2354_v19  ;;  %v2174_v31 = vmax.f32 %v2172_v56, %v2173_v43  ;;  %v2180_v7 = vrot.slane %v2179_v47, 1  ;;  %v1800_v10 = vadd.f32 %v6564_v17, %v6464_v6  ;;  %v6777_v0 = vpop.f32.mrf.mxu0 }
 0x1bc   :  { %v6772_v16 = vpop.f32.mrf.mxu1  ;;  %v2358_v55 = vsel %vm2328_vm13, %v2357_v51, %v2356_v46  ;;  %v2359_v15 = vrot.slane %v2271_v44, 1  ;;  %v2241_v24 = vadd.f32 %v6529_v39, %v2167_v12  ;;  %v2272_v42 = vmax.f32 %v2240_v30, 0.0 }
 0x1bd   :  { %v2181_v14 = vmax.f32 %v2179_v47, %v2180_v7  ;;  %v2242_v37 = vadd.f32 %v6529_v39, %v2174_v31  ;;  %v1808_v23 = vmax.f32 %v6704_v50, %v1800_v10  ;;  %v2728_v56 = vadd.f32 %v6572_v41, %v6450_v2  ;;  %v6787_v8 = vpop.f32.mrf.mxu0 }
 0x1be   :  { %v6781_v25 = vpop.f32.mrf.mxu1  ;;  %v2360_v6 = vsel %vm2331_vm14, %v2359_v15, %v2358_v55  ;;  %v2273_v17 = vmax.f32 %v2241_v24, 0.0  ;;  %v2730_v19 = vadd.f32 %v6579_v54, %v6454_v38  ;;  %v2732_v52 = vadd.f32 %v6587_v61, %v6460_v9 }
 0x1bf   :  { %2381 = vst [vmem:[#allocation5 + $0x10] sm:$0xff] %v2360_v6  ;;  %v2243_v47 = vadd.f32 %v6529_v39, %v2181_v14  ;;  %v2274_v50 = vmax.f32 %v2242_v37, 0.0  ;;  %v1936_v44 = vcombine.high %v1808_v23, %v1808_v23  ;;  %v1943_v2 = vrot.slane %v1808_v23, %v6468_v18  ;;  %v6798_v41 = vpop.f32.mrf.mxu0 }
 0x1c0   :  { %v6794_v43 = vpop.f32.mrf.mxu1  ;;  %v2361_v51 = vrot.slane %v2273_v17, 7  ;;  %v6801_v12 = vadd.f32 %v6553_v22, %v2728_v56  ;;  %v6804_v38 = vadd.f32 %v6559_v57, %v2730_v19  ;;  %v6807_v9 = vadd.f32 %v6569_v26, %v2732_v52 }
 0x1c1   :  { %v2275_v54 = vmax.f32 %v2243_v47, 0.0  ;;  %v2363_v30 = vrot.slane %v2274_v50, 6  ;;  %v1950_v46 = vrot.slane %v1936_v44, %v6468_v18  ;;  %v1951_v31 = vcombine.high %v1943_v2, %v1943_v2  ;;  %v6812_v7 = vpop.f32.mrf.mxu0  ;;  %v7225_v18 = vld [vmem:[#allocation13_spill] sm:$0xff] }
 0x1c2   :  { %v6809_v61 = vpop.f32.mrf.mxu1  ;;  %v2362_v10 = vsel %vm2313_vm8, %v2361_v51, %v2272_v42  ;;  %v2182_v22 = vsel %vm1985_vm7, %v1943_v2, -inf  ;;  %v2734_v57 = vadd.f32 %v6596_v27, %v6466_v21  ;;  %v2738_v26 = vadd.f32 %v6604_v60, %v6470_v33 }
 0x1c3   :  { %v2364_v15 = vsel %vm2316_vm9, %v2363_v30, %v2362_v10  ;;  %v2365_v24 = vrot.slane %v2275_v54, 5  ;;  %v1952_v14 = vcombine.high %v1950_v46, %v1950_v46  ;;  %v2183_v37 = vrot.slane %v2182_v22, 4  ;;  %v6823_v23 = vpop.f32.mrf.mxu0 }
 0x1c4   :  { %v6820_v55 = vpop.f32.mrf.mxu1  ;;  %v2189_v56 = vsel %vm1985_vm7, %v1951_v31, -inf  ;;  %v2196_v42 = vsel %vm1985_vm7, %v1950_v46, -inf  ;;  %v6828_v6 = vadd.f32 %v6575_v34, %v2734_v57  ;;  %v6831_v21 = vadd.f32 %v6582_v11, %v2738_v26 }
 0x1c5   :  { %7207 = vst [vmem:[#allocation52_spill] sm:$0xff] %v6820_v55  ;;  %v2184_v27 = vmax.f32 %v2182_v22, %v2183_v37  ;;  %v2190_v60 = vrot.slane %v2189_v56, 4  ;;  %v2197_v17 = vrot.slane %v2196_v42, 4  ;;  %v2203_v19 = vsel %vm1985_vm7, %v1952_v14, -inf  ;;  %v6836_v52 = vpop.f32.mrf.mxu0  ;;  %v7214_v37 = vld [vmem:[#allocation18_spill] sm:$0xff] }
 0x1c6   :  { %v6833_v33 = vpop.f32.mrf.mxu1  ;;  %v2204_v47 = vrot.slane %v2203_v19, 4  ;;  %v6839_v50 = vsel %vm2319_vm10, %v2365_v24, %v2364_v15  ;;  %v2740_v34 = vadd.f32 %v6613_v32, %v6478_v53  ;;  %v2742_v11 = vadd.f32 %v6618_v35, %v6485_v48  ;;  %v7210_v53 = vld [vmem:[#allocation9_spill] sm:$0xff] }
 0x1c7   :  { %7208 = vst [vmem:[#allocation53_spill] sm:$0xff] %v6833_v33  ;;  %v2185_v2 = vrot.slane %v2184_v27, 2  ;;  %v2191_v51 = vmax.f32 %v2189_v56, %v2190_v60  ;;  %v2198_v54 = vmax.f32 %v2196_v42, %v2197_v17  ;;  %v2744_v30 = vadd.f32 %v6625_v45, %v6491_v3  ;;  %v6849_v46 = vpop.f32.mrf.mxu0  ;;  %v7211_v32 = vld [vmem:[#allocation21_spill] sm:$0xff]  ;;  %v7215_v56 = vld [vmem:[#allocation10_spill] sm:$0xff]  ;;  %v7217_v60 = vld [vmem:[#allocation11_spill] sm:$0xff] }
 0x1c8   :  { %v6845_v44 = vpop.f32.mrf.mxu1  ;;  %v2205_v31 = vmax.f32 %v2203_v19, %v2204_v47  ;;  %v6852_v10 = vadd.f32 %v6592_v13, %v2740_v34  ;;  %v6855_v22 = vadd.f32 %v6601_v4, %v2742_v11  ;;  %v2748_v48 = vadd.f32 %v7211_v32, %v7210_v53  ;;  %v7213_v24 = vld [vmem:[#allocation17_spill] sm:$0xff]  ;;  %v7216_v4 = vld [vmem:[#allocation23_spill] sm:$0xff] }
 0x1c9   :  { %7209 = vst [vmem:[#allocation54_spill] sm:$0xff] %v6845_v44  ;;  %v2186_v57 = vmax.f32 %v2184_v27, %v2185_v2  ;;  %v2192_v26 = vrot.slane %v2191_v51, 2  ;;  %v2199_v15 = vrot.slane %v2198_v54, 2  ;;  %v6862_v14 = vadd.f32 %v7213_v24, %v2744_v30  ;;  %v6864_v3 = vpop.f32.mrf.mxu0  ;;  %v7218_v17 = vld [vmem:[#allocation25_spill] sm:$0xff]  ;;  %v7220_v2 = vld [vmem:[#allocation12_spill] sm:$0xff]  ;;  %v7221_v30 = vld [vmem:[#allocation27_spill] sm:$0xff] }
 0x1ca   :  { %v6859_v35 = vpop.f32.mrf.mxu1  ;;  %v2206_v45 = vrot.slane %v2205_v31, 2  ;;  %v6867_v13 = vadd.f32 %v7214_v37, %v2748_v48  ;;  %v2750_v42 = vadd.f32 %v7216_v4, %v7215_v56  ;;  %v2752_v19 = vadd.f32 %v7218_v17, %v7217_v60  ;;  %v7224_v37 = vld [vmem:[#allocation20_spill] sm:$0xff]  ;;  %v7226_v56 = vld [vmem:[#allocation29_spill] sm:$0xff] }
 0x1cb   :  { %7212 = vst [vmem:[#allocation9_spill] sm:$0xff] %v6859_v35  ;;  %v2187_v27 = vrot.slane %v2186_v57, 1  ;;  %v2193_v34 = vmax.f32 %v2191_v51, %v2192_v26  ;;  %v2200_v11 = vmax.f32 %v2198_v54, %v2199_v15  ;;  %v2754_v53 = vadd.f32 %v7221_v30, %v7220_v2  ;;  %v6877_v32 = vpop.f32.mrf.mxu0  ;;  %v7223_v35 = vld [vmem:[#allocation19_spill] sm:$0xff]  ;;  %v7228_v51 = vld [vmem:[#allocation22_spill] sm:$0xff]  ;;  %v7230_v2 = vld [vmem:[#allocation24_spill] sm:$0xff] }
 0x1cc   :  { %v6873_v47 = vpop.f32.mrf.mxu1  ;;  %7222 = vst [vmem:[#allocation17_spill] sm:$0xff] %v6877_v32  ;;  %v2207_v24 = vmax.f32 %v2205_v31, %v2206_v45  ;;  %v2940_v48 = vadd.f32 %v7223_v35, %v2750_v42  ;;  %v2941_v44 = vadd.f32 %v7224_v37, %v2752_v19  ;;  %v2758_v4 = vadd.f32 %v7226_v56, %v7225_v18  ;;  %v7231_v45 = vld [vmem:[#allocation14_spill] sm:$0xff]  ;;  %v7232_v35 = vld [vmem:[#allocation31_spill] sm:$0xff]  ;;  %v7234_v30 = vld [vmem:[#allocation33_spill] sm:$0xff] }
 0x1cd   :  { %7219 = vst [vmem:[#allocation21_spill] sm:$0xff] %v6873_v47  ;;  %v2188_v60 = vmax.f32 %v2186_v57, %v2187_v27  ;;  %v2194_v17 = vrot.slane %v2193_v34, 1  ;;  %v2201_v55 = vrot.slane %v2200_v11, 1  ;;  %v6886_v54 = vadd.f32 %v7228_v51, %v2754_v53  ;;  %v6888_v26 = vpop.f32.mrf.mxu0  ;;  %v7233_v19 = vld [vmem:[#allocation15_spill] sm:$0xff]  ;;  %v7235_v32 = vld [vmem:[#allocation16_spill] sm:$0xff] }
 0x1ce   :  { %v6883_v33 = vpop.f32.mrf.mxu1  ;;  %7229 = vst [vmem:[#allocation10_spill] sm:$0xff] %v6888_v26  ;;  %v2208_v15 = vrot.slane %v2207_v24, 1  ;;  %v2943_v31 = vadd.f32 %v7230_v2, %v2758_v4  ;;  %v2760_v42 = vadd.f32 %v7232_v35, %v7231_v45  ;;  %v2762_v37 = vadd.f32 %v7234_v30, %v7233_v19  ;;  %v7237_v2 = vld [vmem:[#allocation28_spill] sm:$0xff] }
 0x1cf   :  { %7227 = vst [vmem:[#allocation18_spill] sm:$0xff] %v6883_v33  ;;  %v2195_v56 = vmax.f32 %v2193_v34, %v2194_v17  ;;  %v2202_v57 = vmax.f32 %v2200_v11, %v2201_v55  ;;  %v2244_v27 = vadd.f32 %v6529_v39, %v2188_v60  ;;  %v2764_v53 = vadd.f32 %v6675_v58, %v7235_v32  ;;  %v6900_v51 = vpop.f32.mrf.mxu0  ;;  %v7236_v33 = vld [vmem:[#allocation26_spill] sm:$0xff] }
 0x1d0   :  { %v6895_v18 = vpop.f32.mrf.mxu1  ;;  %v2209_v26 = vmax.f32 %v2207_v24, %v2208_v15  ;;  %v2944_v4 = vadd.f32 %v7236_v33, %v2760_v42  ;;  %v2945_v47 = vadd.f32 %v7237_v2, %v2762_v37  ;;  %v3101_v45 = vadd.f32 %v6682_v1, %v6801_v12  ;;  %v7238_v60 = vld [vmem:[#allocation30_spill] sm:$0xff]  ;;  %v7239_v24 = vld [vmem:[#allocation32_spill] sm:$0xff]  ;;  %v7241_v2 = vld [vmem:[#allocation35_spill] sm:$0xff] }
 0x1d1   :  { %v2245_v34 = vadd.f32 %v6529_v39, %v2195_v56  ;;  %v2246_v55 = vadd.f32 %v6529_v39, %v2202_v57  ;;  %v2276_v11 = vmax.f32 %v2244_v27, 0.0  ;;  %v2946_v17 = vadd.f32 %v7238_v60, %v2764_v53  ;;  %v6911_v58 = vpop.f32.mrf.mxu0  ;;  %v7240_v27 = vld [vmem:[#allocation34_spill] sm:$0xff] }
 0x1d2   :  { %v6906_v35 = vpop.f32.mrf.mxu1  ;;  %v2247_v32 = vadd.f32 %v6529_v39, %v2209_v26  ;;  %v3346_v33 = vadd.f32 %v7239_v24, %v3101_v45  ;;  %v3102_v15 = vadd.f32 %v6690_v49, %v6804_v38  ;;  %v3103_v1 = vadd.f32 %v6698_v63, %v6807_v9 }
 0x1d3   :  { %v2277_v42 = vmax.f32 %v2245_v34, 0.0  ;;  %v2278_v19 = vmax.f32 %v2246_v55, 0.0  ;;  %v2367_v30 = vrot.slane %v2276_v11, 4  ;;  %v3104_v37 = vadd.f32 %v6709_v40, %v6828_v6  ;;  %v3512_v56 = vpop.f32.mrf.mxu0  ;;  %v7242_v6 = vld [vmem:[#allocation36_spill] sm:$0xff] }
 0x1d4   :  { %v6919_v12 = vpop.f32.mrf.mxu1  ;;  %v2279_v57 = vmax.f32 %v2247_v32, 0.0  ;;  %v3347_v39 = vadd.f32 %v7240_v27, %v3102_v15  ;;  %v3348_v26 = vadd.f32 %v6677_v28, %v3103_v1  ;;  %v3105_v49 = vadd.f32 %v6716_v29, %v6831_v21  ;;  %v7243_v11 = vld [vmem:[#allocation40_spill] sm:$0xff]  ;;  %v7244_v28 = vld [vmem:[#allocation42_spill] sm:$0xff] }
 0x1d5   :  { %v2368_v63 = vsel %vm2322_vm11, %v2367_v30, %v6839_v50  ;;  %v2369_v9 = vrot.slane %v2277_v42, 3  ;;  %v2371_v53 = vrot.slane %v2278_v19, 2  ;;  %v3349_v45 = vadd.f32 %v7241_v2, %v3104_v37  ;;  %v3514_v34 = vpop.f32.mrf.mxu0  ;;  %v7245_v50 = vld [vmem:[#allocation44_spill] sm:$0xff]  ;;  %v7246_v15 = vld [vmem:[#allocation46_spill] sm:$0xff] }
 0x1d6   :  { %v6927_v38 = vpop.f32.mrf.mxu1  ;;  %v2373_v40 = vrot.slane %v2279_v57, 1  ;;  %v3350_v55 = vadd.f32 %v7242_v6, %v3105_v49  ;;  %v3106_v60 = vadd.f32 %v7243_v11, %v6852_v10  ;;  %v3107_v32 = vadd.f32 %v7244_v28, %v6855_v22  ;;  %v7247_v42 = vld [vmem:[#allocation48_spill] sm:$0xff]  ;;  %v7248_v57 = vld [vmem:[#allocation37_spill] sm:$0xff]  ;;  %v7249_v27 = vld [vmem:[#allocation38_spill] sm:$0xff] }
 0x1d7   :  { %v2370_v21 = vsel %vm2325_vm12, %v2369_v9, %v2368_v63  ;;  %v3108_v24 = vadd.f32 %v7245_v50, %v6862_v14  ;;  %v3109_v1 = vadd.f32 %v7246_v15, %v6867_v13  ;;  %v3110_v19 = vadd.f32 %v7247_v42, %v2940_v48  ;;  %v3518_v30 = vpop.f32.mrf.mxu0  ;;  %v7250_v9 = vld [vmem:[#allocation39_spill] sm:$0xff]  ;;  %v7251_v14 = vld [vmem:[#allocation41_spill] sm:$0xff] }
 0x1d8   :  { %v6937_v29 = vpop.f32.mrf.mxu1  ;;  %v2372_v37 = vsel %vm2328_vm13, %v2371_v53, %v2370_v21  ;;  %v3351_v10 = vadd.f32 %v7248_v57, %v3106_v60  ;;  %v3352_v49 = vadd.f32 %v7249_v27, %v3107_v32  ;;  %v3111_v22 = vadd.f32 %v6753_v36, %v2941_v44  ;;  %v7252_v28 = vld [vmem:[#allocation43_spill] sm:$0xff]  ;;  %v7253_v48 = vld [vmem:[#allocation45_spill] sm:$0xff]  ;;  %v7256_v27 = vld [vmem:[#allocation50_spill] sm:$0xff] }
 0x1d9   :  { %v2374_v63 = vsel %vm2331_vm14, %v2373_v40, %v2372_v37  ;;  %v3353_v6 = vadd.f32 %v7250_v9, %v3108_v24  ;;  %v3354_v11 = vadd.f32 %v7251_v14, %v3109_v1  ;;  %v3355_v13 = vadd.f32 %v7252_v28, %v3110_v19  ;;  %v3520_v50 = vpop.f32.mrf.mxu0  ;;  %v7254_v42 = vld [vmem:[#allocation47_spill] sm:$0xff]  ;;  %v7255_v37 = vld [vmem:[#allocation49_spill] sm:$0xff] }
 0x1da   :  { %v3694_v2 = vpop.f32.mrf.mxu1  ;;  %2382 = vst [vmem:[#allocation5 + $0x18] sm:$0xff] %v2374_v63  ;;  %v3356_v15 = vadd.f32 %v7253_v48, %v3111_v22  ;;  %v3112_v53 = vadd.f32 %v6758_v20, %v6886_v54  ;;  %v3113_v60 = vadd.f32 %v6763_v5, %v2943_v31  ;;  %v3114_v36 = vadd.f32 %v6769_v59, %v2944_v4  ;;  %v7257_v59 = vld [vmem:[#allocation51_spill] sm:$0xff] }
 0x1db   :  { %v3115_v40 = vadd.f32 %v6777_v0, %v2945_v47  ;;  %v3116_v32 = vadd.f32 %v6787_v8, %v2946_v17  ;;  %v3527_v21 = vadd.f32 %v6798_v41, %v3346_v33  ;;  %v3528_v24 = vadd.f32 %v6812_v7, %v3347_v39  ;;  %v3522_v1 = vpop.f32.mrf.mxu0 }
 0x1dc   :  { %v4084_v44 = vpop.f32.mrf.mxu1  ;;  %v3357_v19 = vadd.f32 %v7254_v42, %v3112_v53  ;;  %v3358_v57 = vadd.f32 %v7255_v37, %v3113_v60  ;;  %v3359_v20 = vadd.f32 %v7256_v27, %v3114_v36  ;;  %v3529_v5 = vadd.f32 %v6823_v23, %v3348_v26  ;;  %v7260_v53 = vld [vmem:[#allocation52_spill] sm:$0xff]  ;;  %v7261_v36 = vld [vmem:[#allocation17_spill] sm:$0xff] }
 0x1dd   :  { %v3360_v31 = vadd.f32 %v7257_v59, %v3115_v40  ;;  %v3361_v0 = vadd.f32 %v6766_v62, %v3116_v32  ;;  %v3524_v47 = vpop.f32.mrf.mxu0  ;;  %v3530_v8 = vadd.f32 %v6836_v52, %v3349_v45  ;;  %v3697_v41 = vadd.f32 %v6772_v16, %v3527_v21  ;;  %v7258_v52 = vld [vmem:[#allocation21_spill] sm:$0xff]  ;;  %v7259_v16 = vld [vmem:[#allocation18_spill] sm:$0xff] }
 0x1de   :  { %v4086_v54 = vpop.f32.mrf.mxu1  ;;  %v3535_v7 = vadd.f32 %v6900_v51, %v3354_v11  ;;  %v3536_v4 = vadd.f32 %v6911_v58, %v3355_v13  ;;  %v3698_v39 = vadd.f32 %v6781_v25, %v3528_v24  ;;  %v3699_v23 = vadd.f32 %v6794_v43, %v3529_v5  ;;  %v7262_v40 = vld [vmem:[#allocation10_spill] sm:$0xff] }
 0x1df   :  { %v3903_v17 = vpop.f32.mrf.mxu0  ;;  %v3531_v26 = vadd.f32 %v6849_v46, %v3350_v55  ;;  %v3537_v22 = vadd.f32 %v3512_v56, %v3356_v15  ;;  %v3700_v62 = vadd.f32 %v6809_v61, %v3530_v8  ;;  %v3532_v63 = vadd.f32 %v6864_v3, %v3351_v10 }
 0x1e0   :  { %v4088_v33 = vpop.f32.mrf.mxu1  ;;  %v6978_v45 = vadd.f32 %v7258_v52, %v3535_v7  ;;  %v6981_v51 = vadd.f32 %v7259_v16, %v3536_v4  ;;  %v3538_v25 = vadd.f32 %v3514_v34, %v3357_v19  ;;  %v3539_v14 = vadd.f32 %v3518_v30, %v3358_v57  ;;  %v7264_v57 = vld [vmem:[#allocation8_spill] sm:$0xff] }
 0x1e1   :  { %v3905_v58 = vpop.f32.mrf.mxu0  ;;  %v6984_v9 = vadd.f32 %v6895_v18, %v3537_v22  ;;  %v3540_v43 = vadd.f32 %v3520_v50, %v3359_v20  ;;  %v3541_v11 = vadd.f32 %v3522_v1, %v3360_v31  ;;  %v3542_v46 = vadd.f32 %v3524_v47, %v3361_v0  ;;  %v7263_v1 = vld [vmem:[#allocation53_spill] sm:$0xff]  ;;  %v7265_v20 = vld [vmem:[#allocation54_spill] sm:$0xff] }
 0x1e2   :  { %v3942_v56 = vadd.f32 %v3903_v17, %v3697_v41  ;;  %v3943_v55 = vadd.f32 %v3905_v58, %v3698_v39  ;;  %v4090_v28 = vpop.f32.mrf.mxu1  ;;  %v6987_v3 = vadd.f32 %v6906_v35, %v3538_v25  ;;  %v6990_v10 = vadd.f32 %v6919_v12, %v3539_v14 }
 0x1e3   :  { %v3907_v61 = vpop.f32.mrf.mxu0  ;;  %v6993_v13 = vadd.f32 %v6927_v38, %v3540_v43  ;;  %v6996_v34 = vadd.f32 %v6937_v29, %v3541_v11  ;;  %v6998_v30 = vadd.f32 %v3694_v2, %v3542_v46  ;;  %v3701_v60 = vadd.f32 %v7260_v53, %v3531_v26 }
 0x1e4   :  { %v3944_v18 = vadd.f32 %v3907_v61, %v3699_v23  ;;  %v4123_v50 = vadd.f32 %v4084_v44, %v3942_v56  ;;  %v4124_v48 = vadd.f32 %v4086_v54, %v3943_v55  ;;  %v3533_v35 = vadd.f32 %v7261_v36, %v3352_v49  ;;  %v4094_v38 = vpop.f32.mrf.mxu1  ;;  %v7266_v54 = vld [vmem:[#allocation9_spill] sm:$0xff] }
 0x1e5   :  { %v3909_v15 = vpop.f32.mrf.mxu0  ;;  %v3534_v32 = vadd.f32 %v7262_v40, %v3353_v6  ;;  %v3702_v42 = vadd.f32 %v7263_v1, %v3532_v63 }
 0x1e6   :  { %v3945_v12 = vadd.f32 %v3909_v15, %v3700_v62  ;;  %v4139_v21 = vmax.f32 %v4123_v50, %v4124_v48  ;;  %v4125_v19 = vadd.f32 %v4088_v33, %v3944_v18  ;;  %v3703_v5 = vadd.f32 %v7265_v20, %v3533_v35  ;;  %v4096_v41 = vpop.f32.mrf.mxu1 }
 0x1e7   :  { %v3913_v24 = vpop.f32.mrf.mxu0  ;;  %v7007_v59 = vadd.f32 %v7266_v54, %v3534_v32 }
 0x1e8   :  { %v4126_v29 = vadd.f32 %v4090_v28, %v3945_v12  ;;  %v3946_v37 = vadd.f32 %v3913_v24, %v3701_v60  ;;  %v4155_v2 = vcombine.high %v4139_v21, %v4139_v21  ;;  %v4162_v44 = vrot.slane %v4139_v21, %v7264_v57 }
 0x1e9   :  { %v3915_v27 = vpop.f32.mrf.mxu0 }
 0x1ea   :  { %v4140_v49 = vmax.f32 %v4125_v19, %v4126_v29  ;;  %v3947_v6 = vadd.f32 %v3915_v27, %v3702_v42  ;;  %v4169_v31 = vrot.slane %v4155_v2, %v7264_v57  ;;  %v4170_v0 = vcombine.high %v4162_v44, %v4162_v44 }
 0x1eb   :  { %v4323_v47 = vsel %vm1985_vm7, %v4162_v44, -inf  ;;  %v4127_v8 = vadd.f32 %v4094_v38, %v3946_v37  ;;  %v3917_v7 = vpop.f32.mrf.mxu0 }
 0x1ec   :  { %v4324_v4 = vrot.slane %v4323_v47, 4  ;;  %v4172_v17 = vcombine.high %v4140_v49, %v4140_v49  ;;  %v4179_v33 = vrot.slane %v4140_v49, %v7264_v57  ;;  %v4128_v39 = vadd.f32 %v4096_v41, %v3947_v6 }
 0x1ed   :  { %v4171_v23 = vcombine.high %v4169_v31, %v4169_v31  ;;  %v4330_v26 = vsel %vm1985_vm7, %v4170_v0, -inf  ;;  %v4337_v22 = vsel %vm1985_vm7, %v4169_v31, -inf  ;;  %v7014_v62 = vadd.f32 %v3917_v7, %v3703_v5 }
 0x1ee   :  { %v4325_v63 = vmax.f32 %v4323_v47, %v4324_v4  ;;  %v4331_v52 = vrot.slane %v4330_v26, 4  ;;  %v4338_v16 = vrot.slane %v4337_v22, 4  ;;  %v4186_v58 = vrot.slane %v4172_v17, %v7264_v57 }
 0x1ef   :  { %v4344_v25 = vsel %vm1985_vm7, %v4171_v23, -inf  ;;  %v4187_v14 = vcombine.high %v4179_v33, %v4179_v33  ;;  %v4351_v43 = vsel %vm1985_vm7, %v4179_v33, -inf  ;;  %v7019_v11 = vmax.f32 %v4127_v8, %v4128_v39  ;;  %v7027_v8 = vld [vmem:[%s7155_s2] ss:$0 sm:$0xff]  ;;  %v3919_v39 = vpop.f32.mrf.mxu0  ;;  %s5301_s2 = smov [#allocation5]  }
 0x1f0   :  { %v4326_v46 = vrot.slane %v4325_v63, 2  ;;  %v4332_v56 = vmax.f32 %v4330_v26, %v4331_v52  ;;  %v4339_v55 = vmax.f32 %v4337_v22, %v4338_v16  ;;  %v4345_v61 = vrot.slane %v4344_v25, 4  ;;  %s4713_s8 = sshll.u32 %s5301_s2, 4  ;;  %s4714_s8 = int_to_ptr.vmem [resolvable:$true] %s4713_s8 }
 0x1f1   :  { %v4188_v28 = vcombine.high %v4186_v58, %v4186_v58  ;;  %v4352_v18 = vrot.slane %v4351_v43, 4  ;;  %v4358_v50 = vsel %vm1985_vm7, %v4187_v14, -inf  ;;  %v4365_v48 = vsel %vm1985_vm7, %v4186_v58, -inf  ;;  %s5272_s9 = scalar_lea.vmem %s4714_s8, 1024  ;;  %p5277_p6 = scmp.lt.s32.totalorder %s4714_s8, %s4714_s8 }
 0x1f2   :  { %v4327_v15 = vmax.f32 %v4325_v63, %v4326_v46  ;;  %v4333_v53 = vrot.slane %v4332_v56, 2  ;;  %v4340_v60 = vrot.slane %v4339_v55, 2  ;;  %v4346_v36 = vmax.f32 %v4344_v25, %v4345_v61  ;;  %p5273_p5 = scmp.ne.s32.totalorder %s4714_s8, %s5272_s9  ;;  %p5278_p7 = scmp.lt.s32.totalorder %s5272_s9, %s5272_s9 }
 0x1f3   :  { %v4353_v35 = vmax.f32 %v4351_v43, %v4352_v18  ;;  %v4359_v40 = vrot.slane %v4358_v50, 4  ;;  %v4366_v32 = vrot.slane %v4365_v48, 4  ;;  %v4372_v12 = vsel %vm1985_vm7, %v4188_v28, -inf }
 0x1f4   :  { %v4328_v21 = vrot.slane %v4327_v15, 1  ;;  %v4334_v24 = vmax.f32 %v4332_v56, %v4333_v53  ;;  %v4341_v38 = vmax.f32 %v4339_v55, %v4340_v60  ;;  %v4347_v1 = vrot.slane %v4346_v36, 2  ;;  %p5279_p8 = por %p5278_p7, %p5277_p6 }
 0x1f5   :  { %v4354_v42 = vrot.slane %v4353_v35, 2  ;;  %v4360_v19 = vmax.f32 %v4358_v50, %v4359_v40  ;;  %v4367_v29 = vmax.f32 %v4365_v48, %v4366_v32  ;;  %v4373_v37 = vrot.slane %v4372_v12, 4  ;;  %v4098_v50 = vpop.f32.mrf.mxu1  ;;  %v3923_v48 = vpop.f32.mrf.mxu0 }
 0x1f6   :  { %v4329_v2 = vmax.f32 %v4327_v15, %v4328_v21  ;;  %v4335_v44 = vrot.slane %v4334_v24, 1  ;;  %v4342_v27 = vrot.slane %v4341_v38, 1  ;;  %v4348_v20 = vmax.f32 %v4346_v36, %v4347_v1  ;;  %p5280_p9 = pnand %p5279_p8, %p5273_p5 }
 0x1f7   :  { %v4355_v5 = vmax.f32 %v4353_v35, %v4354_v42  ;;  %v4361_v54 = vrot.slane %v4360_v19, 2  ;;  %v4368_v49 = vrot.slane %v4367_v29, 2  ;;  %v4374_v6 = vmax.f32 %v4372_v12, %v4373_v37 }
 0x1f8   :  { %v4336_v31 = vmax.f32 %v4334_v24, %v4335_v44  ;;  %v4343_v0 = vmax.f32 %v4341_v38, %v4342_v27  ;;  %v4349_v47 = vrot.slane %v4348_v20, 1  ;;  %v4547_v41 = vadd.f32 %v7027_v8, %v4329_v2  ;;  %v4100_v2 = vpop.f32.mrf.mxu1 }
 0x1f9   :  { %v4356_v7 = vrot.slane %v4355_v5, 1  ;;  %v4362_v4 = vmax.f32 %v4360_v19, %v4361_v54  ;;  %v4369_v17 = vmax.f32 %v4367_v29, %v4368_v49  ;;  %v4375_v33 = vrot.slane %v4374_v6, 2 }
 0x1fa   :  { %v4350_v23 = vmax.f32 %v4348_v20, %v4349_v47  ;;  %v4548_v26 = vadd.f32 %v7027_v8, %v4336_v31  ;;  %v4549_v22 = vadd.f32 %v7027_v8, %v4343_v0  ;;  %v4579_v63 = vmax.f32 %v4547_v41, 0.0 }
 0x1fb   :  { %v4357_v52 = vmax.f32 %v4355_v5, %v4356_v7  ;;  %v4363_v16 = vrot.slane %v4362_v4, 1  ;;  %v4370_v58 = vrot.slane %v4369_v17, 1  ;;  %v4376_v25 = vmax.f32 %v4374_v6, %v4375_v33 }
 0x1fc   :  { %v4550_v14 = vadd.f32 %v7027_v8, %v4350_v23  ;;  %v4580_v43 = vmax.f32 %v4548_v26, 0.0  ;;  %v4581_v46 = vmax.f32 %v4549_v22, 0.0  ;;  %v4189_v56 = vcombine.high %v7019_v11, %v7019_v11  ;;  %v4104_v26 = vpop.f32.mrf.mxu1 }
 0x1fd   :  { %v4364_v55 = vmax.f32 %v4362_v4, %v4363_v16  ;;  %v4371_v61 = vmax.f32 %v4369_v17, %v4370_v58  ;;  %v4377_v28 = vrot.slane %v4376_v25, 1  ;;  %v4551_v18 = vadd.f32 %v7027_v8, %v4357_v52 }
 0x1fe   :  { %v4582_v15 = vmax.f32 %v4550_v14, 0.0  ;;  %v4643_v53 = vrot.slane %v4580_v43, 7  ;;  %v4645_v60 = vrot.slane %v4581_v46, 6  ;;  %v4196_v36 = vrot.slane %v7019_v11, %v7264_v57  ;;  %v3925_v11 = vpop.f32.mrf.mxu0 }
 0x1ff   :  { %v4378_v35 = vmax.f32 %v4376_v25, %v4377_v28  ;;  %v4552_v40 = vadd.f32 %v7027_v8, %v4364_v55  ;;  %v4553_v32 = vadd.f32 %v7027_v8, %v4371_v61  ;;  %v4583_v12 = vmax.f32 %v4551_v18, 0.0 }
 0x200   :  { %v4644_v21 = vsel %vm2313_vm8, %v4643_v53, %v4579_v63  ;;  %v4647_v24 = vrot.slane %v4582_v15, 5  ;;  %v4203_v38 = vrot.slane %v4189_v56, %v7264_v57  ;;  %v4204_v1 = vcombine.high %v4196_v36, %v4196_v36  ;;  %v3927_v22 = vpop.f32.mrf.mxu0 }
 0x201   :  { %v4646_v42 = vsel %vm2316_vm9, %v4645_v60, %v4644_v21  ;;  %v4554_v19 = vadd.f32 %v7027_v8, %v4378_v35  ;;  %v4584_v29 = vmax.f32 %v4552_v40, 0.0  ;;  %v4585_v37 = vmax.f32 %v4553_v32, 0.0  ;;  %v4106_v60 = vpop.f32.mrf.mxu1 }
 0x202   :  { %v4648_v44 = vsel %vm2319_vm10, %v4647_v24, %v4646_v42  ;;  %v4649_v27 = vrot.slane %v4583_v12, 4  ;;  %v4205_v20 = vcombine.high %v4203_v38, %v4203_v38  ;;  %v4379_v5 = vsel %vm1985_vm7, %v4196_v36, -inf  ;;  %v3929_v36 = vpop.f32.mrf.mxu0 }
 0x203   :  { %v4586_v54 = vmax.f32 %v4554_v19, 0.0  ;;  %v4651_v49 = vrot.slane %v4584_v29, 3  ;;  %v4653_v6 = vrot.slane %v4585_v37, 2  ;;  %v4380_v31 = vrot.slane %v4379_v5, 4 }
 0x204   :  { %v4650_v0 = vsel %vm2322_vm11, %v4649_v27, %v4648_v44  ;;  %v4386_v47 = vsel %vm1985_vm7, %v4204_v1, -inf  ;;  %v4393_v41 = vsel %vm1985_vm7, %v4203_v38, -inf  ;;  %v4400_v7 = vsel %vm1985_vm7, %v4205_v20, -inf }
 0x205   :  { %v4652_v4 = vsel %vm2325_vm12, %v4651_v49, %v4650_v0  ;;  %v4655_v17 = vrot.slane %v4586_v54, 1  ;;  %v4381_v33 = vmax.f32 %v4379_v5, %v4380_v31  ;;  %v4387_v23 = vrot.slane %v4386_v47, 4 }
 0x206   :  { %v4654_v63 = vsel %vm2328_vm13, %v4653_v6, %v4652_v4  ;;  %v4394_v52 = vrot.slane %v4393_v41, 4  ;;  %v4401_v16 = vrot.slane %v4400_v7, 4  ;;  %v3949_v43 = vadd.f32 %v3919_v39, %v7007_v59 }
 0x207   :  { %v4656_v58 = vsel %vm2331_vm14, %v4655_v17, %v4654_v63  ;;  %v4382_v25 = vrot.slane %v4381_v33, 2  ;;  %v4388_v14 = vmax.f32 %v4386_v47, %v4387_v23  ;;  %v3950_v55 = vadd.f32 %v3923_v48, %v6978_v45 }
 0x208   :  { %4704 = vst [vmem:[#allocation5 + $0x20] sm:$0xff] %v4656_v58  ;;  %v4395_v46 = vmax.f32 %v4393_v41, %v4394_v52  ;;  %v4402_v56 = vmax.f32 %v4400_v7, %v4401_v16  ;;  %v3951_v61 = vadd.f32 %v3925_v11, %v6981_v51  ;;  %v4129_v15 = vadd.f32 %v4098_v50, %v7014_v62 }
 0x209   :  { %v4383_v28 = vmax.f32 %v4381_v33, %v4382_v25  ;;  %v4389_v18 = vrot.slane %v4388_v14, 2  ;;  %v4130_v53 = vadd.f32 %v4100_v2, %v3949_v43  ;;  %v4131_v32 = vadd.f32 %v4104_v26, %v3950_v55 }
 0x20a   :  { %v4396_v35 = vrot.slane %v4395_v46, 2  ;;  %v4403_v40 = vrot.slane %v4402_v56, 2  ;;  %v4132_v12 = vadd.f32 %v4106_v60, %v3951_v61  ;;  %v7058_v24 = vadd.f32 %v3927_v22, %v6984_v9 }
 0x20b   :  { %v4384_v21 = vrot.slane %v4383_v28, 1  ;;  %v4390_v59 = vmax.f32 %v4388_v14, %v4389_v18  ;;  %v4142_v39 = vmax.f32 %v4129_v15, %v4130_v53  ;;  %v7061_v38 = vadd.f32 %v3929_v36, %v6987_v3 }
 0x20c   :  { %v4397_v45 = vmax.f32 %v4395_v46, %v4396_v35  ;;  %v4404_v48 = vmax.f32 %v4402_v56, %v4403_v40  ;;  %v4143_v51 = vmax.f32 %v4131_v32, %v4132_v12 }
 0x20d   :  { %v4385_v62 = vmax.f32 %v4383_v28, %v4384_v21  ;;  %v4391_v50 = vrot.slane %v4390_v59, 1  ;;  %v4206_v1 = vcombine.high %v4142_v39, %v4142_v39  ;;  %v4213_v42 = vrot.slane %v4142_v39, %v7264_v57 }
 0x20e   :  { %v4398_v19 = vrot.slane %v4397_v45, 1  ;;  %v4405_v29 = vrot.slane %v4404_v48, 1  ;;  %v4223_v37 = vcombine.high %v4143_v51, %v4143_v51  ;;  %v4230_v2 = vrot.slane %v4143_v51, %v7264_v57 }
 0x20f   :  { %v4392_v11 = vmax.f32 %v4390_v59, %v4391_v50  ;;  %v4555_v9 = vadd.f32 %v7027_v8, %v4385_v62  ;;  %v4220_v44 = vrot.slane %v4206_v1, %v7264_v57  ;;  %v4221_v27 = vcombine.high %v4213_v42, %v4213_v42 }
 0x210   :  { %v4399_v20 = vmax.f32 %v4397_v45, %v4398_v19  ;;  %v4406_v5 = vmax.f32 %v4404_v48, %v4405_v29  ;;  %v4407_v3 = vsel %vm1985_vm7, %v4213_v42, -inf  ;;  %v4237_v54 = vrot.slane %v4223_v37, %v7264_v57 }
 0x211   :  { %v4556_v49 = vadd.f32 %v7027_v8, %v4392_v11  ;;  %v4587_v6 = vmax.f32 %v4555_v9, 0.0  ;;  %v4222_v31 = vcombine.high %v4220_v44, %v4220_v44  ;;  %v4408_v0 = vrot.slane %v4407_v3, 4 }
 0x212   :  { %v4557_v47 = vadd.f32 %v7027_v8, %v4399_v20  ;;  %v4558_v41 = vadd.f32 %v7027_v8, %v4406_v5  ;;  %v4414_v7 = vsel %vm1985_vm7, %v4221_v27, -inf  ;;  %v4421_v4 = vsel %vm1985_vm7, %v4220_v44, -inf  ;;  %v4108_v20 = vpop.f32.mrf.mxu1 }
 0x213   :  { %v4588_v17 = vmax.f32 %v4556_v49, 0.0  ;;  %v4409_v33 = vmax.f32 %v4407_v3, %v4408_v0  ;;  %v4415_v23 = vrot.slane %v4414_v7, 4  ;;  %v4422_v26 = vrot.slane %v4421_v4, 4 }
 0x214   :  { %v4589_v22 = vmax.f32 %v4557_v47, 0.0  ;;  %v4590_v63 = vmax.f32 %v4558_v41, 0.0  ;;  %v4428_v52 = vsel %vm1985_vm7, %v4222_v31, -inf  ;;  %v4238_v16 = vcombine.high %v4230_v2, %v4230_v2  ;;  %v3933_v41 = vpop.f32.mrf.mxu0 }
 0x215   :  { %v4657_v58 = vrot.slane %v4588_v17, 7  ;;  %v4410_v25 = vrot.slane %v4409_v33, 2  ;;  %v4416_v14 = vmax.f32 %v4414_v7, %v4415_v23  ;;  %v4423_v43 = vmax.f32 %v4421_v4, %v4422_v26 }
 0x216   :  { %v4659_v46 = vrot.slane %v4589_v22, 6  ;;  %v4661_v56 = vrot.slane %v4590_v63, 5  ;;  %v4429_v55 = vrot.slane %v4428_v52, 4  ;;  %v4239_v61 = vcombine.high %v4237_v54, %v4237_v54 }
 0x217   :  { %v4658_v28 = vsel %vm2313_vm8, %v4657_v58, %v4587_v6  ;;  %v4411_v18 = vmax.f32 %v4409_v33, %v4410_v25  ;;  %v4417_v15 = vrot.slane %v4416_v14, 2  ;;  %v4424_v53 = vrot.slane %v4423_v43, 2 }
 0x218   :  { %v4660_v60 = vsel %vm2316_vm9, %v4659_v46, %v4658_v28  ;;  %v4430_v36 = vmax.f32 %v4428_v52, %v4429_v55  ;;  %v4435_v35 = vsel %vm1985_vm7, %v4230_v2, -inf  ;;  %v4442_v40 = vsel %vm1985_vm7, %v4238_v16, -inf  ;;  %v4110_v52 = vpop.f32.mrf.mxu1 }
 0x219   :  { %v4412_v32 = vrot.slane %v4411_v18, 1  ;;  %v4418_v12 = vmax.f32 %v4416_v14, %v4417_v15  ;;  %v4425_v21 = vmax.f32 %v4423_v43, %v4424_v53  ;;  %v4662_v59 = vsel %vm2319_vm10, %v4661_v56, %v4660_v60 }
 0x21a   :  { %v4431_v39 = vrot.slane %v4430_v36, 2  ;;  %v4436_v45 = vrot.slane %v4435_v35, 4  ;;  %v4443_v48 = vrot.slane %v4442_v40, 4  ;;  %v4449_v51 = vsel %vm1985_vm7, %v4237_v54, -inf }
 0x21b   :  { %v4413_v62 = vmax.f32 %v4411_v18, %v4412_v32  ;;  %v4419_v50 = vrot.slane %v4418_v12, 1  ;;  %v4426_v1 = vrot.slane %v4425_v21, 1  ;;  %v4450_v42 = vrot.slane %v4449_v51, 4  ;;  %v4114_v32 = vpop.f32.mrf.mxu1 }
 0x21c   :  { %v4432_v19 = vmax.f32 %v4430_v36, %v4431_v39  ;;  %v4437_v29 = vmax.f32 %v4435_v35, %v4436_v45  ;;  %v4444_v37 = vmax.f32 %v4442_v40, %v4443_v48  ;;  %v4456_v2 = vsel %vm1985_vm7, %v4239_v61, -inf  ;;  %v3935_v61 = vpop.f32.mrf.mxu0 }
 0x21d   :  { %v4420_v11 = vmax.f32 %v4418_v12, %v4419_v50  ;;  %v4427_v9 = vmax.f32 %v4425_v21, %v4426_v1  ;;  %v4559_v44 = vadd.f32 %v7027_v8, %v4413_v62  ;;  %v4451_v27 = vmax.f32 %v4449_v51, %v4450_v42 }
 0x21e   :  { %v4433_v5 = vrot.slane %v4432_v19, 1  ;;  %v4438_v3 = vrot.slane %v4437_v29, 2  ;;  %v4445_v49 = vrot.slane %v4444_v37, 2  ;;  %v4457_v6 = vrot.slane %v4456_v2, 4  ;;  %v3937_v50 = vpop.f32.mrf.mxu0 }
 0x21f   :  { %v4560_v54 = vadd.f32 %v7027_v8, %v4420_v11  ;;  %v4561_v31 = vadd.f32 %v7027_v8, %v4427_v9  ;;  %v4591_v0 = vmax.f32 %v4559_v44, 0.0  ;;  %v4452_v47 = vrot.slane %v4451_v27, 2 }
 0x220   :  { %v4434_v7 = vmax.f32 %v4432_v19, %v4433_v5  ;;  %v4439_v4 = vmax.f32 %v4437_v29, %v4438_v3  ;;  %v4446_v17 = vmax.f32 %v4444_v37, %v4445_v49  ;;  %v4458_v33 = vmax.f32 %v4456_v2, %v4457_v6  ;;  %v3939_v3 = vpop.f32.mrf.mxu0 }
 0x221   :  { %v4592_v23 = vmax.f32 %v4560_v54, 0.0  ;;  %v4593_v26 = vmax.f32 %v4561_v31, 0.0  ;;  %v4663_v22 = vrot.slane %v4591_v0, 4  ;;  %v4453_v63 = vmax.f32 %v4451_v27, %v4452_v47 }
 0x222   :  { %v4562_v16 = vadd.f32 %v7027_v8, %v4434_v7  ;;  %v4440_v58 = vrot.slane %v4439_v4, 1  ;;  %v4447_v25 = vrot.slane %v4446_v17, 1  ;;  %v4459_v14 = vrot.slane %v4458_v33, 2 }
 0x223   :  { %v4664_v43 = vsel %vm2322_vm11, %v4663_v22, %v4662_v59  ;;  %v4665_v46 = vrot.slane %v4592_v23, 3  ;;  %v4667_v56 = vrot.slane %v4593_v26, 2  ;;  %v4454_v55 = vrot.slane %v4453_v63, 1 }
 0x224   :  { %v4594_v28 = vmax.f32 %v4562_v16, 0.0  ;;  %v4441_v18 = vmax.f32 %v4439_v4, %v4440_v58  ;;  %v4448_v15 = vmax.f32 %v4446_v17, %v4447_v25  ;;  %v4460_v53 = vmax.f32 %v4458_v33, %v4459_v14 }
 0x225   :  { %v4666_v60 = vsel %vm2325_vm12, %v4665_v46, %v4664_v43  ;;  %v4455_v36 = vmax.f32 %v4453_v63, %v4454_v55  ;;  %v4133_v35 = vadd.f32 %v4108_v20, %v7058_v24  ;;  %v4134_v40 = vadd.f32 %v4110_v52, %v7061_v38 }
 0x226   :  { %v4668_v12 = vsel %vm2328_vm13, %v4667_v56, %v4666_v60  ;;  %v4669_v21 = vrot.slane %v4594_v28, 1  ;;  %v4461_v59 = vrot.slane %v4460_v53, 1  ;;  %v3954_v39 = vadd.f32 %v3933_v41, %v6990_v10  ;;  %v4116_v10 = vpop.f32.mrf.mxu1 }
 0x227   :  { %v4563_v45 = vadd.f32 %v7027_v8, %v4441_v18  ;;  %v4564_v48 = vadd.f32 %v7027_v8, %v4448_v15  ;;  %v4565_v51 = vadd.f32 %v7027_v8, %v4455_v36  ;;  %v4144_v62 = vmax.f32 %v4133_v35, %v4134_v40 }
 0x228   :  { %v4670_v1 = vsel %vm2331_vm14, %v4669_v21, %v4668_v12  ;;  %v4462_v24 = vmax.f32 %v4460_v53, %v4461_v59  ;;  %v3955_v38 = vadd.f32 %v3935_v61, %v6993_v13  ;;  %v4135_v11 = vadd.f32 %v4114_v32, %v3954_v39 }
 0x229   :  { %4705 = vst [vmem:[#allocation5 + $0x28] sm:$0xff] %v4670_v1  ;;  %v4596_v42 = vmax.f32 %v4564_v48, 0.0  ;;  %v4597_v19 = vmax.f32 %v4565_v51, 0.0  ;;  %v4240_v29 = vcombine.high %v4144_v62, %v4144_v62  ;;  %v4247_v37 = vrot.slane %v4144_v62, %v7264_v57 }
 0x22a   :  { %v4566_v2 = vadd.f32 %v7027_v8, %v4462_v24  ;;  %v4136_v9 = vadd.f32 %v4116_v10, %v3955_v38  ;;  %v4595_v44 = vmax.f32 %v4563_v45, 0.0  ;;  %v7105_v17 = vadd.f32 %v3937_v50, %v6996_v34 }
 0x22b   :  { %v4671_v27 = vrot.slane %v4596_v42, 7  ;;  %v4254_v20 = vrot.slane %v4240_v29, %v7264_v57  ;;  %v4255_v5 = vcombine.high %v4247_v37, %v4247_v37  ;;  %v4673_v6 = vrot.slane %v4597_v19, 6 }
 0x22c   :  { %v4598_v49 = vmax.f32 %v4566_v2, 0.0  ;;  %v4463_v13 = vsel %vm1985_vm7, %v4247_v37, -inf  ;;  %v4145_v54 = vmax.f32 %v4135_v11, %v4136_v9  ;;  %v3957_v33 = vadd.f32 %v3939_v3, %v6998_v30  ;;  %v4118_v37 = vpop.f32.mrf.mxu1 }
 0x22d   :  { %v4672_v31 = vsel %vm2313_vm8, %v4671_v27, %v4595_v44  ;;  %v4256_v0 = vcombine.high %v4254_v20, %v4254_v20  ;;  %v4464_v47 = vrot.slane %v4463_v13, 4  ;;  %v4470_v41 = vsel %vm1985_vm7, %v4255_v5, -inf }
 0x22e   :  { %v4471_v7 = vrot.slane %v4470_v41, 4  ;;  %v4477_v4 = vsel %vm1985_vm7, %v4254_v20, -inf  ;;  %v4257_v63 = vcombine.high %v4145_v54, %v4145_v54  ;;  %v4674_v52 = vsel %vm2316_vm9, %v4673_v6, %v4672_v31 }
 0x22f   :  { %v4465_v23 = vmax.f32 %v4463_v13, %v4464_v47  ;;  %v4478_v26 = vrot.slane %v4477_v4, 4  ;;  %v4484_v22 = vsel %vm1985_vm7, %v4256_v0, -inf  ;;  %v4264_v25 = vrot.slane %v4145_v54, %v7264_v57 }
 0x230   :  { %v4472_v16 = vmax.f32 %v4470_v41, %v4471_v7  ;;  %v4485_v58 = vrot.slane %v4484_v22, 4  ;;  %v4675_v14 = vrot.slane %v4598_v49, 5  ;;  %v4271_v56 = vrot.slane %v4257_v63, %v7264_v57  ;;  %v4120_v41 = vpop.f32.mrf.mxu1 }
 0x231   :  { %v4466_v43 = vrot.slane %v4465_v23, 2  ;;  %v4479_v46 = vmax.f32 %v4477_v4, %v4478_v26  ;;  %v4272_v61 = vcombine.high %v4264_v25, %v4264_v25  ;;  %v4491_v30 = vsel %vm1985_vm7, %v4264_v25, -inf }
 0x232   :  { %v4473_v34 = vrot.slane %v4472_v16, 2  ;;  %v4486_v55 = vmax.f32 %v4484_v22, %v4485_v58  ;;  %v4273_v15 = vcombine.high %v4271_v56, %v4271_v56  ;;  %v4492_v53 = vrot.slane %v4491_v30, 4 }
 0x233   :  { %v4467_v28 = vmax.f32 %v4465_v23, %v4466_v43  ;;  %v4480_v18 = vrot.slane %v4479_v46, 2  ;;  %v4498_v35 = vsel %vm1985_vm7, %v4272_v61, -inf  ;;  %v4505_v40 = vsel %vm1985_vm7, %v4271_v56, -inf }
 0x234   :  { %v4474_v60 = vmax.f32 %v4472_v16, %v4473_v34  ;;  %v4487_v36 = vrot.slane %v4486_v55, 2  ;;  %v4493_v21 = vmax.f32 %v4491_v30, %v4492_v53  ;;  %v4499_v59 = vrot.slane %v4498_v35, 4 }
 0x235   :  { %v4468_v32 = vrot.slane %v4467_v28, 1  ;;  %v4481_v12 = vmax.f32 %v4479_v46, %v4480_v18  ;;  %v4506_v48 = vrot.slane %v4505_v40, 4  ;;  %v4512_v51 = vsel %vm1985_vm7, %v4273_v15, -inf }
 0x236   :  { %v4475_v39 = vrot.slane %v4474_v60, 1  ;;  %v4488_v45 = vmax.f32 %v4486_v55, %v4487_v36  ;;  %v4494_v1 = vrot.slane %v4493_v21, 2  ;;  %v4500_v24 = vmax.f32 %v4498_v35, %v4499_v59 }
 0x237   :  { %v4469_v62 = vmax.f32 %v4467_v28, %v4468_v32  ;;  %v4482_v50 = vrot.slane %v4481_v12, 1  ;;  %v4507_v19 = vmax.f32 %v4505_v40, %v4506_v48  ;;  %v4513_v29 = vrot.slane %v4512_v51, 4 }
 0x238   :  { %v4476_v38 = vmax.f32 %v4474_v60, %v4475_v39  ;;  %v4489_v42 = vrot.slane %v4488_v45, 1  ;;  %v4676_v11 = vsel %vm2319_vm10, %v4675_v14, %v4674_v52  ;;  %v4501_v9 = vrot.slane %v4500_v24, 2 }
 0x239   :  { %v4483_v10 = vmax.f32 %v4481_v12, %v4482_v50  ;;  %v4567_v2 = vadd.f32 %v7027_v8, %v4469_v62  ;;  %v4508_v20 = vrot.slane %v4507_v19, 2  ;;  %v4514_v5 = vmax.f32 %v4512_v51, %v4513_v29 }
 0x23a   :  { %v4490_v44 = vmax.f32 %v4488_v45, %v4489_v42  ;;  %v4568_v27 = vadd.f32 %v7027_v8, %v4476_v38  ;;  %v4495_v6 = vmax.f32 %v4493_v21, %v4494_v1  ;;  %v4502_v13 = vmax.f32 %v4500_v24, %v4501_v9 }
 0x23b   :  { %v4569_v3 = vadd.f32 %v7027_v8, %v4483_v10  ;;  %v4599_v49 = vmax.f32 %v4567_v2, 0.0  ;;  %v4509_v0 = vmax.f32 %v4507_v19, %v4508_v20  ;;  %v4515_v47 = vrot.slane %v4514_v5, 2 }
 0x23c   :  { %v4570_v54 = vadd.f32 %v7027_v8, %v4490_v44  ;;  %v4600_v31 = vmax.f32 %v4568_v27, 0.0  ;;  %v4503_v23 = vrot.slane %v4502_v13, 1  ;;  %v4138_v26 = vadd.f32 %v4120_v41, %v3957_v33 }
 0x23d   :  { %v4601_v7 = vmax.f32 %v4569_v3, 0.0  ;;  %v4677_v4 = vrot.slane %v4599_v49, 4  ;;  %v4510_v52 = vrot.slane %v4509_v0, 1  ;;  %v4516_v16 = vmax.f32 %v4514_v5, %v4515_v47 }
 0x23e   :  { %v4602_v22 = vmax.f32 %v4570_v54, 0.0  ;;  %v4679_v63 = vrot.slane %v4600_v31, 3  ;;  %v4504_v14 = vmax.f32 %v4502_v13, %v4503_v23  ;;  %v4137_v43 = vadd.f32 %v4118_v37, %v7105_v17 }
 0x23f   :  { %v4678_v58 = vsel %vm2322_vm11, %v4677_v4, %v4676_v11  ;;  %v4681_v25 = vrot.slane %v4601_v7, 2  ;;  %v4496_v34 = vrot.slane %v4495_v6, 1  ;;  %v4517_v61 = vrot.slane %v4516_v16, 1 }
 0x240   :  { %v4680_v46 = vsel %vm2325_vm12, %v4679_v63, %v4678_v58  ;;  %v4683_v56 = vrot.slane %v4602_v22, 1  ;;  %v4146_v30 = vmax.f32 %v4137_v43, %v4138_v26  ;;  %v4511_v28 = vmax.f32 %v4509_v0, %v4510_v52 }
 0x241   :  { %v4682_v55 = vsel %vm2328_vm13, %v4681_v25, %v4680_v46  ;;  %v4572_v18 = vadd.f32 %v7027_v8, %v4504_v14  ;;  %v4497_v60 = vmax.f32 %v4495_v6, %v4496_v34  ;;  %v4518_v36 = vmax.f32 %v4516_v16, %v4517_v61 }
 0x242   :  { %v4684_v33 = vsel %vm2331_vm14, %v4683_v56, %v4682_v55  ;;  %v4274_v15 = vcombine.high %v4146_v30, %v4146_v30  ;;  %v4281_v53 = vrot.slane %v4146_v30, %v7264_v57  ;;  %v4573_v32 = vadd.f32 %v7027_v8, %v4511_v28 }
 0x243   :  { %4706 = vst [vmem:[#allocation5 + $0x30] sm:$0xff] %v4684_v33  ;;  %v4604_v21 = vmax.f32 %v4572_v18, 0.0  ;;  %v4571_v62 = vadd.f32 %v7027_v8, %v4497_v60  ;;  %v4574_v50 = vadd.f32 %v7027_v8, %v4518_v36 }
 0x244   :  { %v4288_v17 = vrot.slane %v4274_v15, %v7264_v57  ;;  %v4289_v35 = vcombine.high %v4281_v53, %v4281_v53  ;;  %v4519_v40 = vsel %vm1985_vm7, %v4281_v53, -inf  ;;  %v4605_v24 = vmax.f32 %v4573_v32, 0.0 }
 0x245   :  { %v4520_v12 = vrot.slane %v4519_v40, 4  ;;  %v4685_v29 = vrot.slane %v4604_v21, 7  ;;  %v4603_v9 = vmax.f32 %v4571_v62, 0.0  ;;  %v4606_v44 = vmax.f32 %v4574_v50, 0.0 }
 0x246   :  { %v4290_v59 = vcombine.high %v4288_v17, %v4288_v17  ;;  %v4526_v39 = vsel %vm1985_vm7, %v4289_v35, -inf  ;;  %v4533_v45 = vsel %vm1985_vm7, %v4288_v17, -inf  ;;  %v4687_v20 = vrot.slane %v4605_v24, 6 }
 0x247   :  { %v4521_v48 = vmax.f32 %v4519_v40, %v4520_v12  ;;  %v4527_v51 = vrot.slane %v4526_v39, 4  ;;  %v4534_v1 = vrot.slane %v4533_v45, 4  ;;  %v4686_v6 = vsel %vm2313_vm8, %v4685_v29, %v4603_v9 }
 0x248   :  { %v4540_v57 = vsel %vm1985_vm7, %v4290_v59, -inf  ;;  %v4689_v47 = vrot.slane %v4606_v44, 5  ;;  %v4688_v7 = vsel %vm2316_vm9, %v4687_v20, %v4686_v6 }
 0x249   :  { %v4522_v38 = vrot.slane %v4521_v48, 2  ;;  %v4528_v42 = vmax.f32 %v4526_v39, %v4527_v51  ;;  %v4541_v19 = vrot.slane %v4540_v57, 4  ;;  %v4535_v37 = vmax.f32 %v4533_v45, %v4534_v1 }
 0x24a   :  { %v4690_v25 = vsel %vm2319_vm10, %v4689_v47, %v4688_v7 }
 0x24b   :  { %v4523_v10 = vmax.f32 %v4521_v48, %v4522_v38  ;;  %v4529_v2 = vrot.slane %v4528_v42, 2  ;;  %v4542_v11 = vmax.f32 %v4540_v57, %v4541_v19  ;;  %v4536_v27 = vrot.slane %v4535_v37, 2 }
 0x24d   :  { %v4524_v5 = vrot.slane %v4523_v10, 1  ;;  %v4530_v3 = vmax.f32 %v4528_v42, %v4529_v2  ;;  %v4543_v49 = vrot.slane %v4542_v11, 2  ;;  %v4537_v13 = vmax.f32 %v4535_v37, %v4536_v27 }
 0x24f   :  { %v4525_v54 = vmax.f32 %v4523_v10, %v4524_v5  ;;  %v4531_v31 = vrot.slane %v4530_v3, 1  ;;  %v4544_v0 = vmax.f32 %v4542_v11, %v4543_v49  ;;  %v4538_v41 = vrot.slane %v4537_v13, 1 }
 0x251   :  { %v4532_v4 = vmax.f32 %v4530_v3, %v4531_v31  ;;  %v4545_v23 = vrot.slane %v4544_v0, 1  ;;  %v4575_v26 = vadd.f32 %v7027_v8, %v4525_v54  ;;  %v4539_v22 = vmax.f32 %v4537_v13, %v4538_v41 }
 0x253   :  { %v4546_v63 = vmax.f32 %v4544_v0, %v4545_v23  ;;  %v4576_v52 = vadd.f32 %v7027_v8, %v4532_v4  ;;  %v4607_v16 = vmax.f32 %v4575_v26, 0.0  ;;  %v4577_v58 = vadd.f32 %v7027_v8, %v4539_v22 }
 0x255   :  { %v4578_v14 = vadd.f32 %v7027_v8, %v4546_v63  ;;  %v4608_v43 = vmax.f32 %v4576_v52, 0.0  ;;  %v4691_v46 = vrot.slane %v4607_v16, 4  ;;  %v4609_v56 = vmax.f32 %v4577_v58, 0.0 }
 0x257   :  { %v4610_v34 = vmax.f32 %v4578_v14, 0.0  ;;  %v4692_v55 = vsel %vm2322_vm11, %v4691_v46, %v4690_v25  ;;  %v4693_v61 = vrot.slane %v4608_v43, 3  ;;  %v4695_v30 = vrot.slane %v4609_v56, 2 }
 0x259   :  { %v4694_v33 = vsel %vm2325_vm12, %v4693_v61, %v4692_v55  ;;  %v4697_v28 = vrot.slane %v4610_v34, 1 }
 0x25a   :  { %v4696_v18 = vsel %vm2328_vm13, %v4695_v30, %v4694_v33 }
 0x25b   :  { %v4698_v15 = vsel %vm2331_vm14, %v4697_v28, %v4696_v18 }
 0x25c   :  { %4707 = vst [vmem:[#allocation5 + $0x38] sm:$0xff] %v4698_v15 }
 0x25d   :  { %5283 = shalt.err (!%p5280_p9)
}
 0x25e   :  { %4719 = dma.vmem_to_hbm [thread:$0]  %s4714_s8, 1024, %s7156_s3, [#allocation4], %s5297_s15, %s5297_s15, %s5298_s16  }
 0x25f   :  { %5294 = dma.done.wait [#allocation4], 1024  }
 0x260   :  { %5295 = vsyncadd [#allocation4], 4294966272 }
 0x261   :  { %4723 = vsyncpa [#allocation3], 1 }
 0x262   :  { %4724 = vsyncpa [#allocation4], 1 }

</bundles_post_ra>
